<compile_context>
chip_gen: v7x
topology: tpu7x:2x2x1
jax: 0.10.0
libtpu: 0.0.40
codegen_flags: <defaults>
</compile_context>

<pallas_src>
import functools

import jax
import jax.numpy as jnp
import numpy as np
from jax.experimental import pallas as pl
from jax.experimental.pallas import tpu as pltpu


def lstm_rec_kernel(gx_ref, whh_ref, out_ref, h_out_ref, c_out_ref, h_st, c_st):
    """Recurrent part of one LSTM layer.

    Grid = (batch_shards, num_time_blocks); time (axis 1) is sequential.
      gx_ref : (t_blk, Bs, 4H) f32   precomputed x@W_ih + b for this time block / shard
      whh_ref: (H, 4H)               recurrent weights (resident across all steps)
      out_ref: (t_blk, Bs, H)        per-step hidden outputs (input to next layer)
      h_out_ref / c_out_ref: (Bs, H) final states, written on the last time block only
      h_st / c_st: (Bs, H) f32 VMEM scratch carrying the recurrence across grid steps
    """
    t = pl.program_id(1)
    n_t = pl.num_programs(1)

    @pl.when(t == 0)
    def _():
        h_st[...] = jnp.zeros_like(h_st)
        c_st[...] = jnp.zeros_like(c_st)

    H = whh_ref.shape[0]
    t_blk = gx_ref.shape[0]
    w_dtype = whh_ref.dtype

    def step(s, carry):
        h_prev = h_st[...]
        c_prev = c_st[...]
        # Only the recurrent matmul lives on the serial critical path.
        gates = gx_ref[s] + jnp.dot(h_prev.astype(w_dtype), whh_ref[...],
                                    preferred_element_type=jnp.float32)
        # H is lane-aligned (multiple of 128) -> these slices are free vreg selects.
        i_g = jax.nn.sigmoid(gates[:, 0 * H:1 * H])
        f_g = jax.nn.sigmoid(gates[:, 1 * H:2 * H])
        g_g = jnp.tanh(gates[:, 2 * H:3 * H])
        o_g = jax.nn.sigmoid(gates[:, 3 * H:4 * H])
        c_new = f_g * c_prev + i_g * g_g
        h_new = o_g * jnp.tanh(c_new)
        h_st[...] = h_new
        c_st[...] = c_new
        out_ref[s] = h_new.astype(out_ref.dtype)      # lane-dense (Bs, H) store
        return carry

    jax.lax.fori_loop(0, t_blk, step, None, unroll=True)

    @pl.when(t == n_t - 1)
    def _():
        h_out_ref[...] = h_st[...].astype(h_out_ref.dtype)
        c_out_ref[...] = c_st[...].astype(c_out_ref.dtype)


def lstm_layer(x_seq, w_ih_t, w_hh_t, b, *, t_blk, batch_shards, matmul_dtype):
    """One LSTM layer.

    x_seq: (S, B, D) f32;  w_ih_t: (D, 4H);  w_hh_t: (H, 4H);  b: (1, 4H).
    Returns (outputs (S,B,H), h_n (B,H), c_n (B,H)), all f32.
    """
    S, B, D = x_seq.shape
    H = w_hh_t.shape[0]
    assert S % t_blk == 0, "seq_len must be divisible by t_blk"
    assert B % batch_shards == 0, "batch must be divisible by batch_shards"
    Bs = B // batch_shards

    # Hoisted input projection + bias: one big matmul with M = S*B (fills MXU rows),
    # removed from the sequential critical path.  f32 accumulation always.
    gx = (jnp.dot(x_seq.reshape(S * B, D).astype(matmul_dtype),
                  w_ih_t.astype(matmul_dtype),
                  preferred_element_type=jnp.float32,
                  precision=jax.lax.Precision.HIGHEST)
          + b).reshape(S, B, 4 * H)
    whh = w_hh_t.astype(matmul_dtype)

    out_shapes = (
        jax.ShapeDtypeStruct((S, B, H), jnp.float32),   # hidden outputs over time
        jax.ShapeDtypeStruct((B, H), jnp.float32),       # final hidden
        jax.ShapeDtypeStruct((B, H), jnp.float32),       # final cell
    )
    grid_spec = pltpu.PrefetchScalarGridSpec(
        num_scalar_prefetch=0,
        grid=(batch_shards, S // t_blk),                 # (parallel, sequential-time)
        in_specs=[
            pl.BlockSpec((t_blk, Bs, 4 * H), lambda bs, t: (t, bs, 0)),
            pl.BlockSpec((H, 4 * H), lambda bs, t: (0, 0)),   # W_hh resident
        ],
        out_specs=[
            pl.BlockSpec((t_blk, Bs, H), lambda bs, t: (t, bs, 0)),
            pl.BlockSpec((Bs, H), lambda bs, t: (bs, 0)),
            pl.BlockSpec((Bs, H), lambda bs, t: (bs, 0)),
        ],
        scratch_shapes=[
            pltpu.VMEM((Bs, H), jnp.float32),            # h state (f32 always)
            pltpu.VMEM((Bs, H), jnp.float32),            # c state (f32 always)
        ],
    )
    return pl.pallas_call(
        lstm_rec_kernel,
        out_shape=out_shapes,
        grid_spec=grid_spec,
        compiler_params=pltpu.CompilerParams(
            # batch shards may run on separate TensorCores (v7x); time is sequential.
            dimension_semantics=("parallel", "arbitrary")),
    )(gx, whh)


@functools.partial(jax.jit,
                   static_argnames=("t_blk", "batch_shards", "matmul_dtype"))
def encoder_forward(x_tokens, params, *, t_blk=8, batch_shards=1,
                    matmul_dtype=jnp.float32):
    """x_tokens: (S, B) int32.  Returns (hidden, cell), each (num_layers, B, H)."""
    # TODO(synk): embedding gather + eval-mode dropout stay in plain JAX; a fused
    # version would gather rows via scalar-prefetched ids / pl.Element index_map and
    # use pltpu.prng_random_bits for training-mode dropout.
    emb = jnp.take(params["embedding"], x_tokens, axis=0)        # (S, B, E)
    h_list, c_list = [], []
    layer_in = emb
    for lp in params["lstm"]:
        outputs, h_n, c_n = lstm_layer(
            layer_in, lp["w_ih_t"], lp["w_hh_t"], lp["b"],
            t_blk=t_blk, batch_shards=batch_shards, matmul_dtype=matmul_dtype)
        h_list.append(h_n)
        c_list.append(c_n)
        layer_in = outputs   # inter-layer dropout is identity in eval mode
    return jnp.stack(h_list, axis=0), jnp.stack(c_list, axis=0)


def init_params(key, vocab_size, embedding_size, hidden_size, num_layers):
    keys = jax.random.split(key, 1 + 4 * num_layers)
    params = {"embedding": jax.random.normal(
        keys[0], (vocab_size, embedding_size), jnp.float32)}
    bound = 1.0 / np.sqrt(hidden_size)
    lstm = []
    for l in range(num_layers):
        in_dim = embedding_size if l == 0 else hidden_size
        k0, k1, k2, k3 = keys[1 + 4 * l: 1 + 4 * (l + 1)]
        w_ih = jax.random.uniform(k0, (4 * hidden_size, in_dim),
                                  jnp.float32, -bound, bound)
        w_hh = jax.random.uniform(k1, (4 * hidden_size, hidden_size),
                                  jnp.float32, -bound, bound)
        b_ih = jax.random.uniform(k2, (4 * hidden_size,), jnp.float32, -bound, bound)
        b_hh = jax.random.uniform(k3, (4 * hidden_size,), jnp.float32, -bound, bound)
        lstm.append({
            "w_ih_t": w_ih.T,                 # (in_dim, 4H)
            "w_hh_t": w_hh.T,                 # (H, 4H)
            "b": (b_ih + b_hh)[None, :],      # (1, 4H) -- folded into hoisted proj
        })
    params["lstm"] = lstm
    return params


def _reference_encoder(x_tokens, params):
    """Pure-JAX reference (lax.scan) for correctness check."""
    emb = jnp.take(params["embedding"], x_tokens, axis=0)
    h_list, c_list = [], []
    layer_in = emb
    hi = jax.lax.Precision.HIGHEST
    for lp in params["lstm"]:
        H = lp["w_hh_t"].shape[0]
        B = layer_in.shape[1]

        def step(carry, x_t, lp=lp, H=H):
            h, c = carry
            gates = (jnp.dot(x_t, lp["w_ih_t"], precision=hi)
                     + jnp.dot(h, lp["w_hh_t"], precision=hi)
                     + lp["b"])
            i = jax.nn.sigmoid(gates[:, 0 * H:1 * H])
            f = jax.nn.sigmoid(gates[:, 1 * H:2 * H])
            g = jnp.tanh(gates[:, 2 * H:3 * H])
            o = jax.nn.sigmoid(gates[:, 3 * H:4 * H])
            c_new = f * c + i * g
            h_new = o * jnp.tanh(c_new)
            return (h_new, c_new), h_new

        init = (jnp.zeros((B, H), jnp.float32), jnp.zeros((B, H), jnp.float32))
        (h_n, c_n), outs = jax.lax.scan(step, init, layer_in)
        h_list.append(h_n)
        c_list.append(c_n)
        layer_in = outs
    return jnp.stack(h_list, 0), jnp.stack(c_list, 0)


if __name__ == "__main__":
    # Small but tile-friendly shapes: H multiple of 128 (lane-aligned gate slices,
    # lane-dense stores), batch multiple of 8 (sublane-aligned), 2 batch shards.
    vocab_size = 64
    embedding_size = 64
    hidden_size = 128
    num_layers = 2
    seq_len = 16
    batch = 16
    t_blk = 8
    batch_shards = 2
    dpt = 0.0            # dropout is identity here (eval semantics)

    key = jax.random.PRNGKey(0)
    pkey, xkey = jax.random.split(key)
    params = init_params(pkey, vocab_size, embedding_size, hidden_size, num_layers)
    x_tokens = jax.random.randint(xkey, (seq_len, batch), 0, vocab_size, jnp.int32)

    # f32 path (default) -- tight correctness check against pure-JAX reference.
    hidden, cell = encoder_forward(x_tokens, params,
                                   t_blk=t_blk, batch_shards=batch_shards)
    jax.block_until_ready((hidden, cell))

    assert hidden.shape == (num_layers, batch, hidden_size)
    assert cell.shape == (num_layers, batch, hidden_size)

    h_ref, c_ref = _reference_encoder(x_tokens, params)
    np.testing.assert_allclose(np.asarray(hidden), np.asarray(h_ref),
                               rtol=1e-4, atol=1e-4)
    np.testing.assert_allclose(np.asarray(cell), np.asarray(c_ref),
                               rtol=1e-4, atol=1e-4)

    # bf16-operand path (v6e/v7x MXU-native); f32 accumulation + f32 cell state,
    # so numerics stay close -- loose sanity check only.
    hidden_bf, cell_bf = encoder_forward(x_tokens, params,
                                         t_blk=t_blk, batch_shards=batch_shards,
                                         matmul_dtype=jnp.bfloat16)
    jax.block_until_ready((hidden_bf, cell_bf))
    np.testing.assert_allclose(np.asarray(hidden_bf), np.asarray(h_ref),
                               rtol=1e-1, atol=1e-1)
    np.testing.assert_allclose(np.asarray(cell_bf), np.asarray(c_ref),
                               rtol=1e-1, atol=1e-1)

    print("KERNEL_OK")
</pallas_src>

<mosaic_0001>
module attributes {stable_mosaic.version = 11 : i64} {
  func.func @lstm_rec_kernel(%arg0: i32, %arg1: i32, %arg2: memref<8x8x512xf32, #tpu.memory_space<vmem>>, %arg3: memref<128x512xf32, #tpu.memory_space<vmem>>, %arg4: memref<8x8x128xf32, #tpu.memory_space<vmem>>, %arg5: memref<8x128xf32, #tpu.memory_space<vmem>>, %arg6: memref<8x128xf32, #tpu.memory_space<vmem>>, %arg7: memref<8x128xf32, #tpu.memory_space<vmem>>, %arg8: memref<8x128xf32, #tpu.memory_space<vmem>>) attributes {dimension_semantics = [#tpu.dimension_semantics<parallel>, #tpu.dimension_semantics<arbitrary>], iteration_bounds = array<i64: 2, 2>, scalar_prefetch = 0 : i64, scratch_operands = 2 : i64, tpu.core_type = #tpu.core_type<tc>, window_params = [{transform_indices = @transform_0, window_bounds = array<i64: 8, 8, 512>}, {pipeline_mode = #tpu.pipeline_mode<synchronous>, transform_indices = @transform_1, window_bounds = array<i64: 128, 512>}, {transform_indices = @transform_2, window_bounds = array<i64: 8, 8, 128>}, {transform_indices = @transform_3, window_bounds = array<i64: 8, 128>}, {transform_indices = @transform_4, window_bounds = array<i64: 8, 128>}]} {
    %c0_i32 = arith.constant 0 : i32
    %0 = arith.cmpi eq, %arg1, %c0_i32 : i32
    %1 = arith.extui %0 : i1 to i32
    %c0_i32_0 = arith.constant 0 : i32
    %2 = arith.cmpi ne, %1, %c0_i32_0 : i32
    scf.if %2 {
      %cst_146 = arith.constant 0.000000e+00 : f32
      %318 = vector.broadcast %cst_146 : f32 to vector<8x128xf32>
      %c0_147 = arith.constant 0 : index
      %c0_148 = arith.constant 0 : index
      %319 = vector.load %arg7[%c0_147, %c0_148] : memref<8x128xf32, #tpu.memory_space<vmem>>, vector<8x128xf32>
      tpu.vector_store %arg7[%c0_147, %c0_148], %318 {strides = array<i32>} : memref<8x128xf32, #tpu.memory_space<vmem>>, vector<8x128xf32>,
      %cst_149 = arith.constant 0.000000e+00 : f32
      %320 = vector.broadcast %cst_149 : f32 to vector<8x128xf32>
      %c0_150 = arith.constant 0 : index
      %c0_151 = arith.constant 0 : index
      %321 = vector.load %arg8[%c0_150, %c0_151] : memref<8x128xf32, #tpu.memory_space<vmem>>, vector<8x128xf32>
      tpu.vector_store %arg8[%c0_150, %c0_151], %320 {strides = array<i32>} : memref<8x128xf32, #tpu.memory_space<vmem>>, vector<8x128xf32>,
    } else {
    }
    %c0_i32_1 = arith.constant 0 : i32
    %c0 = arith.constant 0 : index
    %c0_2 = arith.constant 0 : index
    %3 = vector.load %arg7[%c0, %c0_2] : memref<8x128xf32, #tpu.memory_space<vmem>>, vector<8x128xf32>
    %c0_3 = arith.constant 0 : index
    %c0_4 = arith.constant 0 : index
    %4 = vector.load %arg8[%c0_3, %c0_4] : memref<8x128xf32, #tpu.memory_space<vmem>>, vector<8x128xf32>
    %5 = arith.index_cast %c0_i32_1 : i32 to index
    %c0_5 = arith.constant 0 : index
    %c0_6 = arith.constant 0 : index
    %6 = vector.load %arg2[%5, %c0_5, %c0_6] : memref<8x8x512xf32, #tpu.memory_space<vmem>>, vector<1x8x512xf32>
    %7 = vector.shape_cast %6 : vector<1x8x512xf32> to vector<8x512xf32>
    %c0_7 = arith.constant 0 : index
    %c0_8 = arith.constant 0 : index
    %8 = vector.load %arg3[%c0_7, %c0_8] : memref<128x512xf32, #tpu.memory_space<vmem>>, vector<128x512xf32>
    %cst = arith.constant dense<0.000000e+00> : vector<8x512xf32>
    %9 = tpu.matmul %3, %8, %cst {dimension_numbers = #tpu.dot_dimension_numbers<[1], [0], [0], [1], [0, 0, 1, 1], [], []>} : vector<8x128xf32>, vector<128x512xf32>, vector<8x512xf32> -> vector<8x512xf32>
    %10 = arith.addf %7, %9 : vector<8x512xf32>
    %11 = vector.extract_strided_slice %10 {offsets = [0, 0], sizes = [8, 128], strides = [1, 1]} : vector<8x512xf32> to vector<8x128xf32>
    %12 = arith.negf %11 : vector<8x128xf32>
    %13 = math.exp %12 : vector<8x128xf32>
    %cst_9 = arith.constant 1.000000e+00 : f32
    %14 = vector.broadcast %cst_9 : f32 to vector<8x128xf32>
    %15 = arith.addf %14, %13 : vector<8x128xf32>
    %16 = arith.divf %14, %15 : vector<8x128xf32>
    %17 = vector.extract_strided_slice %10 {offsets = [0, 128], sizes = [8, 128], strides = [1, 1]} : vector<8x512xf32> to vector<8x128xf32>
    %18 = arith.negf %17 : vector<8x128xf32>
    %19 = math.exp %18 : vector<8x128xf32>
    %cst_10 = arith.constant 1.000000e+00 : f32
    %20 = vector.broadcast %cst_10 : f32 to vector<8x128xf32>
    %21 = arith.addf %20, %19 : vector<8x128xf32>
    %22 = arith.divf %20, %21 : vector<8x128xf32>
    %23 = vector.extract_strided_slice %10 {offsets = [0, 256], sizes = [8, 128], strides = [1, 1]} : vector<8x512xf32> to vector<8x128xf32>
    %24 = math.tanh %23 : vector<8x128xf32>
    %25 = vector.extract_strided_slice %10 {offsets = [0, 384], sizes = [8, 128], strides = [1, 1]} : vector<8x512xf32> to vector<8x128xf32>
    %26 = arith.negf %25 : vector<8x128xf32>
    %27 = math.exp %26 : vector<8x128xf32>
    %cst_11 = arith.constant 1.000000e+00 : f32
    %28 = vector.broadcast %cst_11 : f32 to vector<8x128xf32>
    %29 = arith.addf %28, %27 : vector<8x128xf32>
    %30 = arith.divf %28, %29 : vector<8x128xf32>
    %31 = arith.mulf %22, %4 : vector<8x128xf32>
    %32 = arith.mulf %16, %24 : vector<8x128xf32>
    %33 = arith.addf %31, %32 : vector<8x128xf32>
    %34 = math.tanh %33 : vector<8x128xf32>
    %35 = arith.mulf %30, %34 : vector<8x128xf32>
    %c0_12 = arith.constant 0 : index
    %c0_13 = arith.constant 0 : index
    %36 = vector.load %arg7[%c0_12, %c0_13] : memref<8x128xf32, #tpu.memory_space<vmem>>, vector<8x128xf32>
    tpu.vector_store %arg7[%c0_12, %c0_13], %35 {strides = array<i32>} : memref<8x128xf32, #tpu.memory_space<vmem>>, vector<8x128xf32>,
    %c0_14 = arith.constant 0 : index
    %c0_15 = arith.constant 0 : index
    %37 = vector.load %arg8[%c0_14, %c0_15] : memref<8x128xf32, #tpu.memory_space<vmem>>, vector<8x128xf32>
    tpu.vector_store %arg8[%c0_14, %c0_15], %33 {strides = array<i32>} : memref<8x128xf32, #tpu.memory_space<vmem>>, vector<8x128xf32>,
    %38 = arith.index_cast %c0_i32_1 : i32 to index
    %c0_16 = arith.constant 0 : index
    %c0_17 = arith.constant 0 : index
    %39 = vector.load %arg4[%38, %c0_16, %c0_17] : memref<8x8x128xf32, #tpu.memory_space<vmem>>, vector<1x8x128xf32>
    %40 = vector.shape_cast %39 : vector<1x8x128xf32> to vector<8x128xf32>
    %41 = vector.shape_cast %35 : vector<8x128xf32> to vector<1x8x128xf32>
    tpu.vector_store %arg4[%38, %c0_16, %c0_17], %41 {strides = array<i32>} : memref<8x8x128xf32, #tpu.memory_space<vmem>>, vector<1x8x128xf32>,
    %c1_i32 = arith.constant 1 : i32
    %c0_18 = arith.constant 0 : index
    %c0_19 = arith.constant 0 : index
    %42 = vector.load %arg7[%c0_18, %c0_19] : memref<8x128xf32, #tpu.memory_space<vmem>>, vector<8x128xf32>
    %c0_20 = arith.constant 0 : index
    %c0_21 = arith.constant 0 : index
    %43 = vector.load %arg8[%c0_20, %c0_21] : memref<8x128xf32, #tpu.memory_space<vmem>>, vector<8x128xf32>
    %44 = arith.index_cast %c1_i32 : i32 to index
    %c0_22 = arith.constant 0 : index
    %c0_23 = arith.constant 0 : index
    %45 = vector.load %arg2[%44, %c0_22, %c0_23] : memref<8x8x512xf32, #tpu.memory_space<vmem>>, vector<1x8x512xf32>
    %46 = vector.shape_cast %45 : vector<1x8x512xf32> to vector<8x512xf32>
    %c0_24 = arith.constant 0 : index
    %c0_25 = arith.constant 0 : index
    %47 = vector.load %arg3[%c0_24, %c0_25] : memref<128x512xf32, #tpu.memory_space<vmem>>, vector<128x512xf32>
    %cst_26 = arith.constant dense<0.000000e+00> : vector<8x512xf32>
    %48 = tpu.matmul %42, %47, %cst_26 {dimension_numbers = #tpu.dot_dimension_numbers<[1], [0], [0], [1], [0, 0, 1, 1], [], []>} : vector<8x128xf32>, vector<128x512xf32>, vector<8x512xf32> -> vector<8x512xf32>
    %49 = arith.addf %46, %48 : vector<8x512xf32>
    %50 = vector.extract_strided_slice %49 {offsets = [0, 0], sizes = [8, 128], strides = [1, 1]} : vector<8x512xf32> to vector<8x128xf32>
    %51 = arith.negf %50 : vector<8x128xf32>
    %52 = math.exp %51 : vector<8x128xf32>
    %cst_27 = arith.constant 1.000000e+00 : f32
    %53 = vector.broadcast %cst_27 : f32 to vector<8x128xf32>
    %54 = arith.addf %53, %52 : vector<8x128xf32>
    %55 = arith.divf %53, %54 : vector<8x128xf32>
    %56 = vector.extract_strided_slice %49 {offsets = [0, 128], sizes = [8, 128], strides = [1, 1]} : vector<8x512xf32> to vector<8x128xf32>
    %57 = arith.negf %56 : vector<8x128xf32>
    %58 = math.exp %57 : vector<8x128xf32>
    %cst_28 = arith.constant 1.000000e+00 : f32
    %59 = vector.broadcast %cst_28 : f32 to vector<8x128xf32>
    %60 = arith.addf %59, %58 : vector<8x128xf32>
    %61 = arith.divf %59, %60 : vector<8x128xf32>
    %62 = vector.extract_strided_slice %49 {offsets = [0, 256], sizes = [8, 128], strides = [1, 1]} : vector<8x512xf32> to vector<8x128xf32>
    %63 = math.tanh %62 : vector<8x128xf32>
    %64 = vector.extract_strided_slice %49 {offsets = [0, 384], sizes = [8, 128], strides = [1, 1]} : vector<8x512xf32> to vector<8x128xf32>
    %65 = arith.negf %64 : vector<8x128xf32>
    %66 = math.exp %65 : vector<8x128xf32>
    %cst_29 = arith.constant 1.000000e+00 : f32
    %67 = vector.broadcast %cst_29 : f32 to vector<8x128xf32>
    %68 = arith.addf %67, %66 : vector<8x128xf32>
    %69 = arith.divf %67, %68 : vector<8x128xf32>
    %70 = arith.mulf %61, %43 : vector<8x128xf32>
    %71 = arith.mulf %55, %63 : vector<8x128xf32>
    %72 = arith.addf %70, %71 : vector<8x128xf32>
    %73 = math.tanh %72 : vector<8x128xf32>
    %74 = arith.mulf %69, %73 : vector<8x128xf32>
    %c0_30 = arith.constant 0 : index
    %c0_31 = arith.constant 0 : index
    %75 = vector.load %arg7[%c0_30, %c0_31] : memref<8x128xf32, #tpu.memory_space<vmem>>, vector<8x128xf32>
    tpu.vector_store %arg7[%c0_30, %c0_31], %74 {strides = array<i32>} : memref<8x128xf32, #tpu.memory_space<vmem>>, vector<8x128xf32>,
    %c0_32 = arith.constant 0 : index
    %c0_33 = arith.constant 0 : index
    %76 = vector.load %arg8[%c0_32, %c0_33] : memref<8x128xf32, #tpu.memory_space<vmem>>, vector<8x128xf32>
    tpu.vector_store %arg8[%c0_32, %c0_33], %72 {strides = array<i32>} : memref<8x128xf32, #tpu.memory_space<vmem>>, vector<8x128xf32>,
    %77 = arith.index_cast %c1_i32 : i32 to index
    %c0_34 = arith.constant 0 : index
    %c0_35 = arith.constant 0 : index
    %78 = vector.load %arg4[%77, %c0_34, %c0_35] : memref<8x8x128xf32, #tpu.memory_space<vmem>>, vector<1x8x128xf32>
    %79 = vector.shape_cast %78 : vector<1x8x128xf32> to vector<8x128xf32>
    %80 = vector.shape_cast %74 : vector<8x128xf32> to vector<1x8x128xf32>
    tpu.vector_store %arg4[%77, %c0_34, %c0_35], %80 {strides = array<i32>} : memref<8x8x128xf32, #tpu.memory_space<vmem>>, vector<1x8x128xf32>,
    %c2_i32 = arith.constant 2 : i32
    %c0_36 = arith.constant 0 : index
    %c0_37 = arith.constant 0 : index
    %81 = vector.load %arg7[%c0_36, %c0_37] : memref<8x128xf32, #tpu.memory_space<vmem>>, vector<8x128xf32>
    %c0_38 = arith.constant 0 : index
    %c0_39 = arith.constant 0 : index
    %82 = vector.load %arg8[%c0_38, %c0_39] : memref<8x128xf32, #tpu.memory_space<vmem>>, vector<8x128xf32>
    %83 = arith.index_cast %c2_i32 : i32 to index
    %c0_40 = arith.constant 0 : index
    %c0_41 = arith.constant 0 : index
    %84 = vector.load %arg2[%83, %c0_40, %c0_41] : memref<8x8x512xf32, #tpu.memory_space<vmem>>, vector<1x8x512xf32>
    %85 = vector.shape_cast %84 : vector<1x8x512xf32> to vector<8x512xf32>
    %c0_42 = arith.constant 0 : index
    %c0_43 = arith.constant 0 : index
    %86 = vector.load %arg3[%c0_42, %c0_43] : memref<128x512xf32, #tpu.memory_space<vmem>>, vector<128x512xf32>
    %cst_44 = arith.constant dense<0.000000e+00> : vector<8x512xf32>
    %87 = tpu.matmul %81, %86, %cst_44 {dimension_numbers = #tpu.dot_dimension_numbers<[1], [0], [0], [1], [0, 0, 1, 1], [], []>} : vector<8x128xf32>, vector<128x512xf32>, vector<8x512xf32> -> vector<8x512xf32>
    %88 = arith.addf %85, %87 : vector<8x512xf32>
    %89 = vector.extract_strided_slice %88 {offsets = [0, 0], sizes = [8, 128], strides = [1, 1]} : vector<8x512xf32> to vector<8x128xf32>
    %90 = arith.negf %89 : vector<8x128xf32>
    %91 = math.exp %90 : vector<8x128xf32>
    %cst_45 = arith.constant 1.000000e+00 : f32
    %92 = vector.broadcast %cst_45 : f32 to vector<8x128xf32>
    %93 = arith.addf %92, %91 : vector<8x128xf32>
    %94 = arith.divf %92, %93 : vector<8x128xf32>
    %95 = vector.extract_strided_slice %88 {offsets = [0, 128], sizes = [8, 128], strides = [1, 1]} : vector<8x512xf32> to vector<8x128xf32>
    %96 = arith.negf %95 : vector<8x128xf32>
    %97 = math.exp %96 : vector<8x128xf32>
    %cst_46 = arith.constant 1.000000e+00 : f32
    %98 = vector.broadcast %cst_46 : f32 to vector<8x128xf32>
    %99 = arith.addf %98, %97 : vector<8x128xf32>
    %100 = arith.divf %98, %99 : vector<8x128xf32>
    %101 = vector.extract_strided_slice %88 {offsets = [0, 256], sizes = [8, 128], strides = [1, 1]} : vector<8x512xf32> to vector<8x128xf32>
    %102 = math.tanh %101 : vector<8x128xf32>
    %103 = vector.extract_strided_slice %88 {offsets = [0, 384], sizes = [8, 128], strides = [1, 1]} : vector<8x512xf32> to vector<8x128xf32>
    %104 = arith.negf %103 : vector<8x128xf32>
    %105 = math.exp %104 : vector<8x128xf32>
    %cst_47 = arith.constant 1.000000e+00 : f32
    %106 = vector.broadcast %cst_47 : f32 to vector<8x128xf32>
    %107 = arith.addf %106, %105 : vector<8x128xf32>
    %108 = arith.divf %106, %107 : vector<8x128xf32>
    %109 = arith.mulf %100, %82 : vector<8x128xf32>
    %110 = arith.mulf %94, %102 : vector<8x128xf32>
    %111 = arith.addf %109, %110 : vector<8x128xf32>
    %112 = math.tanh %111 : vector<8x128xf32>
    %113 = arith.mulf %108, %112 : vector<8x128xf32>
    %c0_48 = arith.constant 0 : index
    %c0_49 = arith.constant 0 : index
    %114 = vector.load %arg7[%c0_48, %c0_49] : memref<8x128xf32, #tpu.memory_space<vmem>>, vector<8x128xf32>
    tpu.vector_store %arg7[%c0_48, %c0_49], %113 {strides = array<i32>} : memref<8x128xf32, #tpu.memory_space<vmem>>, vector<8x128xf32>,
    %c0_50 = arith.constant 0 : index
    %c0_51 = arith.constant 0 : index
    %115 = vector.load %arg8[%c0_50, %c0_51] : memref<8x128xf32, #tpu.memory_space<vmem>>, vector<8x128xf32>
    tpu.vector_store %arg8[%c0_50, %c0_51], %111 {strides = array<i32>} : memref<8x128xf32, #tpu.memory_space<vmem>>, vector<8x128xf32>,
    %116 = arith.index_cast %c2_i32 : i32 to index
    %c0_52 = arith.constant 0 : index
    %c0_53 = arith.constant 0 : index
    %117 = vector.load %arg4[%116, %c0_52, %c0_53] : memref<8x8x128xf32, #tpu.memory_space<vmem>>, vector<1x8x128xf32>
    %118 = vector.shape_cast %117 : vector<1x8x128xf32> to vector<8x128xf32>
    %119 = vector.shape_cast %113 : vector<8x128xf32> to vector<1x8x128xf32>
    tpu.vector_store %arg4[%116, %c0_52, %c0_53], %119 {strides = array<i32>} : memref<8x8x128xf32, #tpu.memory_space<vmem>>, vector<1x8x128xf32>,
    %c3_i32 = arith.constant 3 : i32
    %c0_54 = arith.constant 0 : index
    %c0_55 = arith.constant 0 : index
    %120 = vector.load %arg7[%c0_54, %c0_55] : memref<8x128xf32, #tpu.memory_space<vmem>>, vector<8x128xf32>
    %c0_56 = arith.constant 0 : index
    %c0_57 = arith.constant 0 : index
    %121 = vector.load %arg8[%c0_56, %c0_57] : memref<8x128xf32, #tpu.memory_space<vmem>>, vector<8x128xf32>
    %122 = arith.index_cast %c3_i32 : i32 to index
    %c0_58 = arith.constant 0 : index
    %c0_59 = arith.constant 0 : index
    %123 = vector.load %arg2[%122, %c0_58, %c0_59] : memref<8x8x512xf32, #tpu.memory_space<vmem>>, vector<1x8x512xf32>
    %124 = vector.shape_cast %123 : vector<1x8x512xf32> to vector<8x512xf32>
    %c0_60 = arith.constant 0 : index
    %c0_61 = arith.constant 0 : index
    %125 = vector.load %arg3[%c0_60, %c0_61] : memref<128x512xf32, #tpu.memory_space<vmem>>, vector<128x512xf32>
    %cst_62 = arith.constant dense<0.000000e+00> : vector<8x512xf32>
    %126 = tpu.matmul %120, %125, %cst_62 {dimension_numbers = #tpu.dot_dimension_numbers<[1], [0], [0], [1], [0, 0, 1, 1], [], []>} : vector<8x128xf32>, vector<128x512xf32>, vector<8x512xf32> -> vector<8x512xf32>
    %127 = arith.addf %124, %126 : vector<8x512xf32>
    %128 = vector.extract_strided_slice %127 {offsets = [0, 0], sizes = [8, 128], strides = [1, 1]} : vector<8x512xf32> to vector<8x128xf32>
    %129 = arith.negf %128 : vector<8x128xf32>
    %130 = math.exp %129 : vector<8x128xf32>
    %cst_63 = arith.constant 1.000000e+00 : f32
    %131 = vector.broadcast %cst_63 : f32 to vector<8x128xf32>
    %132 = arith.addf %131, %130 : vector<8x128xf32>
    %133 = arith.divf %131, %132 : vector<8x128xf32>
    %134 = vector.extract_strided_slice %127 {offsets = [0, 128], sizes = [8, 128], strides = [1, 1]} : vector<8x512xf32> to vector<8x128xf32>
    %135 = arith.negf %134 : vector<8x128xf32>
    %136 = math.exp %135 : vector<8x128xf32>
    %cst_64 = arith.constant 1.000000e+00 : f32
    %137 = vector.broadcast %cst_64 : f32 to vector<8x128xf32>
    %138 = arith.addf %137, %136 : vector<8x128xf32>
    %139 = arith.divf %137, %138 : vector<8x128xf32>
    %140 = vector.extract_strided_slice %127 {offsets = [0, 256], sizes = [8, 128], strides = [1, 1]} : vector<8x512xf32> to vector<8x128xf32>
    %141 = math.tanh %140 : vector<8x128xf32>
    %142 = vector.extract_strided_slice %127 {offsets = [0, 384], sizes = [8, 128], strides = [1, 1]} : vector<8x512xf32> to vector<8x128xf32>
    %143 = arith.negf %142 : vector<8x128xf32>
    %144 = math.exp %143 : vector<8x128xf32>
    %cst_65 = arith.constant 1.000000e+00 : f32
    %145 = vector.broadcast %cst_65 : f32 to vector<8x128xf32>
    %146 = arith.addf %145, %144 : vector<8x128xf32>
    %147 = arith.divf %145, %146 : vector<8x128xf32>
    %148 = arith.mulf %139, %121 : vector<8x128xf32>
    %149 = arith.mulf %133, %141 : vector<8x128xf32>
    %150 = arith.addf %148, %149 : vector<8x128xf32>
    %151 = math.tanh %150 : vector<8x128xf32>
    %152 = arith.mulf %147, %151 : vector<8x128xf32>
    %c0_66 = arith.constant 0 : index
    %c0_67 = arith.constant 0 : index
    %153 = vector.load %arg7[%c0_66, %c0_67] : memref<8x128xf32, #tpu.memory_space<vmem>>, vector<8x128xf32>
    tpu.vector_store %arg7[%c0_66, %c0_67], %152 {strides = array<i32>} : memref<8x128xf32, #tpu.memory_space<vmem>>, vector<8x128xf32>,
    %c0_68 = arith.constant 0 : index
    %c0_69 = arith.constant 0 : index
    %154 = vector.load %arg8[%c0_68, %c0_69] : memref<8x128xf32, #tpu.memory_space<vmem>>, vector<8x128xf32>
    tpu.vector_store %arg8[%c0_68, %c0_69], %150 {strides = array<i32>} : memref<8x128xf32, #tpu.memory_space<vmem>>, vector<8x128xf32>,
    %155 = arith.index_cast %c3_i32 : i32 to index
    %c0_70 = arith.constant 0 : index
    %c0_71 = arith.constant 0 : index
    %156 = vector.load %arg4[%155, %c0_70, %c0_71] : memref<8x8x128xf32, #tpu.memory_space<vmem>>, vector<1x8x128xf32>
    %157 = vector.shape_cast %156 : vector<1x8x128xf32> to vector<8x128xf32>
    %158 = vector.shape_cast %152 : vector<8x128xf32> to vector<1x8x128xf32>
    tpu.vector_store %arg4[%155, %c0_70, %c0_71], %158 {strides = array<i32>} : memref<8x8x128xf32, #tpu.memory_space<vmem>>, vector<1x8x128xf32>,
    %c4_i32 = arith.constant 4 : i32
    %c0_72 = arith.constant 0 : index
    %c0_73 = arith.constant 0 : index
    %159 = vector.load %arg7[%c0_72, %c0_73] : memref<8x128xf32, #tpu.memory_space<vmem>>, vector<8x128xf32>
    %c0_74 = arith.constant 0 : index
    %c0_75 = arith.constant 0 : index
    %160 = vector.load %arg8[%c0_74, %c0_75] : memref<8x128xf32, #tpu.memory_space<vmem>>, vector<8x128xf32>
    %161 = arith.index_cast %c4_i32 : i32 to index
    %c0_76 = arith.constant 0 : index
    %c0_77 = arith.constant 0 : index
    %162 = vector.load %arg2[%161, %c0_76, %c0_77] : memref<8x8x512xf32, #tpu.memory_space<vmem>>, vector<1x8x512xf32>
    %163 = vector.shape_cast %162 : vector<1x8x512xf32> to vector<8x512xf32>
    %c0_78 = arith.constant 0 : index
    %c0_79 = arith.constant 0 : index
    %164 = vector.load %arg3[%c0_78, %c0_79] : memref<128x512xf32, #tpu.memory_space<vmem>>, vector<128x512xf32>
    %cst_80 = arith.constant dense<0.000000e+00> : vector<8x512xf32>
    %165 = tpu.matmul %159, %164, %cst_80 {dimension_numbers = #tpu.dot_dimension_numbers<[1], [0], [0], [1], [0, 0, 1, 1], [], []>} : vector<8x128xf32>, vector<128x512xf32>, vector<8x512xf32> -> vector<8x512xf32>
    %166 = arith.addf %163, %165 : vector<8x512xf32>
    %167 = vector.extract_strided_slice %166 {offsets = [0, 0], sizes = [8, 128], strides = [1, 1]} : vector<8x512xf32> to vector<8x128xf32>
    %168 = arith.negf %167 : vector<8x128xf32>
    %169 = math.exp %168 : vector<8x128xf32>
    %cst_81 = arith.constant 1.000000e+00 : f32
    %170 = vector.broadcast %cst_81 : f32 to vector<8x128xf32>
    %171 = arith.addf %170, %169 : vector<8x128xf32>
    %172 = arith.divf %170, %171 : vector<8x128xf32>
    %173 = vector.extract_strided_slice %166 {offsets = [0, 128], sizes = [8, 128], strides = [1, 1]} : vector<8x512xf32> to vector<8x128xf32>
    %174 = arith.negf %173 : vector<8x128xf32>
    %175 = math.exp %174 : vector<8x128xf32>
    %cst_82 = arith.constant 1.000000e+00 : f32
    %176 = vector.broadcast %cst_82 : f32 to vector<8x128xf32>
    %177 = arith.addf %176, %175 : vector<8x128xf32>
    %178 = arith.divf %176, %177 : vector<8x128xf32>
    %179 = vector.extract_strided_slice %166 {offsets = [0, 256], sizes = [8, 128], strides = [1, 1]} : vector<8x512xf32> to vector<8x128xf32>
    %180 = math.tanh %179 : vector<8x128xf32>
    %181 = vector.extract_strided_slice %166 {offsets = [0, 384], sizes = [8, 128], strides = [1, 1]} : vector<8x512xf32> to vector<8x128xf32>
    %182 = arith.negf %181 : vector<8x128xf32>
    %183 = math.exp %182 : vector<8x128xf32>
    %cst_83 = arith.constant 1.000000e+00 : f32
    %184 = vector.broadcast %cst_83 : f32 to vector<8x128xf32>
    %185 = arith.addf %184, %183 : vector<8x128xf32>
    %186 = arith.divf %184, %185 : vector<8x128xf32>
    %187 = arith.mulf %178, %160 : vector<8x128xf32>
    %188 = arith.mulf %172, %180 : vector<8x128xf32>
    %189 = arith.addf %187, %188 : vector<8x128xf32>
    %190 = math.tanh %189 : vector<8x128xf32>
    %191 = arith.mulf %186, %190 : vector<8x128xf32>
    %c0_84 = arith.constant 0 : index
    %c0_85 = arith.constant 0 : index
    %192 = vector.load %arg7[%c0_84, %c0_85] : memref<8x128xf32, #tpu.memory_space<vmem>>, vector<8x128xf32>
    tpu.vector_store %arg7[%c0_84, %c0_85], %191 {strides = array<i32>} : memref<8x128xf32, #tpu.memory_space<vmem>>, vector<8x128xf32>,
    %c0_86 = arith.constant 0 : index
    %c0_87 = arith.constant 0 : index
    %193 = vector.load %arg8[%c0_86, %c0_87] : memref<8x128xf32, #tpu.memory_space<vmem>>, vector<8x128xf32>
    tpu.vector_store %arg8[%c0_86, %c0_87], %189 {strides = array<i32>} : memref<8x128xf32, #tpu.memory_space<vmem>>, vector<8x128xf32>,
    %194 = arith.index_cast %c4_i32 : i32 to index
    %c0_88 = arith.constant 0 : index
    %c0_89 = arith.constant 0 : index
    %195 = vector.load %arg4[%194, %c0_88, %c0_89] : memref<8x8x128xf32, #tpu.memory_space<vmem>>, vector<1x8x128xf32>
    %196 = vector.shape_cast %195 : vector<1x8x128xf32> to vector<8x128xf32>
    %197 = vector.shape_cast %191 : vector<8x128xf32> to vector<1x8x128xf32>
    tpu.vector_store %arg4[%194, %c0_88, %c0_89], %197 {strides = array<i32>} : memref<8x8x128xf32, #tpu.memory_space<vmem>>, vector<1x8x128xf32>,
    %c5_i32 = arith.constant 5 : i32
    %c0_90 = arith.constant 0 : index
    %c0_91 = arith.constant 0 : index
    %198 = vector.load %arg7[%c0_90, %c0_91] : memref<8x128xf32, #tpu.memory_space<vmem>>, vector<8x128xf32>
    %c0_92 = arith.constant 0 : index
    %c0_93 = arith.constant 0 : index
    %199 = vector.load %arg8[%c0_92, %c0_93] : memref<8x128xf32, #tpu.memory_space<vmem>>, vector<8x128xf32>
    %200 = arith.index_cast %c5_i32 : i32 to index
    %c0_94 = arith.constant 0 : index
    %c0_95 = arith.constant 0 : index
    %201 = vector.load %arg2[%200, %c0_94, %c0_95] : memref<8x8x512xf32, #tpu.memory_space<vmem>>, vector<1x8x512xf32>
    %202 = vector.shape_cast %201 : vector<1x8x512xf32> to vector<8x512xf32>
    %c0_96 = arith.constant 0 : index
    %c0_97 = arith.constant 0 : index
    %203 = vector.load %arg3[%c0_96, %c0_97] : memref<128x512xf32, #tpu.memory_space<vmem>>, vector<128x512xf32>
    %cst_98 = arith.constant dense<0.000000e+00> : vector<8x512xf32>
    %204 = tpu.matmul %198, %203, %cst_98 {dimension_numbers = #tpu.dot_dimension_numbers<[1], [0], [0], [1], [0, 0, 1, 1], [], []>} : vector<8x128xf32>, vector<128x512xf32>, vector<8x512xf32> -> vector<8x512xf32>
    %205 = arith.addf %202, %204 : vector<8x512xf32>
    %206 = vector.extract_strided_slice %205 {offsets = [0, 0], sizes = [8, 128], strides = [1, 1]} : vector<8x512xf32> to vector<8x128xf32>
    %207 = arith.negf %206 : vector<8x128xf32>
    %208 = math.exp %207 : vector<8x128xf32>
    %cst_99 = arith.constant 1.000000e+00 : f32
    %209 = vector.broadcast %cst_99 : f32 to vector<8x128xf32>
    %210 = arith.addf %209, %208 : vector<8x128xf32>
    %211 = arith.divf %209, %210 : vector<8x128xf32>
    %212 = vector.extract_strided_slice %205 {offsets = [0, 128], sizes = [8, 128], strides = [1, 1]} : vector<8x512xf32> to vector<8x128xf32>
    %213 = arith.negf %212 : vector<8x128xf32>
    %214 = math.exp %213 : vector<8x128xf32>
    %cst_100 = arith.constant 1.000000e+00 : f32
    %215 = vector.broadcast %cst_100 : f32 to vector<8x128xf32>
    %216 = arith.addf %215, %214 : vector<8x128xf32>
    %217 = arith.divf %215, %216 : vector<8x128xf32>
    %218 = vector.extract_strided_slice %205 {offsets = [0, 256], sizes = [8, 128], strides = [1, 1]} : vector<8x512xf32> to vector<8x128xf32>
    %219 = math.tanh %218 : vector<8x128xf32>
    %220 = vector.extract_strided_slice %205 {offsets = [0, 384], sizes = [8, 128], strides = [1, 1]} : vector<8x512xf32> to vector<8x128xf32>
    %221 = arith.negf %220 : vector<8x128xf32>
    %222 = math.exp %221 : vector<8x128xf32>
    %cst_101 = arith.constant 1.000000e+00 : f32
    %223 = vector.broadcast %cst_101 : f32 to vector<8x128xf32>
    %224 = arith.addf %223, %222 : vector<8x128xf32>
    %225 = arith.divf %223, %224 : vector<8x128xf32>
    %226 = arith.mulf %217, %199 : vector<8x128xf32>
    %227 = arith.mulf %211, %219 : vector<8x128xf32>
    %228 = arith.addf %226, %227 : vector<8x128xf32>
    %229 = math.tanh %228 : vector<8x128xf32>
    %230 = arith.mulf %225, %229 : vector<8x128xf32>
    %c0_102 = arith.constant 0 : index
    %c0_103 = arith.constant 0 : index
    %231 = vector.load %arg7[%c0_102, %c0_103] : memref<8x128xf32, #tpu.memory_space<vmem>>, vector<8x128xf32>
    tpu.vector_store %arg7[%c0_102, %c0_103], %230 {strides = array<i32>} : memref<8x128xf32, #tpu.memory_space<vmem>>, vector<8x128xf32>,
    %c0_104 = arith.constant 0 : index
    %c0_105 = arith.constant 0 : index
    %232 = vector.load %arg8[%c0_104, %c0_105] : memref<8x128xf32, #tpu.memory_space<vmem>>, vector<8x128xf32>
    tpu.vector_store %arg8[%c0_104, %c0_105], %228 {strides = array<i32>} : memref<8x128xf32, #tpu.memory_space<vmem>>, vector<8x128xf32>,
    %233 = arith.index_cast %c5_i32 : i32 to index
    %c0_106 = arith.constant 0 : index
    %c0_107 = arith.constant 0 : index
    %234 = vector.load %arg4[%233, %c0_106, %c0_107] : memref<8x8x128xf32, #tpu.memory_space<vmem>>, vector<1x8x128xf32>
    %235 = vector.shape_cast %234 : vector<1x8x128xf32> to vector<8x128xf32>
    %236 = vector.shape_cast %230 : vector<8x128xf32> to vector<1x8x128xf32>
    tpu.vector_store %arg4[%233, %c0_106, %c0_107], %236 {strides = array<i32>} : memref<8x8x128xf32, #tpu.memory_space<vmem>>, vector<1x8x128xf32>,
    %c6_i32 = arith.constant 6 : i32
    %c0_108 = arith.constant 0 : index
    %c0_109 = arith.constant 0 : index
    %237 = vector.load %arg7[%c0_108, %c0_109] : memref<8x128xf32, #tpu.memory_space<vmem>>, vector<8x128xf32>
    %c0_110 = arith.constant 0 : index
    %c0_111 = arith.constant 0 : index
    %238 = vector.load %arg8[%c0_110, %c0_111] : memref<8x128xf32, #tpu.memory_space<vmem>>, vector<8x128xf32>
    %239 = arith.index_cast %c6_i32 : i32 to index
    %c0_112 = arith.constant 0 : index
    %c0_113 = arith.constant 0 : index
    %240 = vector.load %arg2[%239, %c0_112, %c0_113] : memref<8x8x512xf32, #tpu.memory_space<vmem>>, vector<1x8x512xf32>
    %241 = vector.shape_cast %240 : vector<1x8x512xf32> to vector<8x512xf32>
    %c0_114 = arith.constant 0 : index
    %c0_115 = arith.constant 0 : index
    %242 = vector.load %arg3[%c0_114, %c0_115] : memref<128x512xf32, #tpu.memory_space<vmem>>, vector<128x512xf32>
    %cst_116 = arith.constant dense<0.000000e+00> : vector<8x512xf32>
    %243 = tpu.matmul %237, %242, %cst_116 {dimension_numbers = #tpu.dot_dimension_numbers<[1], [0], [0], [1], [0, 0, 1, 1], [], []>} : vector<8x128xf32>, vector<128x512xf32>, vector<8x512xf32> -> vector<8x512xf32>
    %244 = arith.addf %241, %243 : vector<8x512xf32>
    %245 = vector.extract_strided_slice %244 {offsets = [0, 0], sizes = [8, 128], strides = [1, 1]} : vector<8x512xf32> to vector<8x128xf32>
    %246 = arith.negf %245 : vector<8x128xf32>
    %247 = math.exp %246 : vector<8x128xf32>
    %cst_117 = arith.constant 1.000000e+00 : f32
    %248 = vector.broadcast %cst_117 : f32 to vector<8x128xf32>
    %249 = arith.addf %248, %247 : vector<8x128xf32>
    %250 = arith.divf %248, %249 : vector<8x128xf32>
    %251 = vector.extract_strided_slice %244 {offsets = [0, 128], sizes = [8, 128], strides = [1, 1]} : vector<8x512xf32> to vector<8x128xf32>
    %252 = arith.negf %251 : vector<8x128xf32>
    %253 = math.exp %252 : vector<8x128xf32>
    %cst_118 = arith.constant 1.000000e+00 : f32
    %254 = vector.broadcast %cst_118 : f32 to vector<8x128xf32>
    %255 = arith.addf %254, %253 : vector<8x128xf32>
    %256 = arith.divf %254, %255 : vector<8x128xf32>
    %257 = vector.extract_strided_slice %244 {offsets = [0, 256], sizes = [8, 128], strides = [1, 1]} : vector<8x512xf32> to vector<8x128xf32>
    %258 = math.tanh %257 : vector<8x128xf32>
    %259 = vector.extract_strided_slice %244 {offsets = [0, 384], sizes = [8, 128], strides = [1, 1]} : vector<8x512xf32> to vector<8x128xf32>
    %260 = arith.negf %259 : vector<8x128xf32>
    %261 = math.exp %260 : vector<8x128xf32>
    %cst_119 = arith.constant 1.000000e+00 : f32
    %262 = vector.broadcast %cst_119 : f32 to vector<8x128xf32>
    %263 = arith.addf %262, %261 : vector<8x128xf32>
    %264 = arith.divf %262, %263 : vector<8x128xf32>
    %265 = arith.mulf %256, %238 : vector<8x128xf32>
    %266 = arith.mulf %250, %258 : vector<8x128xf32>
    %267 = arith.addf %265, %266 : vector<8x128xf32>
    %268 = math.tanh %267 : vector<8x128xf32>
    %269 = arith.mulf %264, %268 : vector<8x128xf32>
    %c0_120 = arith.constant 0 : index
    %c0_121 = arith.constant 0 : index
    %270 = vector.load %arg7[%c0_120, %c0_121] : memref<8x128xf32, #tpu.memory_space<vmem>>, vector<8x128xf32>
    tpu.vector_store %arg7[%c0_120, %c0_121], %269 {strides = array<i32>} : memref<8x128xf32, #tpu.memory_space<vmem>>, vector<8x128xf32>,
    %c0_122 = arith.constant 0 : index
    %c0_123 = arith.constant 0 : index
    %271 = vector.load %arg8[%c0_122, %c0_123] : memref<8x128xf32, #tpu.memory_space<vmem>>, vector<8x128xf32>
    tpu.vector_store %arg8[%c0_122, %c0_123], %267 {strides = array<i32>} : memref<8x128xf32, #tpu.memory_space<vmem>>, vector<8x128xf32>,
    %272 = arith.index_cast %c6_i32 : i32 to index
    %c0_124 = arith.constant 0 : index
    %c0_125 = arith.constant 0 : index
    %273 = vector.load %arg4[%272, %c0_124, %c0_125] : memref<8x8x128xf32, #tpu.memory_space<vmem>>, vector<1x8x128xf32>
    %274 = vector.shape_cast %273 : vector<1x8x128xf32> to vector<8x128xf32>
    %275 = vector.shape_cast %269 : vector<8x128xf32> to vector<1x8x128xf32>
    tpu.vector_store %arg4[%272, %c0_124, %c0_125], %275 {strides = array<i32>} : memref<8x8x128xf32, #tpu.memory_space<vmem>>, vector<1x8x128xf32>,
    %c7_i32 = arith.constant 7 : i32
    %c0_126 = arith.constant 0 : index
    %c0_127 = arith.constant 0 : index
    %276 = vector.load %arg7[%c0_126, %c0_127] : memref<8x128xf32, #tpu.memory_space<vmem>>, vector<8x128xf32>
    %c0_128 = arith.constant 0 : index
    %c0_129 = arith.constant 0 : index
    %277 = vector.load %arg8[%c0_128, %c0_129] : memref<8x128xf32, #tpu.memory_space<vmem>>, vector<8x128xf32>
    %278 = arith.index_cast %c7_i32 : i32 to index
    %c0_130 = arith.constant 0 : index
    %c0_131 = arith.constant 0 : index
    %279 = vector.load %arg2[%278, %c0_130, %c0_131] : memref<8x8x512xf32, #tpu.memory_space<vmem>>, vector<1x8x512xf32>
    %280 = vector.shape_cast %279 : vector<1x8x512xf32> to vector<8x512xf32>
    %c0_132 = arith.constant 0 : index
    %c0_133 = arith.constant 0 : index
    %281 = vector.load %arg3[%c0_132, %c0_133] : memref<128x512xf32, #tpu.memory_space<vmem>>, vector<128x512xf32>
    %cst_134 = arith.constant dense<0.000000e+00> : vector<8x512xf32>
    %282 = tpu.matmul %276, %281, %cst_134 {dimension_numbers = #tpu.dot_dimension_numbers<[1], [0], [0], [1], [0, 0, 1, 1], [], []>} : vector<8x128xf32>, vector<128x512xf32>, vector<8x512xf32> -> vector<8x512xf32>
    %283 = arith.addf %280, %282 : vector<8x512xf32>
    %284 = vector.extract_strided_slice %283 {offsets = [0, 0], sizes = [8, 128], strides = [1, 1]} : vector<8x512xf32> to vector<8x128xf32>
    %285 = arith.negf %284 : vector<8x128xf32>
    %286 = math.exp %285 : vector<8x128xf32>
    %cst_135 = arith.constant 1.000000e+00 : f32
    %287 = vector.broadcast %cst_135 : f32 to vector<8x128xf32>
    %288 = arith.addf %287, %286 : vector<8x128xf32>
    %289 = arith.divf %287, %288 : vector<8x128xf32>
    %290 = vector.extract_strided_slice %283 {offsets = [0, 128], sizes = [8, 128], strides = [1, 1]} : vector<8x512xf32> to vector<8x128xf32>
    %291 = arith.negf %290 : vector<8x128xf32>
    %292 = math.exp %291 : vector<8x128xf32>
    %cst_136 = arith.constant 1.000000e+00 : f32
    %293 = vector.broadcast %cst_136 : f32 to vector<8x128xf32>
    %294 = arith.addf %293, %292 : vector<8x128xf32>
    %295 = arith.divf %293, %294 : vector<8x128xf32>
    %296 = vector.extract_strided_slice %283 {offsets = [0, 256], sizes = [8, 128], strides = [1, 1]} : vector<8x512xf32> to vector<8x128xf32>
    %297 = math.tanh %296 : vector<8x128xf32>
    %298 = vector.extract_strided_slice %283 {offsets = [0, 384], sizes = [8, 128], strides = [1, 1]} : vector<8x512xf32> to vector<8x128xf32>
    %299 = arith.negf %298 : vector<8x128xf32>
    %300 = math.exp %299 : vector<8x128xf32>
    %cst_137 = arith.constant 1.000000e+00 : f32
    %301 = vector.broadcast %cst_137 : f32 to vector<8x128xf32>
    %302 = arith.addf %301, %300 : vector<8x128xf32>
    %303 = arith.divf %301, %302 : vector<8x128xf32>
    %304 = arith.mulf %295, %277 : vector<8x128xf32>
    %305 = arith.mulf %289, %297 : vector<8x128xf32>
    %306 = arith.addf %304, %305 : vector<8x128xf32>
    %307 = math.tanh %306 : vector<8x128xf32>
    %308 = arith.mulf %303, %307 : vector<8x128xf32>
    %c0_138 = arith.constant 0 : index
    %c0_139 = arith.constant 0 : index
    %309 = vector.load %arg7[%c0_138, %c0_139] : memref<8x128xf32, #tpu.memory_space<vmem>>, vector<8x128xf32>
    tpu.vector_store %arg7[%c0_138, %c0_139], %308 {strides = array<i32>} : memref<8x128xf32, #tpu.memory_space<vmem>>, vector<8x128xf32>,
    %c0_140 = arith.constant 0 : index
    %c0_141 = arith.constant 0 : index
    %310 = vector.load %arg8[%c0_140, %c0_141] : memref<8x128xf32, #tpu.memory_space<vmem>>, vector<8x128xf32>
    tpu.vector_store %arg8[%c0_140, %c0_141], %306 {strides = array<i32>} : memref<8x128xf32, #tpu.memory_space<vmem>>, vector<8x128xf32>,
    %311 = arith.index_cast %c7_i32 : i32 to index
    %c0_142 = arith.constant 0 : index
    %c0_143 = arith.constant 0 : index
    %312 = vector.load %arg4[%311, %c0_142, %c0_143] : memref<8x8x128xf32, #tpu.memory_space<vmem>>, vector<1x8x128xf32>
    %313 = vector.shape_cast %312 : vector<1x8x128xf32> to vector<8x128xf32>
    %314 = vector.shape_cast %308 : vector<8x128xf32> to vector<1x8x128xf32>
    tpu.vector_store %arg4[%311, %c0_142, %c0_143], %314 {strides = array<i32>} : memref<8x8x128xf32, #tpu.memory_space<vmem>>, vector<1x8x128xf32>,
    %c8_i32 = arith.constant 8 : i32
    %c1_i32_144 = arith.constant 1 : i32
    %315 = arith.cmpi eq, %arg1, %c1_i32_144 : i32
    %316 = arith.extui %315 : i1 to i32
    %c0_i32_145 = arith.constant 0 : i32
    %317 = arith.cmpi ne, %316, %c0_i32_145 : i32
    scf.if %317 {
      %c0_146 = arith.constant 0 : index
      %c0_147 = arith.constant 0 : index
      %318 = vector.load %arg7[%c0_146, %c0_147] : memref<8x128xf32, #tpu.memory_space<vmem>>, vector<8x128xf32>
      %c0_148 = arith.constant 0 : index
      %c0_149 = arith.constant 0 : index
      %319 = vector.load %arg5[%c0_148, %c0_149] : memref<8x128xf32, #tpu.memory_space<vmem>>, vector<8x128xf32>
      tpu.vector_store %arg5[%c0_148, %c0_149], %318 {strides = array<i32>} : memref<8x128xf32, #tpu.memory_space<vmem>>, vector<8x128xf32>,
      %c0_150 = arith.constant 0 : index
      %c0_151 = arith.constant 0 : index
      %320 = vector.load %arg8[%c0_150, %c0_151] : memref<8x128xf32, #tpu.memory_space<vmem>>, vector<8x128xf32>
      %c0_152 = arith.constant 0 : index
      %c0_153 = arith.constant 0 : index
      %321 = vector.load %arg6[%c0_152, %c0_153] : memref<8x128xf32, #tpu.memory_space<vmem>>, vector<8x128xf32>
      tpu.vector_store %arg6[%c0_152, %c0_153], %320 {strides = array<i32>} : memref<8x128xf32, #tpu.memory_space<vmem>>, vector<8x128xf32>,
    } else {
    }
    return
  }
  func.func @transform_0(%arg0: i32, %arg1: i32) -> (i32, i32, i32) {
    %c0_i32 = arith.constant 0 : i32
    %c0_i32_0 = arith.constant 0 : i32
    return %arg1, %arg0, %c0_i32 : i32, i32, i32
  }
  func.func @transform_1(%arg0: i32, %arg1: i32) -> (i32, i32) {
    %c0_i32 = arith.constant 0 : i32
    %c0_i32_0 = arith.constant 0 : i32
    %c0_i32_1 = arith.constant 0 : i32
    return %c0_i32, %c0_i32_0 : i32, i32
  }
  func.func @transform_2(%arg0: i32, %arg1: i32) -> (i32, i32, i32) {
    %c0_i32 = arith.constant 0 : i32
    %c0_i32_0 = arith.constant 0 : i32
    return %arg1, %arg0, %c0_i32 : i32, i32, i32
  }
  func.func @transform_3(%arg0: i32, %arg1: i32) -> (i32, i32) {
    %c0_i32 = arith.constant 0 : i32
    %c0_i32_0 = arith.constant 0 : i32
    return %arg0, %c0_i32 : i32, i32
  }
  func.func @transform_4(%arg0: i32, %arg1: i32) -> (i32, i32) {
    %c0_i32 = arith.constant 0 : i32
    %c0_i32_0 = arith.constant 0 : i32
    return %arg0, %c0_i32 : i32, i32
  }
}

module attributes {stable_mosaic.version = 11 : i64} {
  func.func @lstm_rec_kernel(%arg0: i32, %arg1: i32, %arg2: memref<8x8x512xf32, #tpu.memory_space<vmem>>, %arg3: memref<128x512xf32, #tpu.memory_space<vmem>>, %arg4: memref<8x8x128xf32, #tpu.memory_space<vmem>>, %arg5: memref<8x128xf32, #tpu.memory_space<vmem>>, %arg6: memref<8x128xf32, #tpu.memory_space<vmem>>, %arg7: memref<8x128xf32, #tpu.memory_space<vmem>>, %arg8: memref<8x128xf32, #tpu.memory_space<vmem>>) attributes {dimension_semantics = [#tpu.dimension_semantics<parallel>, #tpu.dimension_semantics<arbitrary>], iteration_bounds = array<i64: 2, 2>, scalar_prefetch = 0 : i64, scratch_operands = 2 : i64, tpu.core_type = #tpu.core_type<tc>, window_params = [{transform_indices = @transform_0, window_bounds = array<i64: 8, 8, 512>}, {pipeline_mode = #tpu.pipeline_mode<synchronous>, transform_indices = @transform_1, window_bounds = array<i64: 128, 512>}, {transform_indices = @transform_2, window_bounds = array<i64: 8, 8, 128>}, {transform_indices = @transform_3, window_bounds = array<i64: 8, 128>}, {transform_indices = @transform_4, window_bounds = array<i64: 8, 128>}]} {
    %c0_i32 = arith.constant 0 : i32
    %0 = arith.cmpi eq, %arg1, %c0_i32 : i32
    %1 = arith.extui %0 : i1 to i32
    %c0_i32_0 = arith.constant 0 : i32
    %2 = arith.cmpi ne, %1, %c0_i32_0 : i32
    scf.if %2 {
      %cst_146 = arith.constant 0.000000e+00 : f32
      %318 = vector.broadcast %cst_146 : f32 to vector<8x128xf32>
      %c0_147 = arith.constant 0 : index
      %c0_148 = arith.constant 0 : index
      %319 = vector.load %arg7[%c0_147, %c0_148] : memref<8x128xf32, #tpu.memory_space<vmem>>, vector<8x128xf32>
      tpu.vector_store %arg7[%c0_147, %c0_148], %318 {strides = array<i32>} : memref<8x128xf32, #tpu.memory_space<vmem>>, vector<8x128xf32>,
      %cst_149 = arith.constant 0.000000e+00 : f32
      %320 = vector.broadcast %cst_149 : f32 to vector<8x128xf32>
      %c0_150 = arith.constant 0 : index
      %c0_151 = arith.constant 0 : index
      %321 = vector.load %arg8[%c0_150, %c0_151] : memref<8x128xf32, #tpu.memory_space<vmem>>, vector<8x128xf32>
      tpu.vector_store %arg8[%c0_150, %c0_151], %320 {strides = array<i32>} : memref<8x128xf32, #tpu.memory_space<vmem>>, vector<8x128xf32>,
    } else {
    }
    %c0_i32_1 = arith.constant 0 : i32
    %c0 = arith.constant 0 : index
    %c0_2 = arith.constant 0 : index
    %3 = vector.load %arg7[%c0, %c0_2] : memref<8x128xf32, #tpu.memory_space<vmem>>, vector<8x128xf32>
    %c0_3 = arith.constant 0 : index
    %c0_4 = arith.constant 0 : index
    %4 = vector.load %arg8[%c0_3, %c0_4] : memref<8x128xf32, #tpu.memory_space<vmem>>, vector<8x128xf32>
    %5 = arith.index_cast %c0_i32_1 : i32 to index
    %c0_5 = arith.constant 0 : index
    %c0_6 = arith.constant 0 : index
    %6 = vector.load %arg2[%5, %c0_5, %c0_6] : memref<8x8x512xf32, #tpu.memory_space<vmem>>, vector<1x8x512xf32>
    %7 = vector.shape_cast %6 : vector<1x8x512xf32> to vector<8x512xf32>
    %c0_7 = arith.constant 0 : index
    %c0_8 = arith.constant 0 : index
    %8 = vector.load %arg3[%c0_7, %c0_8] : memref<128x512xf32, #tpu.memory_space<vmem>>, vector<128x512xf32>
    %cst = arith.constant dense<0.000000e+00> : vector<8x512xf32>
    %9 = tpu.matmul %3, %8, %cst {dimension_numbers = #tpu.dot_dimension_numbers<[1], [0], [0], [1], [0, 0, 1, 1], [], []>} : vector<8x128xf32>, vector<128x512xf32>, vector<8x512xf32> -> vector<8x512xf32>
    %10 = arith.addf %7, %9 : vector<8x512xf32>
    %11 = vector.extract_strided_slice %10 {offsets = [0, 0], sizes = [8, 128], strides = [1, 1]} : vector<8x512xf32> to vector<8x128xf32>
    %12 = arith.negf %11 : vector<8x128xf32>
    %13 = math.exp %12 : vector<8x128xf32>
    %cst_9 = arith.constant 1.000000e+00 : f32
    %14 = vector.broadcast %cst_9 : f32 to vector<8x128xf32>
    %15 = arith.addf %14, %13 : vector<8x128xf32>
    %16 = arith.divf %14, %15 : vector<8x128xf32>
    %17 = vector.extract_strided_slice %10 {offsets = [0, 128], sizes = [8, 128], strides = [1, 1]} : vector<8x512xf32> to vector<8x128xf32>
    %18 = arith.negf %17 : vector<8x128xf32>
    %19 = math.exp %18 : vector<8x128xf32>
    %cst_10 = arith.constant 1.000000e+00 : f32
    %20 = vector.broadcast %cst_10 : f32 to vector<8x128xf32>
    %21 = arith.addf %20, %19 : vector<8x128xf32>
    %22 = arith.divf %20, %21 : vector<8x128xf32>
    %23 = vector.extract_strided_slice %10 {offsets = [0, 256], sizes = [8, 128], strides = [1, 1]} : vector<8x512xf32> to vector<8x128xf32>
    %24 = math.tanh %23 : vector<8x128xf32>
    %25 = vector.extract_strided_slice %10 {offsets = [0, 384], sizes = [8, 128], strides = [1, 1]} : vector<8x512xf32> to vector<8x128xf32>
    %26 = arith.negf %25 : vector<8x128xf32>
    %27 = math.exp %26 : vector<8x128xf32>
    %cst_11 = arith.constant 1.000000e+00 : f32
    %28 = vector.broadcast %cst_11 : f32 to vector<8x128xf32>
    %29 = arith.addf %28, %27 : vector<8x128xf32>
    %30 = arith.divf %28, %29 : vector<8x128xf32>
    %31 = arith.mulf %22, %4 : vector<8x128xf32>
    %32 = arith.mulf %16, %24 : vector<8x128xf32>
    %33 = arith.addf %31, %32 : vector<8x128xf32>
    %34 = math.tanh %33 : vector<8x128xf32>
    %35 = arith.mulf %30, %34 : vector<8x128xf32>
    %c0_12 = arith.constant 0 : index
    %c0_13 = arith.constant 0 : index
    %36 = vector.load %arg7[%c0_12, %c0_13] : memref<8x128xf32, #tpu.memory_space<vmem>>, vector<8x128xf32>
    tpu.vector_store %arg7[%c0_12, %c0_13], %35 {strides = array<i32>} : memref<8x128xf32, #tpu.memory_space<vmem>>, vector<8x128xf32>,
    %c0_14 = arith.constant 0 : index
    %c0_15 = arith.constant 0 : index
    %37 = vector.load %arg8[%c0_14, %c0_15] : memref<8x128xf32, #tpu.memory_space<vmem>>, vector<8x128xf32>
    tpu.vector_store %arg8[%c0_14, %c0_15], %33 {strides = array<i32>} : memref<8x128xf32, #tpu.memory_space<vmem>>, vector<8x128xf32>,
    %38 = arith.index_cast %c0_i32_1 : i32 to index
    %c0_16 = arith.constant 0 : index
    %c0_17 = arith.constant 0 : index
    %39 = vector.load %arg4[%38, %c0_16, %c0_17] : memref<8x8x128xf32, #tpu.memory_space<vmem>>, vector<1x8x128xf32>
    %40 = vector.shape_cast %39 : vector<1x8x128xf32> to vector<8x128xf32>
    %41 = vector.shape_cast %35 : vector<8x128xf32> to vector<1x8x128xf32>
    tpu.vector_store %arg4[%38, %c0_16, %c0_17], %41 {strides = array<i32>} : memref<8x8x128xf32, #tpu.memory_space<vmem>>, vector<1x8x128xf32>,
    %c1_i32 = arith.constant 1 : i32
    %c0_18 = arith.constant 0 : index
    %c0_19 = arith.constant 0 : index
    %42 = vector.load %arg7[%c0_18, %c0_19] : memref<8x128xf32, #tpu.memory_space<vmem>>, vector<8x128xf32>
    %c0_20 = arith.constant 0 : index
    %c0_21 = arith.constant 0 : index
    %43 = vector.load %arg8[%c0_20, %c0_21] : memref<8x128xf32, #tpu.memory_space<vmem>>, vector<8x128xf32>
    %44 = arith.index_cast %c1_i32 : i32 to index
    %c0_22 = arith.constant 0 : index
    %c0_23 = arith.constant 0 : index
    %45 = vector.load %arg2[%44, %c0_22, %c0_23] : memref<8x8x512xf32, #tpu.memory_space<vmem>>, vector<1x8x512xf32>
    %46 = vector.shape_cast %45 : vector<1x8x512xf32> to vector<8x512xf32>
    %c0_24 = arith.constant 0 : index
    %c0_25 = arith.constant 0 : index
    %47 = vector.load %arg3[%c0_24, %c0_25] : memref<128x512xf32, #tpu.memory_space<vmem>>, vector<128x512xf32>
    %cst_26 = arith.constant dense<0.000000e+00> : vector<8x512xf32>
    %48 = tpu.matmul %42, %47, %cst_26 {dimension_numbers = #tpu.dot_dimension_numbers<[1], [0], [0], [1], [0, 0, 1, 1], [], []>} : vector<8x128xf32>, vector<128x512xf32>, vector<8x512xf32> -> vector<8x512xf32>
    %49 = arith.addf %46, %48 : vector<8x512xf32>
    %50 = vector.extract_strided_slice %49 {offsets = [0, 0], sizes = [8, 128], strides = [1, 1]} : vector<8x512xf32> to vector<8x128xf32>
    %51 = arith.negf %50 : vector<8x128xf32>
    %52 = math.exp %51 : vector<8x128xf32>
    %cst_27 = arith.constant 1.000000e+00 : f32
    %53 = vector.broadcast %cst_27 : f32 to vector<8x128xf32>
    %54 = arith.addf %53, %52 : vector<8x128xf32>
    %55 = arith.divf %53, %54 : vector<8x128xf32>
    %56 = vector.extract_strided_slice %49 {offsets = [0, 128], sizes = [8, 128], strides = [1, 1]} : vector<8x512xf32> to vector<8x128xf32>
    %57 = arith.negf %56 : vector<8x128xf32>
    %58 = math.exp %57 : vector<8x128xf32>
    %cst_28 = arith.constant 1.000000e+00 : f32
    %59 = vector.broadcast %cst_28 : f32 to vector<8x128xf32>
    %60 = arith.addf %59, %58 : vector<8x128xf32>
    %61 = arith.divf %59, %60 : vector<8x128xf32>
    %62 = vector.extract_strided_slice %49 {offsets = [0, 256], sizes = [8, 128], strides = [1, 1]} : vector<8x512xf32> to vector<8x128xf32>
    %63 = math.tanh %62 : vector<8x128xf32>
    %64 = vector.extract_strided_slice %49 {offsets = [0, 384], sizes = [8, 128], strides = [1, 1]} : vector<8x512xf32> to vector<8x128xf32>
    %65 = arith.negf %64 : vector<8x128xf32>
    %66 = math.exp %65 : vector<8x128xf32>
    %cst_29 = arith.constant 1.000000e+00 : f32
    %67 = vector.broadcast %cst_29 : f32 to vector<8x128xf32>
    %68 = arith.addf %67, %66 : vector<8x128xf32>
    %69 = arith.divf %67, %68 : vector<8x128xf32>
    %70 = arith.mulf %61, %43 : vector<8x128xf32>
    %71 = arith.mulf %55, %63 : vector<8x128xf32>
    %72 = arith.addf %70, %71 : vector<8x128xf32>
    %73 = math.tanh %72 : vector<8x128xf32>
    %74 = arith.mulf %69, %73 : vector<8x128xf32>
    %c0_30 = arith.constant 0 : index
    %c0_31 = arith.constant 0 : index
    %75 = vector.load %arg7[%c0_30, %c0_31] : memref<8x128xf32, #tpu.memory_space<vmem>>, vector<8x128xf32>
    tpu.vector_store %arg7[%c0_30, %c0_31], %74 {strides = array<i32>} : memref<8x128xf32, #tpu.memory_space<vmem>>, vector<8x128xf32>,
    %c0_32 = arith.constant 0 : index
    %c0_33 = arith.constant 0 : index
    %76 = vector.load %arg8[%c0_32, %c0_33] : memref<8x128xf32, #tpu.memory_space<vmem>>, vector<8x128xf32>
    tpu.vector_store %arg8[%c0_32, %c0_33], %72 {strides = array<i32>} : memref<8x128xf32, #tpu.memory_space<vmem>>, vector<8x128xf32>,
    %77 = arith.index_cast %c1_i32 : i32 to index
    %c0_34 = arith.constant 0 : index
    %c0_35 = arith.constant 0 : index
    %78 = vector.load %arg4[%77, %c0_34, %c0_35] : memref<8x8x128xf32, #tpu.memory_space<vmem>>, vector<1x8x128xf32>
    %79 = vector.shape_cast %78 : vector<1x8x128xf32> to vector<8x128xf32>
    %80 = vector.shape_cast %74 : vector<8x128xf32> to vector<1x8x128xf32>
    tpu.vector_store %arg4[%77, %c0_34, %c0_35], %80 {strides = array<i32>} : memref<8x8x128xf32, #tpu.memory_space<vmem>>, vector<1x8x128xf32>,
    %c2_i32 = arith.constant 2 : i32
    %c0_36 = arith.constant 0 : index
    %c0_37 = arith.constant 0 : index
    %81 = vector.load %arg7[%c0_36, %c0_37] : memref<8x128xf32, #tpu.memory_space<vmem>>, vector<8x128xf32>
    %c0_38 = arith.constant 0 : index
    %c0_39 = arith.constant 0 : index
    %82 = vector.load %arg8[%c0_38, %c0_39] : memref<8x128xf32, #tpu.memory_space<vmem>>, vector<8x128xf32>
    %83 = arith.index_cast %c2_i32 : i32 to index
    %c0_40 = arith.constant 0 : index
    %c0_41 = arith.constant 0 : index
    %84 = vector.load %arg2[%83, %c0_40, %c0_41] : memref<8x8x512xf32, #tpu.memory_space<vmem>>, vector<1x8x512xf32>
    %85 = vector.shape_cast %84 : vector<1x8x512xf32> to vector<8x512xf32>
    %c0_42 = arith.constant 0 : index
    %c0_43 = arith.constant 0 : index
    %86 = vector.load %arg3[%c0_42, %c0_43] : memref<128x512xf32, #tpu.memory_space<vmem>>, vector<128x512xf32>
    %cst_44 = arith.constant dense<0.000000e+00> : vector<8x512xf32>
    %87 = tpu.matmul %81, %86, %cst_44 {dimension_numbers = #tpu.dot_dimension_numbers<[1], [0], [0], [1], [0, 0, 1, 1], [], []>} : vector<8x128xf32>, vector<128x512xf32>, vector<8x512xf32> -> vector<8x512xf32>
    %88 = arith.addf %85, %87 : vector<8x512xf32>
    %89 = vector.extract_strided_slice %88 {offsets = [0, 0], sizes = [8, 128], strides = [1, 1]} : vector<8x512xf32> to vector<8x128xf32>
    %90 = arith.negf %89 : vector<8x128xf32>
    %91 = math.exp %90 : vector<8x128xf32>
    %cst_45 = arith.constant 1.000000e+00 : f32
    %92 = vector.broadcast %cst_45 : f32 to vector<8x128xf32>
    %93 = arith.addf %92, %91 : vector<8x128xf32>
    %94 = arith.divf %92, %93 : vector<8x128xf32>
    %95 = vector.extract_strided_slice %88 {offsets = [0, 128], sizes = [8, 128], strides = [1, 1]} : vector<8x512xf32> to vector<8x128xf32>
    %96 = arith.negf %95 : vector<8x128xf32>
    %97 = math.exp %96 : vector<8x128xf32>
    %cst_46 = arith.constant 1.000000e+00 : f32
    %98 = vector.broadcast %cst_46 : f32 to vector<8x128xf32>
    %99 = arith.addf %98, %97 : vector<8x128xf32>
    %100 = arith.divf %98, %99 : vector<8x128xf32>
    %101 = vector.extract_strided_slice %88 {offsets = [0, 256], sizes = [8, 128], strides = [1, 1]} : vector<8x512xf32> to vector<8x128xf32>
    %102 = math.tanh %101 : vector<8x128xf32>
    %103 = vector.extract_strided_slice %88 {offsets = [0, 384], sizes = [8, 128], strides = [1, 1]} : vector<8x512xf32> to vector<8x128xf32>
    %104 = arith.negf %103 : vector<8x128xf32>
    %105 = math.exp %104 : vector<8x128xf32>
    %cst_47 = arith.constant 1.000000e+00 : f32
    %106 = vector.broadcast %cst_47 : f32 to vector<8x128xf32>
    %107 = arith.addf %106, %105 : vector<8x128xf32>
    %108 = arith.divf %106, %107 : vector<8x128xf32>
    %109 = arith.mulf %100, %82 : vector<8x128xf32>
    %110 = arith.mulf %94, %102 : vector<8x128xf32>
    %111 = arith.addf %109, %110 : vector<8x128xf32>
    %112 = math.tanh %111 : vector<8x128xf32>
    %113 = arith.mulf %108, %112 : vector<8x128xf32>
    %c0_48 = arith.constant 0 : index
    %c0_49 = arith.constant 0 : index
    %114 = vector.load %arg7[%c0_48, %c0_49] : memref<8x128xf32, #tpu.memory_space<vmem>>, vector<8x128xf32>
    tpu.vector_store %arg7[%c0_48, %c0_49], %113 {strides = array<i32>} : memref<8x128xf32, #tpu.memory_space<vmem>>, vector<8x128xf32>,
    %c0_50 = arith.constant 0 : index
    %c0_51 = arith.constant 0 : index
    %115 = vector.load %arg8[%c0_50, %c0_51] : memref<8x128xf32, #tpu.memory_space<vmem>>, vector<8x128xf32>
    tpu.vector_store %arg8[%c0_50, %c0_51], %111 {strides = array<i32>} : memref<8x128xf32, #tpu.memory_space<vmem>>, vector<8x128xf32>,
    %116 = arith.index_cast %c2_i32 : i32 to index
    %c0_52 = arith.constant 0 : index
    %c0_53 = arith.constant 0 : index
    %117 = vector.load %arg4[%116, %c0_52, %c0_53] : memref<8x8x128xf32, #tpu.memory_space<vmem>>, vector<1x8x128xf32>
    %118 = vector.shape_cast %117 : vector<1x8x128xf32> to vector<8x128xf32>
    %119 = vector.shape_cast %113 : vector<8x128xf32> to vector<1x8x128xf32>
    tpu.vector_store %arg4[%116, %c0_52, %c0_53], %119 {strides = array<i32>} : memref<8x8x128xf32, #tpu.memory_space<vmem>>, vector<1x8x128xf32>,
    %c3_i32 = arith.constant 3 : i32
    %c0_54 = arith.constant 0 : index
    %c0_55 = arith.constant 0 : index
    %120 = vector.load %arg7[%c0_54, %c0_55] : memref<8x128xf32, #tpu.memory_space<vmem>>, vector<8x128xf32>
    %c0_56 = arith.constant 0 : index
    %c0_57 = arith.constant 0 : index
    %121 = vector.load %arg8[%c0_56, %c0_57] : memref<8x128xf32, #tpu.memory_space<vmem>>, vector<8x128xf32>
    %122 = arith.index_cast %c3_i32 : i32 to index
    %c0_58 = arith.constant 0 : index
    %c0_59 = arith.constant 0 : index
    %123 = vector.load %arg2[%122, %c0_58, %c0_59] : memref<8x8x512xf32, #tpu.memory_space<vmem>>, vector<1x8x512xf32>
    %124 = vector.shape_cast %123 : vector<1x8x512xf32> to vector<8x512xf32>
    %c0_60 = arith.constant 0 : index
    %c0_61 = arith.constant 0 : index
    %125 = vector.load %arg3[%c0_60, %c0_61] : memref<128x512xf32, #tpu.memory_space<vmem>>, vector<128x512xf32>
    %cst_62 = arith.constant dense<0.000000e+00> : vector<8x512xf32>
    %126 = tpu.matmul %120, %125, %cst_62 {dimension_numbers = #tpu.dot_dimension_numbers<[1], [0], [0], [1], [0, 0, 1, 1], [], []>} : vector<8x128xf32>, vector<128x512xf32>, vector<8x512xf32> -> vector<8x512xf32>
    %127 = arith.addf %124, %126 : vector<8x512xf32>
    %128 = vector.extract_strided_slice %127 {offsets = [0, 0], sizes = [8, 128], strides = [1, 1]} : vector<8x512xf32> to vector<8x128xf32>
    %129 = arith.negf %128 : vector<8x128xf32>
    %130 = math.exp %129 : vector<8x128xf32>
    %cst_63 = arith.constant 1.000000e+00 : f32
    %131 = vector.broadcast %cst_63 : f32 to vector<8x128xf32>
    %132 = arith.addf %131, %130 : vector<8x128xf32>
    %133 = arith.divf %131, %132 : vector<8x128xf32>
    %134 = vector.extract_strided_slice %127 {offsets = [0, 128], sizes = [8, 128], strides = [1, 1]} : vector<8x512xf32> to vector<8x128xf32>
    %135 = arith.negf %134 : vector<8x128xf32>
    %136 = math.exp %135 : vector<8x128xf32>
    %cst_64 = arith.constant 1.000000e+00 : f32
    %137 = vector.broadcast %cst_64 : f32 to vector<8x128xf32>
    %138 = arith.addf %137, %136 : vector<8x128xf32>
    %139 = arith.divf %137, %138 : vector<8x128xf32>
    %140 = vector.extract_strided_slice %127 {offsets = [0, 256], sizes = [8, 128], strides = [1, 1]} : vector<8x512xf32> to vector<8x128xf32>
    %141 = math.tanh %140 : vector<8x128xf32>
    %142 = vector.extract_strided_slice %127 {offsets = [0, 384], sizes = [8, 128], strides = [1, 1]} : vector<8x512xf32> to vector<8x128xf32>
    %143 = arith.negf %142 : vector<8x128xf32>
    %144 = math.exp %143 : vector<8x128xf32>
    %cst_65 = arith.constant 1.000000e+00 : f32
    %145 = vector.broadcast %cst_65 : f32 to vector<8x128xf32>
    %146 = arith.addf %145, %144 : vector<8x128xf32>
    %147 = arith.divf %145, %146 : vector<8x128xf32>
    %148 = arith.mulf %139, %121 : vector<8x128xf32>
    %149 = arith.mulf %133, %141 : vector<8x128xf32>
    %150 = arith.addf %148, %149 : vector<8x128xf32>
    %151 = math.tanh %150 : vector<8x128xf32>
    %152 = arith.mulf %147, %151 : vector<8x128xf32>
    %c0_66 = arith.constant 0 : index
    %c0_67 = arith.constant 0 : index
    %153 = vector.load %arg7[%c0_66, %c0_67] : memref<8x128xf32, #tpu.memory_space<vmem>>, vector<8x128xf32>
    tpu.vector_store %arg7[%c0_66, %c0_67], %152 {strides = array<i32>} : memref<8x128xf32, #tpu.memory_space<vmem>>, vector<8x128xf32>,
    %c0_68 = arith.constant 0 : index
    %c0_69 = arith.constant 0 : index
    %154 = vector.load %arg8[%c0_68, %c0_69] : memref<8x128xf32, #tpu.memory_space<vmem>>, vector<8x128xf32>
    tpu.vector_store %arg8[%c0_68, %c0_69], %150 {strides = array<i32>} : memref<8x128xf32, #tpu.memory_space<vmem>>, vector<8x128xf32>,
    %155 = arith.index_cast %c3_i32 : i32 to index
    %c0_70 = arith.constant 0 : index
    %c0_71 = arith.constant 0 : index
    %156 = vector.load %arg4[%155, %c0_70, %c0_71] : memref<8x8x128xf32, #tpu.memory_space<vmem>>, vector<1x8x128xf32>
    %157 = vector.shape_cast %156 : vector<1x8x128xf32> to vector<8x128xf32>
    %158 = vector.shape_cast %152 : vector<8x128xf32> to vector<1x8x128xf32>
    tpu.vector_store %arg4[%155, %c0_70, %c0_71], %158 {strides = array<i32>} : memref<8x8x128xf32, #tpu.memory_space<vmem>>, vector<1x8x128xf32>,
    %c4_i32 = arith.constant 4 : i32
    %c0_72 = arith.constant 0 : index
    %c0_73 = arith.constant 0 : index
    %159 = vector.load %arg7[%c0_72, %c0_73] : memref<8x128xf32, #tpu.memory_space<vmem>>, vector<8x128xf32>
    %c0_74 = arith.constant 0 : index
    %c0_75 = arith.constant 0 : index
    %160 = vector.load %arg8[%c0_74, %c0_75] : memref<8x128xf32, #tpu.memory_space<vmem>>, vector<8x128xf32>
    %161 = arith.index_cast %c4_i32 : i32 to index
    %c0_76 = arith.constant 0 : index
    %c0_77 = arith.constant 0 : index
    %162 = vector.load %arg2[%161, %c0_76, %c0_77] : memref<8x8x512xf32, #tpu.memory_space<vmem>>, vector<1x8x512xf32>
    %163 = vector.shape_cast %162 : vector<1x8x512xf32> to vector<8x512xf32>
    %c0_78 = arith.constant 0 : index
    %c0_79 = arith.constant 0 : index
    %164 = vector.load %arg3[%c0_78, %c0_79] : memref<128x512xf32, #tpu.memory_space<vmem>>, vector<128x512xf32>
    %cst_80 = arith.constant dense<0.000000e+00> : vector<8x512xf32>
    %165 = tpu.matmul %159, %164, %cst_80 {dimension_numbers = #tpu.dot_dimension_numbers<[1], [0], [0], [1], [0, 0, 1, 1], [], []>} : vector<8x128xf32>, vector<128x512xf32>, vector<8x512xf32> -> vector<8x512xf32>
    %166 = arith.addf %163, %165 : vector<8x512xf32>
    %167 = vector.extract_strided_slice %166 {offsets = [0, 0], sizes = [8, 128], strides = [1, 1]} : vector<8x512xf32> to vector<8x128xf32>
    %168 = arith.negf %167 : vector<8x128xf32>
    %169 = math.exp %168 : vector<8x128xf32>
    %cst_81 = arith.constant 1.000000e+00 : f32
    %170 = vector.broadcast %cst_81 : f32 to vector<8x128xf32>
    %171 = arith.addf %170, %169 : vector<8x128xf32>
    %172 = arith.divf %170, %171 : vector<8x128xf32>
    %173 = vector.extract_strided_slice %166 {offsets = [0, 128], sizes = [8, 128], strides = [1, 1]} : vector<8x512xf32> to vector<8x128xf32>
    %174 = arith.negf %173 : vector<8x128xf32>
    %175 = math.exp %174 : vector<8x128xf32>
    %cst_82 = arith.constant 1.000000e+00 : f32
    %176 = vector.broadcast %cst_82 : f32 to vector<8x128xf32>
    %177 = arith.addf %176, %175 : vector<8x128xf32>
    %178 = arith.divf %176, %177 : vector<8x128xf32>
    %179 = vector.extract_strided_slice %166 {offsets = [0, 256], sizes = [8, 128], strides = [1, 1]} : vector<8x512xf32> to vector<8x128xf32>
    %180 = math.tanh %179 : vector<8x128xf32>
    %181 = vector.extract_strided_slice %166 {offsets = [0, 384], sizes = [8, 128], strides = [1, 1]} : vector<8x512xf32> to vector<8x128xf32>
    %182 = arith.negf %181 : vector<8x128xf32>
    %183 = math.exp %182 : vector<8x128xf32>
    %cst_83 = arith.constant 1.000000e+00 : f32
    %184 = vector.broadcast %cst_83 : f32 to vector<8x128xf32>
    %185 = arith.addf %184, %183 : vector<8x128xf32>
    %186 = arith.divf %184, %185 : vector<8x128xf32>
    %187 = arith.mulf %178, %160 : vector<8x128xf32>
    %188 = arith.mulf %172, %180 : vector<8x128xf32>
    %189 = arith.addf %187, %188 : vector<8x128xf32>
    %190 = math.tanh %189 : vector<8x128xf32>
    %191 = arith.mulf %186, %190 : vector<8x128xf32>
    %c0_84 = arith.constant 0 : index
    %c0_85 = arith.constant 0 : index
    %192 = vector.load %arg7[%c0_84, %c0_85] : memref<8x128xf32, #tpu.memory_space<vmem>>, vector<8x128xf32>
    tpu.vector_store %arg7[%c0_84, %c0_85], %191 {strides = array<i32>} : memref<8x128xf32, #tpu.memory_space<vmem>>, vector<8x128xf32>,
    %c0_86 = arith.constant 0 : index
    %c0_87 = arith.constant 0 : index
    %193 = vector.load %arg8[%c0_86, %c0_87] : memref<8x128xf32, #tpu.memory_space<vmem>>, vector<8x128xf32>
    tpu.vector_store %arg8[%c0_86, %c0_87], %189 {strides = array<i32>} : memref<8x128xf32, #tpu.memory_space<vmem>>, vector<8x128xf32>,
    %194 = arith.index_cast %c4_i32 : i32 to index
    %c0_88 = arith.constant 0 : index
    %c0_89 = arith.constant 0 : index
    %195 = vector.load %arg4[%194, %c0_88, %c0_89] : memref<8x8x128xf32, #tpu.memory_space<vmem>>, vector<1x8x128xf32>
    %196 = vector.shape_cast %195 : vector<1x8x128xf32> to vector<8x128xf32>
    %197 = vector.shape_cast %191 : vector<8x128xf32> to vector<1x8x128xf32>
    tpu.vector_store %arg4[%194, %c0_88, %c0_89], %197 {strides = array<i32>} : memref<8x8x128xf32, #tpu.memory_space<vmem>>, vector<1x8x128xf32>,
    %c5_i32 = arith.constant 5 : i32
    %c0_90 = arith.constant 0 : index
    %c0_91 = arith.constant 0 : index
    %198 = vector.load %arg7[%c0_90, %c0_91] : memref<8x128xf32, #tpu.memory_space<vmem>>, vector<8x128xf32>
    %c0_92 = arith.constant 0 : index
    %c0_93 = arith.constant 0 : index
    %199 = vector.load %arg8[%c0_92, %c0_93] : memref<8x128xf32, #tpu.memory_space<vmem>>, vector<8x128xf32>
    %200 = arith.index_cast %c5_i32 : i32 to index
    %c0_94 = arith.constant 0 : index
    %c0_95 = arith.constant 0 : index
    %201 = vector.load %arg2[%200, %c0_94, %c0_95] : memref<8x8x512xf32, #tpu.memory_space<vmem>>, vector<1x8x512xf32>
    %202 = vector.shape_cast %201 : vector<1x8x512xf32> to vector<8x512xf32>
    %c0_96 = arith.constant 0 : index
    %c0_97 = arith.constant 0 : index
    %203 = vector.load %arg3[%c0_96, %c0_97] : memref<128x512xf32, #tpu.memory_space<vmem>>, vector<128x512xf32>
    %cst_98 = arith.constant dense<0.000000e+00> : vector<8x512xf32>
    %204 = tpu.matmul %198, %203, %cst_98 {dimension_numbers = #tpu.dot_dimension_numbers<[1], [0], [0], [1], [0, 0, 1, 1], [], []>} : vector<8x128xf32>, vector<128x512xf32>, vector<8x512xf32> -> vector<8x512xf32>
    %205 = arith.addf %202, %204 : vector<8x512xf32>
    %206 = vector.extract_strided_slice %205 {offsets = [0, 0], sizes = [8, 128], strides = [1, 1]} : vector<8x512xf32> to vector<8x128xf32>
    %207 = arith.negf %206 : vector<8x128xf32>
    %208 = math.exp %207 : vector<8x128xf32>
    %cst_99 = arith.constant 1.000000e+00 : f32
    %209 = vector.broadcast %cst_99 : f32 to vector<8x128xf32>
    %210 = arith.addf %209, %208 : vector<8x128xf32>
    %211 = arith.divf %209, %210 : vector<8x128xf32>
    %212 = vector.extract_strided_slice %205 {offsets = [0, 128], sizes = [8, 128], strides = [1, 1]} : vector<8x512xf32> to vector<8x128xf32>
    %213 = arith.negf %212 : vector<8x128xf32>
    %214 = math.exp %213 : vector<8x128xf32>
    %cst_100 = arith.constant 1.000000e+00 : f32
    %215 = vector.broadcast %cst_100 : f32 to vector<8x128xf32>
    %216 = arith.addf %215, %214 : vector<8x128xf32>
    %217 = arith.divf %215, %216 : vector<8x128xf32>
    %218 = vector.extract_strided_slice %205 {offsets = [0, 256], sizes = [8, 128], strides = [1, 1]} : vector<8x512xf32> to vector<8x128xf32>
    %219 = math.tanh %218 : vector<8x128xf32>
    %220 = vector.extract_strided_slice %205 {offsets = [0, 384], sizes = [8, 128], strides = [1, 1]} : vector<8x512xf32> to vector<8x128xf32>
    %221 = arith.negf %220 : vector<8x128xf32>
    %222 = math.exp %221 : vector<8x128xf32>
    %cst_101 = arith.constant 1.000000e+00 : f32
    %223 = vector.broadcast %cst_101 : f32 to vector<8x128xf32>
    %224 = arith.addf %223, %222 : vector<8x128xf32>
    %225 = arith.divf %223, %224 : vector<8x128xf32>
    %226 = arith.mulf %217, %199 : vector<8x128xf32>
    %227 = arith.mulf %211, %219 : vector<8x128xf32>
    %228 = arith.addf %226, %227 : vector<8x128xf32>
    %229 = math.tanh %228 : vector<8x128xf32>
    %230 = arith.mulf %225, %229 : vector<8x128xf32>
    %c0_102 = arith.constant 0 : index
    %c0_103 = arith.constant 0 : index
    %231 = vector.load %arg7[%c0_102, %c0_103] : memref<8x128xf32, #tpu.memory_space<vmem>>, vector<8x128xf32>
    tpu.vector_store %arg7[%c0_102, %c0_103], %230 {strides = array<i32>} : memref<8x128xf32, #tpu.memory_space<vmem>>, vector<8x128xf32>,
    %c0_104 = arith.constant 0 : index
    %c0_105 = arith.constant 0 : index
    %232 = vector.load %arg8[%c0_104, %c0_105] : memref<8x128xf32, #tpu.memory_space<vmem>>, vector<8x128xf32>
    tpu.vector_store %arg8[%c0_104, %c0_105], %228 {strides = array<i32>} : memref<8x128xf32, #tpu.memory_space<vmem>>, vector<8x128xf32>,
    %233 = arith.index_cast %c5_i32 : i32 to index
    %c0_106 = arith.constant 0 : index
    %c0_107 = arith.constant 0 : index
    %234 = vector.load %arg4[%233, %c0_106, %c0_107] : memref<8x8x128xf32, #tpu.memory_space<vmem>>, vector<1x8x128xf32>
    %235 = vector.shape_cast %234 : vector<1x8x128xf32> to vector<8x128xf32>
    %236 = vector.shape_cast %230 : vector<8x128xf32> to vector<1x8x128xf32>
    tpu.vector_store %arg4[%233, %c0_106, %c0_107], %236 {strides = array<i32>} : memref<8x8x128xf32, #tpu.memory_space<vmem>>, vector<1x8x128xf32>,
    %c6_i32 = arith.constant 6 : i32
    %c0_108 = arith.constant 0 : index
    %c0_109 = arith.constant 0 : index
    %237 = vector.load %arg7[%c0_108, %c0_109] : memref<8x128xf32, #tpu.memory_space<vmem>>, vector<8x128xf32>
    %c0_110 = arith.constant 0 : index
    %c0_111 = arith.constant 0 : index
    %238 = vector.load %arg8[%c0_110, %c0_111] : memref<8x128xf32, #tpu.memory_space<vmem>>, vector<8x128xf32>
    %239 = arith.index_cast %c6_i32 : i32 to index
    %c0_112 = arith.constant 0 : index
    %c0_113 = arith.constant 0 : index
    %240 = vector.load %arg2[%239, %c0_112, %c0_113] : memref<8x8x512xf32, #tpu.memory_space<vmem>>, vector<1x8x512xf32>
    %241 = vector.shape_cast %240 : vector<1x8x512xf32> to vector<8x512xf32>
    %c0_114 = arith.constant 0 : index
    %c0_115 = arith.constant 0 : index
    %242 = vector.load %arg3[%c0_114, %c0_115] : memref<128x512xf32, #tpu.memory_space<vmem>>, vector<128x512xf32>
    %cst_116 = arith.constant dense<0.000000e+00> : vector<8x512xf32>
    %243 = tpu.matmul %237, %242, %cst_116 {dimension_numbers = #tpu.dot_dimension_numbers<[1], [0], [0], [1], [0, 0, 1, 1], [], []>} : vector<8x128xf32>, vector<128x512xf32>, vector<8x512xf32> -> vector<8x512xf32>
    %244 = arith.addf %241, %243 : vector<8x512xf32>
    %245 = vector.extract_strided_slice %244 {offsets = [0, 0], sizes = [8, 128], strides = [1, 1]} : vector<8x512xf32> to vector<8x128xf32>
    %246 = arith.negf %245 : vector<8x128xf32>
    %247 = math.exp %246 : vector<8x128xf32>
    %cst_117 = arith.constant 1.000000e+00 : f32
    %248 = vector.broadcast %cst_117 : f32 to vector<8x128xf32>
    %249 = arith.addf %248, %247 : vector<8x128xf32>
    %250 = arith.divf %248, %249 : vector<8x128xf32>
    %251 = vector.extract_strided_slice %244 {offsets = [0, 128], sizes = [8, 128], strides = [1, 1]} : vector<8x512xf32> to vector<8x128xf32>
    %252 = arith.negf %251 : vector<8x128xf32>
    %253 = math.exp %252 : vector<8x128xf32>
    %cst_118 = arith.constant 1.000000e+00 : f32
    %254 = vector.broadcast %cst_118 : f32 to vector<8x128xf32>
    %255 = arith.addf %254, %253 : vector<8x128xf32>
    %256 = arith.divf %254, %255 : vector<8x128xf32>
    %257 = vector.extract_strided_slice %244 {offsets = [0, 256], sizes = [8, 128], strides = [1, 1]} : vector<8x512xf32> to vector<8x128xf32>
    %258 = math.tanh %257 : vector<8x128xf32>
    %259 = vector.extract_strided_slice %244 {offsets = [0, 384], sizes = [8, 128], strides = [1, 1]} : vector<8x512xf32> to vector<8x128xf32>
    %260 = arith.negf %259 : vector<8x128xf32>
    %261 = math.exp %260 : vector<8x128xf32>
    %cst_119 = arith.constant 1.000000e+00 : f32
    %262 = vector.broadcast %cst_119 : f32 to vector<8x128xf32>
    %263 = arith.addf %262, %261 : vector<8x128xf32>
    %264 = arith.divf %262, %263 : vector<8x128xf32>
    %265 = arith.mulf %256, %238 : vector<8x128xf32>
    %266 = arith.mulf %250, %258 : vector<8x128xf32>
    %267 = arith.addf %265, %266 : vector<8x128xf32>
    %268 = math.tanh %267 : vector<8x128xf32>
    %269 = arith.mulf %264, %268 : vector<8x128xf32>
    %c0_120 = arith.constant 0 : index
    %c0_121 = arith.constant 0 : index
    %270 = vector.load %arg7[%c0_120, %c0_121] : memref<8x128xf32, #tpu.memory_space<vmem>>, vector<8x128xf32>
    tpu.vector_store %arg7[%c0_120, %c0_121], %269 {strides = array<i32>} : memref<8x128xf32, #tpu.memory_space<vmem>>, vector<8x128xf32>,
    %c0_122 = arith.constant 0 : index
    %c0_123 = arith.constant 0 : index
    %271 = vector.load %arg8[%c0_122, %c0_123] : memref<8x128xf32, #tpu.memory_space<vmem>>, vector<8x128xf32>
    tpu.vector_store %arg8[%c0_122, %c0_123], %267 {strides = array<i32>} : memref<8x128xf32, #tpu.memory_space<vmem>>, vector<8x128xf32>,
    %272 = arith.index_cast %c6_i32 : i32 to index
    %c0_124 = arith.constant 0 : index
    %c0_125 = arith.constant 0 : index
    %273 = vector.load %arg4[%272, %c0_124, %c0_125] : memref<8x8x128xf32, #tpu.memory_space<vmem>>, vector<1x8x128xf32>
    %274 = vector.shape_cast %273 : vector<1x8x128xf32> to vector<8x128xf32>
    %275 = vector.shape_cast %269 : vector<8x128xf32> to vector<1x8x128xf32>
    tpu.vector_store %arg4[%272, %c0_124, %c0_125], %275 {strides = array<i32>} : memref<8x8x128xf32, #tpu.memory_space<vmem>>, vector<1x8x128xf32>,
    %c7_i32 = arith.constant 7 : i32
    %c0_126 = arith.constant 0 : index
    %c0_127 = arith.constant 0 : index
    %276 = vector.load %arg7[%c0_126, %c0_127] : memref<8x128xf32, #tpu.memory_space<vmem>>, vector<8x128xf32>
    %c0_128 = arith.constant 0 : index
    %c0_129 = arith.constant 0 : index
    %277 = vector.load %arg8[%c0_128, %c0_129] : memref<8x128xf32, #tpu.memory_space<vmem>>, vector<8x128xf32>
    %278 = arith.index_cast %c7_i32 : i32 to index
    %c0_130 = arith.constant 0 : index
    %c0_131 = arith.constant 0 : index
    %279 = vector.load %arg2[%278, %c0_130, %c0_131] : memref<8x8x512xf32, #tpu.memory_space<vmem>>, vector<1x8x512xf32>
    %280 = vector.shape_cast %279 : vector<1x8x512xf32> to vector<8x512xf32>
    %c0_132 = arith.constant 0 : index
    %c0_133 = arith.constant 0 : index
    %281 = vector.load %arg3[%c0_132, %c0_133] : memref<128x512xf32, #tpu.memory_space<vmem>>, vector<128x512xf32>
    %cst_134 = arith.constant dense<0.000000e+00> : vector<8x512xf32>
    %282 = tpu.matmul %276, %281, %cst_134 {dimension_numbers = #tpu.dot_dimension_numbers<[1], [0], [0], [1], [0, 0, 1, 1], [], []>} : vector<8x128xf32>, vector<128x512xf32>, vector<8x512xf32> -> vector<8x512xf32>
    %283 = arith.addf %280, %282 : vector<8x512xf32>
    %284 = vector.extract_strided_slice %283 {offsets = [0, 0], sizes = [8, 128], strides = [1, 1]} : vector<8x512xf32> to vector<8x128xf32>
    %285 = arith.negf %284 : vector<8x128xf32>
    %286 = math.exp %285 : vector<8x128xf32>
    %cst_135 = arith.constant 1.000000e+00 : f32
    %287 = vector.broadcast %cst_135 : f32 to vector<8x128xf32>
    %288 = arith.addf %287, %286 : vector<8x128xf32>
    %289 = arith.divf %287, %288 : vector<8x128xf32>
    %290 = vector.extract_strided_slice %283 {offsets = [0, 128], sizes = [8, 128], strides = [1, 1]} : vector<8x512xf32> to vector<8x128xf32>
    %291 = arith.negf %290 : vector<8x128xf32>
    %292 = math.exp %291 : vector<8x128xf32>
    %cst_136 = arith.constant 1.000000e+00 : f32
    %293 = vector.broadcast %cst_136 : f32 to vector<8x128xf32>
    %294 = arith.addf %293, %292 : vector<8x128xf32>
    %295 = arith.divf %293, %294 : vector<8x128xf32>
    %296 = vector.extract_strided_slice %283 {offsets = [0, 256], sizes = [8, 128], strides = [1, 1]} : vector<8x512xf32> to vector<8x128xf32>
    %297 = math.tanh %296 : vector<8x128xf32>
    %298 = vector.extract_strided_slice %283 {offsets = [0, 384], sizes = [8, 128], strides = [1, 1]} : vector<8x512xf32> to vector<8x128xf32>
    %299 = arith.negf %298 : vector<8x128xf32>
    %300 = math.exp %299 : vector<8x128xf32>
    %cst_137 = arith.constant 1.000000e+00 : f32
    %301 = vector.broadcast %cst_137 : f32 to vector<8x128xf32>
    %302 = arith.addf %301, %300 : vector<8x128xf32>
    %303 = arith.divf %301, %302 : vector<8x128xf32>
    %304 = arith.mulf %295, %277 : vector<8x128xf32>
    %305 = arith.mulf %289, %297 : vector<8x128xf32>
    %306 = arith.addf %304, %305 : vector<8x128xf32>
    %307 = math.tanh %306 : vector<8x128xf32>
    %308 = arith.mulf %303, %307 : vector<8x128xf32>
    %c0_138 = arith.constant 0 : index
    %c0_139 = arith.constant 0 : index
    %309 = vector.load %arg7[%c0_138, %c0_139] : memref<8x128xf32, #tpu.memory_space<vmem>>, vector<8x128xf32>
    tpu.vector_store %arg7[%c0_138, %c0_139], %308 {strides = array<i32>} : memref<8x128xf32, #tpu.memory_space<vmem>>, vector<8x128xf32>,
    %c0_140 = arith.constant 0 : index
    %c0_141 = arith.constant 0 : index
    %310 = vector.load %arg8[%c0_140, %c0_141] : memref<8x128xf32, #tpu.memory_space<vmem>>, vector<8x128xf32>
    tpu.vector_store %arg8[%c0_140, %c0_141], %306 {strides = array<i32>} : memref<8x128xf32, #tpu.memory_space<vmem>>, vector<8x128xf32>,
    %311 = arith.index_cast %c7_i32 : i32 to index
    %c0_142 = arith.constant 0 : index
    %c0_143 = arith.constant 0 : index
    %312 = vector.load %arg4[%311, %c0_142, %c0_143] : memref<8x8x128xf32, #tpu.memory_space<vmem>>, vector<1x8x128xf32>
    %313 = vector.shape_cast %312 : vector<1x8x128xf32> to vector<8x128xf32>
    %314 = vector.shape_cast %308 : vector<8x128xf32> to vector<1x8x128xf32>
    tpu.vector_store %arg4[%311, %c0_142, %c0_143], %314 {strides = array<i32>} : memref<8x8x128xf32, #tpu.memory_space<vmem>>, vector<1x8x128xf32>,
    %c8_i32 = arith.constant 8 : i32
    %c1_i32_144 = arith.constant 1 : i32
    %315 = arith.cmpi eq, %arg1, %c1_i32_144 : i32
    %316 = arith.extui %315 : i1 to i32
    %c0_i32_145 = arith.constant 0 : i32
    %317 = arith.cmpi ne, %316, %c0_i32_145 : i32
    scf.if %317 {
      %c0_146 = arith.constant 0 : index
      %c0_147 = arith.constant 0 : index
      %318 = vector.load %arg7[%c0_146, %c0_147] : memref<8x128xf32, #tpu.memory_space<vmem>>, vector<8x128xf32>
      %c0_148 = arith.constant 0 : index
      %c0_149 = arith.constant 0 : index
      %319 = vector.load %arg5[%c0_148, %c0_149] : memref<8x128xf32, #tpu.memory_space<vmem>>, vector<8x128xf32>
      tpu.vector_store %arg5[%c0_148, %c0_149], %318 {strides = array<i32>} : memref<8x128xf32, #tpu.memory_space<vmem>>, vector<8x128xf32>,
      %c0_150 = arith.constant 0 : index
      %c0_151 = arith.constant 0 : index
      %320 = vector.load %arg8[%c0_150, %c0_151] : memref<8x128xf32, #tpu.memory_space<vmem>>, vector<8x128xf32>
      %c0_152 = arith.constant 0 : index
      %c0_153 = arith.constant 0 : index
      %321 = vector.load %arg6[%c0_152, %c0_153] : memref<8x128xf32, #tpu.memory_space<vmem>>, vector<8x128xf32>
      tpu.vector_store %arg6[%c0_152, %c0_153], %320 {strides = array<i32>} : memref<8x128xf32, #tpu.memory_space<vmem>>, vector<8x128xf32>,
    } else {
    }
    return
  }
  func.func @transform_0(%arg0: i32, %arg1: i32) -> (i32, i32, i32) {
    %c0_i32 = arith.constant 0 : i32
    %c0_i32_0 = arith.constant 0 : i32
    return %arg1, %arg0, %c0_i32 : i32, i32, i32
  }
  func.func @transform_1(%arg0: i32, %arg1: i32) -> (i32, i32) {
    %c0_i32 = arith.constant 0 : i32
    %c0_i32_0 = arith.constant 0 : i32
    %c0_i32_1 = arith.constant 0 : i32
    return %c0_i32, %c0_i32_0 : i32, i32
  }
  func.func @transform_2(%arg0: i32, %arg1: i32) -> (i32, i32, i32) {
    %c0_i32 = arith.constant 0 : i32
    %c0_i32_0 = arith.constant 0 : i32
    return %arg1, %arg0, %c0_i32 : i32, i32, i32
  }
  func.func @transform_3(%arg0: i32, %arg1: i32) -> (i32, i32) {
    %c0_i32 = arith.constant 0 : i32
    %c0_i32_0 = arith.constant 0 : i32
    return %arg0, %c0_i32 : i32, i32
  }
  func.func @transform_4(%arg0: i32, %arg1: i32) -> (i32, i32) {
    %c0_i32 = arith.constant 0 : i32
    %c0_i32_0 = arith.constant 0 : i32
    return %arg0, %c0_i32 : i32, i32
  }
}

</mosaic_0001>

<bundles_post_ra>
// kernel: encoder_forward.2
= control target key start
LH: loop header
LB: loop body
LE: loop exit
PB: predicated region body
PF: predicated region fallthrough
CT: control target
= control target key end

     0   :  { %s3359_s15 = smov 0   ;;  %s3361_s16 = smov 0   ;;  %s4464_s0 = inlined_call_operand.vmem [shape: f32[16,16,512], index: 0, kind: input, shape index: {}]   ;;  %s4465_s1 = inlined_call_operand.vmem [shape: f32[128,512], index: 1, kind: input, shape index: {}]   ;;  %s4466_s2 = inlined_call_operand.vmem [shape: f32[16,16,128], index: 2, kind: output, shape index: {0}]   ;;  %s4467_s3 = inlined_call_operand.vmem [shape: f32[16,128], index: 3, kind: output, shape index: {1}]   ;;  %s4468_s4 = inlined_call_operand.vmem [shape: f32[16,128], index: 4, kind: output, shape index: {2}]  }
   0x1   :  { %s3363_s17 = smov 0   ;;  %s3365_s18 = smov 0  }
   0x2   :  { %s3367_s19 = smov 0   ;;  %s3369_s20 = smov 0  }
   0x3   :  { %s3371_s21 = smov 0  }
   0x4 LB: > { %s24_s22 = sadd.s32 1, %s3322_s19  ;;  %s27_s23 = sadd.s32 1, %s3326_s20  ;;  %s3330_s21 = sphi %s3371_s21, %s15_s21   ;;  %s3326_s20 = sphi %s3369_s20, %s4475_s20   ;;  %s3322_s19 = sphi %s3367_s19, %s4474_s19   ;;  %s3318_s18 = sphi %s3365_s18, %s4473_s18   ;;  %s3314_s17 = sphi %s3363_s17, %s4472_s17   ;;  %s3310_s16 = sphi %s3361_s16, %s4471_s16   ;;  %s3306_s15 = sphi %s3359_s15, %s4470_s15  }
   0x5   : > { %p25_p0 = scmp.ge.s32.totalorder %s24_s22, 2  ;;  %s2495_s24 = sadd.s32 4294967295, %s3330_s21  }
   0x6   : > { %p43_p1 = scmp.ne.s32.totalorder %s3310_s16, %s3306_s15  ;;  %p44_p2 = scmp.eq.s32.totalorder %s3330_s21, 0 }
   0x7   : > { %s4477_s22 = smov (%p25_p0, %s24_s22), 0  ;;  %s4479_s23 = smov (!%p25_p0, %s27_s23), %s3326_s20 }
   0x8   : > { %p29_p3 = scmp.ge.s32.totalorder %s4479_s23, 2  ;;  %p96_p4 = scmp.eq.s32.totalorder %s2495_s24, 3 }
   0x9   : > { %s31_s25 = ssub.s32 %s3322_s19, %s4477_s22  ;;  %p45_p5 = por %p44_p2, %p43_p1 }
   0xa   : > { %s4481_s23 = smov (%p29_p3, %s4479_s23), 0  ;;  %p3407_p6 = por %p96_p4, %p43_p1 }
   0xb   : > { %s32_s27 = ssub.s32 %s3326_s20, %s4481_s23  ;;  %s36_s29 = sadd.s32 1, %s3310_s16 }
   0xc   : > { %s33_s28 = sor.u32 %s32_s27, %s31_s25  ;;  %p2498_p8 = scmp.ge.s32.totalorder %s3330_s21, 4 }
   0xd   : > { %p34_p7 = scmp.eq.s32.totalorder %s33_s28, 0 }
   0xe   : > { %173 = sbr.rel (%p2498_p8) target bundleno = 44 (0x2c), region = 20 }
   0xf   : > { %s3415_s30 = scalar_select %p34_p7, %s3310_s16, %s36_s29  }
  0x15   : > { %176 = sbr.rel (!%p45_p5) target bundleno = 44 (0x2c), region = 24  ;;  %s178_s5 = sand.u32 (%p45_p5), 1, %s3310_s16  }
  0x16   : > { %s2501_s6 = sshll.u32 (%p45_p5), %s3326_s20, 2  ;;  %s2499_s7 = sshll.u32 (%p45_p5), %s178_s5, 8 }
  0x17   : > { %s2576_s8 = sshll.u32 (%p45_p5), %s3322_s19, 6  ;;  %s3429_s14 = scalar_lea.vmem (%p45_p5), [#allocation4], %s2499_s7 }
  0x18   : > { %s184_s9 = sadd.s32 (%p45_p5), %s2576_s8, %s2501_s6 }
  0x19   : > { %s2503_s10 = sshll.u32 (%p45_p5), %s184_s9, 3 }
  0x1a   : > { %s3424_s13 = scalar_lea.vmem (%p45_p5), %s4464_s0, %s2503_s10 }
  0x1b   : > { %v199_v0 = vld [vmem:[%s3424_s13] sm:$0xff] (%p45_p5)  ;;  %v201_v1 = vld [vmem:[%s3424_s13 + $0x8] sm:$0xff] (%p45_p5)  ;;  %v203_v2 = vld [vmem:[%s3424_s13 + $0x10] sm:$0xff] (%p45_p5) }
  0x1c   : > { %200 = vst [vmem:[%s3429_s14] sm:$0xff] %v199_v0  ;;  %202 = vst [vmem:[%s3429_s14 + $0x8] sm:$0xff] %v201_v1  ;;  %v205_v3 = vld [vmem:[%s3424_s13 + $0x18] sm:$0xff]  ;;  %v207_v4 = vld [vmem:[%s3424_s13 + $0x40] sm:$0xff] }
  0x1d   : > { %204 = vst [vmem:[%s3429_s14 + $0x10] sm:$0xff] %v203_v2  ;;  %v209_v5 = vld [vmem:[%s3424_s13 + $0x48] sm:$0xff]  ;;  %206 = vst [vmem:[%s3429_s14 + $0x18] sm:$0xff] %v205_v3  ;;  %v211_v6 = vld [vmem:[%s3424_s13 + $0x50] sm:$0xff] }
  0x1e   : > { %208 = vst [vmem:[%s3429_s14 + $0x20] sm:$0xff] %v207_v4  ;;  %210 = vst [vmem:[%s3429_s14 + $0x28] sm:$0xff] %v209_v5  ;;  %v213_v7 = vld [vmem:[%s3424_s13 + $0x58] sm:$0xff]  ;;  %v215_v8 = vld [vmem:[%s3424_s13 + $0x80] sm:$0xff] }
  0x1f   : > { %212 = vst [vmem:[%s3429_s14 + $0x30] sm:$0xff] %v211_v6  ;;  %214 = vst [vmem:[%s3429_s14 + $0x38] sm:$0xff] %v213_v7  ;;  %v217_v9 = vld [vmem:[%s3424_s13 + $0x88] sm:$0xff]  ;;  %v219_v10 = vld [vmem:[%s3424_s13 + $0x90] sm:$0xff] }
  0x20   : > { %216 = vst [vmem:[%s3429_s14 + $0x40] sm:$0xff] %v215_v8  ;;  %v221_v11 = vld [vmem:[%s3424_s13 + $0x98] sm:$0xff]  ;;  %218 = vst [vmem:[%s3429_s14 + $0x48] sm:$0xff] %v217_v9  ;;  %v223_v12 = vld [vmem:[%s3424_s13 + $0xc0] sm:$0xff] }
  0x21   : > { %220 = vst [vmem:[%s3429_s14 + $0x50] sm:$0xff] %v219_v10  ;;  %222 = vst [vmem:[%s3429_s14 + $0x58] sm:$0xff] %v221_v11  ;;  %v225_v13 = vld [vmem:[%s3424_s13 + $0xc8] sm:$0xff]  ;;  %v227_v14 = vld [vmem:[%s3424_s13 + $0xd0] sm:$0xff] }
  0x22   : > { %224 = vst [vmem:[%s3429_s14 + $0x60] sm:$0xff] %v223_v12  ;;  %226 = vst [vmem:[%s3429_s14 + $0x68] sm:$0xff] %v225_v13  ;;  %v229_v15 = vld [vmem:[%s3424_s13 + $0xd8] sm:$0xff]  ;;  %v231_v16 = vld [vmem:[%s3424_s13 + $0x100] sm:$0xff] }
  0x23   : > { %228 = vst [vmem:[%s3429_s14 + $0x70] sm:$0xff] %v227_v14  ;;  %v233_v17 = vld [vmem:[%s3424_s13 + $0x108] sm:$0xff]  ;;  %230 = vst [vmem:[%s3429_s14 + $0x78] sm:$0xff] %v229_v15  ;;  %v235_v18 = vld [vmem:[%s3424_s13 + $0x110] sm:$0xff] }
  0x24   : > { %232 = vst [vmem:[%s3429_s14 + $0x80] sm:$0xff] %v231_v16  ;;  %234 = vst [vmem:[%s3429_s14 + $0x88] sm:$0xff] %v233_v17  ;;  %v237_v19 = vld [vmem:[%s3424_s13 + $0x118] sm:$0xff]  ;;  %v239_v20 = vld [vmem:[%s3424_s13 + $0x140] sm:$0xff] }
  0x25   : > { %236 = vst [vmem:[%s3429_s14 + $0x90] sm:$0xff] %v235_v18  ;;  %238 = vst [vmem:[%s3429_s14 + $0x98] sm:$0xff] %v237_v19  ;;  %v241_v21 = vld [vmem:[%s3424_s13 + $0x148] sm:$0xff]  ;;  %v243_v22 = vld [vmem:[%s3424_s13 + $0x150] sm:$0xff] }
  0x26   : > { %240 = vst [vmem:[%s3429_s14 + $0xa0] sm:$0xff] %v239_v20  ;;  %v245_v23 = vld [vmem:[%s3424_s13 + $0x158] sm:$0xff]  ;;  %242 = vst [vmem:[%s3429_s14 + $0xa8] sm:$0xff] %v241_v21  ;;  %v247_v24 = vld [vmem:[%s3424_s13 + $0x180] sm:$0xff] }
  0x27   : > { %244 = vst [vmem:[%s3429_s14 + $0xb0] sm:$0xff] %v243_v22  ;;  %246 = vst [vmem:[%s3429_s14 + $0xb8] sm:$0xff] %v245_v23  ;;  %v249_v25 = vld [vmem:[%s3424_s13 + $0x188] sm:$0xff]  ;;  %v251_v26 = vld [vmem:[%s3424_s13 + $0x190] sm:$0xff] }
  0x28   : > { %248 = vst [vmem:[%s3429_s14 + $0xc0] sm:$0xff] %v247_v24  ;;  %250 = vst [vmem:[%s3429_s14 + $0xc8] sm:$0xff] %v249_v25  ;;  %v253_v27 = vld [vmem:[%s3424_s13 + $0x198] sm:$0xff]  ;;  %v255_v28 = vld [vmem:[%s3424_s13 + $0x1c0] sm:$0xff] }
  0x29   : > { %252 = vst [vmem:[%s3429_s14 + $0xd0] sm:$0xff] %v251_v26  ;;  %v257_v29 = vld [vmem:[%s3424_s13 + $0x1c8] sm:$0xff]  ;;  %254 = vst [vmem:[%s3429_s14 + $0xd8] sm:$0xff] %v253_v27  ;;  %v259_v30 = vld [vmem:[%s3424_s13 + $0x1d0] sm:$0xff] }
  0x2a   : > { %256 = vst [vmem:[%s3429_s14 + $0xe0] sm:$0xff] %v255_v28  ;;  %258 = vst [vmem:[%s3429_s14 + $0xe8] sm:$0xff] %v257_v29  ;;  %v261_v31 = vld [vmem:[%s3424_s13 + $0x1d8] sm:$0xff] }
  0x2b   : > { %260 = vst [vmem:[%s3429_s14 + $0xf0] sm:$0xff] %v259_v30  ;;  %262 = vst [vmem:[%s3429_s14 + $0xf8] sm:$0xff] %v261_v31 }
  0x2c PF: > { %p2504_p9 = scmp.ge.s32.totalorder %s3330_s21, 1  ;;  %p267_p10 = scmp.lt.s32.totalorder %s3330_s21, 5 }
  0x2e   : > { %p268_p11 = pnand %p2504_p9, %p267_p10 }
  0x2f   : > { %s274_s24 = sand.u32 (!%p268_p11), 1, %s3306_s15   ;;  %p308_p12 = scmp.lt.s32.totalorder (!%p268_p11), %s3318_s18, 1 }
  0x30   : > { %271 = sbr.rel (%p268_p11) target bundleno = 2180 (0x884), region = 47  ;;  %s2505_s25 = sshll.u32 (!%p268_p11), %s274_s24, 8 }
  0x31   : > { %s2506_s27 = sshll.u32 (!%p268_p11), %s274_s24, 6  ;;  %s3507_s11 = scalar_lea.vmem (!%p268_p11), [#allocation4], %s2505_s25 }
  0x32   : > { %s3509_s12 = scalar_lea.vmem (!%p268_p11), [#allocation5], %s2506_s27  ;;  %p2509_p13 = scmp.ne.s32.totalorder (!%p268_p11), %s3314_s17, 0 }
  0x37   : > { %s309_s28 = scalar_select %p308_p12, %s3318_s18, 1 }
  0x38   : > { %319 = sbr.rel (%p2509_p13) target bundleno = 63 (0x3f), region = 55  ;;  %v3332_v32 = vmov (!%p2509_p13), 0.0  }
  0x39   : > { %s2507_s29 = sshll.u32 %s309_s28, 3  ;;  %320 = vst [vmem:[#allocation2] sm:$0xff] (!%p2509_p13), %v3332_v32  ;;  %321 = vst [vmem:[#allocation3] sm:$0xff] (!%p2509_p13), %v3332_v32 }
  0x3a   : > { %s3500_s7 = scalar_lea.vmem %s4467_s3, %s2507_s29  ;;  %s3505_s10 = scalar_lea.vmem %s4468_s4, %s2507_s29 }
  0x3f PF: > { %v329_v33 = vld [vmem:[%s4465_s1 + $0x8] sm:$0xff]  ;;  %v328_v35 = vld [vmem:[%s4465_s1] sm:$0xff]  ;;  %v3333_v40 = vmov 0.0   ;;  %v331_v52 = vld [vmem:[%s4465_s1 + $0x18] sm:$0xff]  ;;  %p2569_p0 = scmp.ne.s32.totalorder %s3314_s17, 1 }
  0x40   : > { %v333_v34 = vld [vmem:[%s4465_s1 + $0x28] sm:$0xff]  ;;  %v332_v37 = vld [vmem:[%s4465_s1 + $0x20] sm:$0xff]  ;;  %456 = vmatprep.mubr.f32.mxu0 %v3333_v40  ;;  %527 = vmatprep.mubr.f32.mxu1 %v3333_v40  ;;  %v335_v53 = vld [vmem:[%s4465_s1 + $0x38] sm:$0xff] }
  0x41   : > { %v3521_v36 = vpack.c.bf16 %v333_v34, %v329_v33  ;;  %v337_v38 = vld [vmem:[%s4465_s1 + $0x48] sm:$0xff]  ;;  %v3534_v41 = vpack.c.bf16 %v332_v37, %v328_v35  ;;  %v336_v43 = vld [vmem:[%s4465_s1 + $0x40] sm:$0xff]  ;;  %v3575_v55 = vpack.c.bf16 %v335_v53, %v331_v52  ;;  %v330_v56 = vld [vmem:[%s4465_s1 + $0x10] sm:$0xff] }
  0x42   : > { %v341_v39 = vld [vmem:[%s4465_s1 + $0x68] sm:$0xff]  ;;  %v340_v44 = vld [vmem:[%s4465_s1 + $0x60] sm:$0xff]  ;;  %v334_v57 = vld [vmem:[%s4465_s1 + $0x30] sm:$0xff] }
  0x43   : > { %v3536_v42 = vpack.c.bf16 %v341_v39, %v337_v38  ;;  %v345_v45 = vld [vmem:[%s4465_s1 + $0x88] sm:$0xff]  ;;  %2579 = vmatprep.subr.bf16.mxu0 %v3521_v36  ;;  %v3552_v47 = vpack.c.bf16 %v340_v44, %v336_v43  ;;  %v344_v48 = vld [vmem:[%s4465_s1 + $0x80] sm:$0xff]  ;;  %v3583_v58 = vpack.c.bf16 %v334_v57, %v330_v56  ;;  %2611 = vmatprep.subr.bf16.mxu1 %v3575_v55  ;;  %v339_v60 = vld [vmem:[%s4465_s1 + $0x58] sm:$0xff] }
  0x44   : > { %v349_v46 = vld [vmem:[%s4465_s1 + $0xa8] sm:$0xff]  ;;  %2581 = vmatpush1.bf16.msra.mxu0 %v3534_v41  ;;  %v348_v49 = vld [vmem:[%s4465_s1 + $0xa0] sm:$0xff]  ;;  %v343_v61 = vld [vmem:[%s4465_s1 + $0x78] sm:$0xff] }
  0x45   : > { %2583 = vmatprep.subr.bf16.mxu0 %v3536_v42  ;;  %v3561_v50 = vpack.c.bf16 %v349_v46, %v345_v45  ;;  %v353_v51 = vld [vmem:[%s4465_s1 + $0xc8] sm:$0xff]  ;;  %v3586_v59 = vpack.c.bf16 %v348_v49, %v344_v48  ;;  %v338_v62 = vld [vmem:[%s4465_s1 + $0x50] sm:$0xff]  ;;  %v352_v0 = vld [vmem:[%s4465_s1 + $0xc0] sm:$0xff]  ;;  %2613 = vmatpush1.bf16.msra.mxu1 %v3583_v58  ;;  %v3608_v2 = vpack.c.bf16 %v343_v61, %v339_v60 }
  0x46   : > { %v357_v54 = vld [vmem:[%s4465_s1 + $0xe8] sm:$0xff]  ;;  %v356_v1 = vld [vmem:[%s4465_s1 + $0xe0] sm:$0xff]  ;;  %v342_v3 = vld [vmem:[%s4465_s1 + $0x70] sm:$0xff] }
  0x47   : > { %v3599_v63 = vpack.c.bf16 %v357_v54, %v353_v51  ;;  %v361_v4 = vld [vmem:[%s4465_s1 + $0x108] sm:$0xff]  ;;  %v3619_v6 = vpack.c.bf16 %v342_v3, %v338_v62  ;;  %v347_v7 = vld [vmem:[%s4465_s1 + $0x98] sm:$0xff]  ;;  %2615 = vmatprep.subr.bf16.mxu1 %v3608_v2  ;;  %v346_v9 = vld [vmem:[%s4465_s1 + $0x90] sm:$0xff]  ;;  %v3635_v11 = vpack.c.bf16 %v356_v1, %v352_v0 }
  0x48   : > { %2585 = vmatpush1.bf16.msra.mxu0 %v3552_v47  ;;  %v365_v5 = vld [vmem:[%s4465_s1 + $0x128] sm:$0xff]  ;;  %v351_v8 = vld [vmem:[%s4465_s1 + $0xb8] sm:$0xff]  ;;  %v350_v10 = vld [vmem:[%s4465_s1 + $0xb0] sm:$0xff] }
  0x49   : > { %2587 = vmatprep.subr.bf16.mxu0 %v3561_v50  ;;  %v360_v12 = vld [vmem:[%s4465_s1 + $0x100] sm:$0xff]  ;;  %v3643_v14 = vpack.c.bf16 %v351_v8, %v347_v7  ;;  %v3646_v15 = vpack.c.bf16 %v365_v5, %v361_v4  ;;  %2617 = vmatpush1.bf16.msra.mxu1 %v3619_v6  ;;  %v369_v16 = vld [vmem:[%s4465_s1 + $0x148] sm:$0xff]  ;;  %v3652_v17 = vpack.c.bf16 %v350_v10, %v346_v9  ;;  %v355_v18 = vld [vmem:[%s4465_s1 + $0xd8] sm:$0xff] }
  0x4a   : > { %v364_v13 = vld [vmem:[%s4465_s1 + $0x120] sm:$0xff]  ;;  %v359_v19 = vld [vmem:[%s4465_s1 + $0xf8] sm:$0xff]  ;;  %v373_v20 = vld [vmem:[%s4465_s1 + $0x168] sm:$0xff] }
  0x4b   : > { %2619 = vmatprep.subr.bf16.mxu1 %v3643_v14  ;;  %v3664_v21 = vpack.c.bf16 %v359_v19, %v355_v18  ;;  %v354_v22 = vld [vmem:[%s4465_s1 + $0xd0] sm:$0xff]  ;;  %v3673_v24 = vpack.c.bf16 %v364_v13, %v360_v12  ;;  %v363_v25 = vld [vmem:[%s4465_s1 + $0x118] sm:$0xff]  ;;  %v3682_v27 = vpack.c.bf16 %v373_v20, %v369_v16  ;;  %v368_v28 = vld [vmem:[%s4465_s1 + $0x140] sm:$0xff] }
  0x4c   : > { %2589 = vmatpush1.bf16.msra.mxu0 %v3586_v59  ;;  %v358_v23 = vld [vmem:[%s4465_s1 + $0xf0] sm:$0xff]  ;;  %v367_v26 = vld [vmem:[%s4465_s1 + $0x138] sm:$0xff]  ;;  %v372_v29 = vld [vmem:[%s4465_s1 + $0x160] sm:$0xff] }
  0x4d   : > { %2591 = vmatprep.subr.bf16.mxu0 %v3599_v63  ;;  %2621 = vmatpush1.bf16.msra.mxu1 %v3652_v17  ;;  %v377_v30 = vld [vmem:[%s4465_s1 + $0x188] sm:$0xff]  ;;  %v3694_v31 = vpack.c.bf16 %v358_v23, %v354_v22  ;;  %v3700_v33 = vpack.c.bf16 %v367_v26, %v363_v25  ;;  %v362_v34 = vld [vmem:[%s4465_s1 + $0x110] sm:$0xff]  ;;  %v371_v37 = vld [vmem:[%s4465_s1 + $0x158] sm:$0xff]  ;;  %v3715_v39 = vpack.c.bf16 %v372_v29, %v368_v28 }
  0x4e   : > { %v381_v32 = vld [vmem:[%s4465_s1 + $0x1a8] sm:$0xff]  ;;  %2623 = vmatprep.subr.bf16.mxu1 %v3664_v21  ;;  %v366_v35 = vld [vmem:[%s4465_s1 + $0x130] sm:$0xff]  ;;  %v375_v38 = vld [vmem:[%s4465_s1 + $0x178] sm:$0xff] }
  0x4f   : > { %v3718_v43 = vpack.c.bf16 %v381_v32, %v377_v30  ;;  %v376_v44 = vld [vmem:[%s4465_s1 + $0x180] sm:$0xff]  ;;  %v385_v46 = vld [vmem:[%s4465_s1 + $0x1c8] sm:$0xff]  ;;  %v3730_v48 = vpack.c.bf16 %v366_v35, %v362_v34  ;;  %v3736_v51 = vpack.c.bf16 %v375_v38, %v371_v37  ;;  %v370_v52 = vld [vmem:[%s4465_s1 + $0x150] sm:$0xff] }
  0x50   : > { %2593 = vmatpush1.bf16.msra.mxu0 %v3635_v11  ;;  %v380_v45 = vld [vmem:[%s4465_s1 + $0x1a0] sm:$0xff]  ;;  %v389_v49 = vld [vmem:[%s4465_s1 + $0x1e8] sm:$0xff]  ;;  %v374_v53 = vld [vmem:[%s4465_s1 + $0x170] sm:$0xff] }
  0x51   : > { %2595 = vmatprep.subr.bf16.mxu0 %v3646_v15  ;;  %2625 = vmatpush1.bf16.msra.mxu1 %v3694_v31  ;;  %v379_v54 = vld [vmem:[%s4465_s1 + $0x198] sm:$0xff]  ;;  %v3751_v57 = vpack.c.bf16 %v380_v45, %v376_v44  ;;  %v3754_v60 = vpack.c.bf16 %v389_v49, %v385_v46  ;;  %v384_v61 = vld [vmem:[%s4465_s1 + $0x1c0] sm:$0xff]  ;;  %v3763_v0 = vpack.c.bf16 %v374_v53, %v370_v52  ;;  %v378_v3 = vld [vmem:[%s4465_s1 + $0x190] sm:$0xff] }
  0x52   : > { %2627 = vmatprep.subr.bf16.mxu1 %v3700_v33  ;;  %v383_v56 = vld [vmem:[%s4465_s1 + $0x1b8] sm:$0xff]  ;;  %v388_v62 = vld [vmem:[%s4465_s1 + $0x1e0] sm:$0xff]  ;;  %v382_v4 = vld [vmem:[%s4465_s1 + $0x1b0] sm:$0xff] }
  0x53   : > { %v3766_v1 = vpack.c.bf16 %v383_v56, %v379_v54  ;;  %v387_v5 = vld [vmem:[%s4465_s1 + $0x1d8] sm:$0xff]  ;;  %v3781_v8 = vpack.c.bf16 %v388_v62, %v384_v61  ;;  %v3785_v9 = vpack.c.bf16 %v382_v4, %v378_v3  ;;  %v386_v12 = vld [vmem:[%s4465_s1 + $0x1d0] sm:$0xff]  ;;  %v322_v16 = vld [vmem:[#allocation2] sm:$0xff] }
  0x54   : > { %2597 = vmatpush1.bf16.msra.mxu0 %v3673_v24  ;;  %v391_v7 = vld [vmem:[%s4465_s1 + $0x1f8] sm:$0xff]  ;;  %v390_v13 = vld [vmem:[%s4465_s1 + $0x1f0] sm:$0xff]  ;;  %v327_v30 = vld [vmem:[%s3507_s11 + $0x18] sm:$0xff] }
  0x55   : > { %2599 = vmatprep.subr.bf16.mxu0 %v3682_v27  ;;  %2629 = vmatpush1.bf16.msra.mxu1 %v3730_v48  ;;  %v3788_v10 = vpack.c.bf16 %v391_v7, %v387_v5  ;;  %v3798_v18 = vpack.c.bf16 %v390_v13, %v386_v12  ;;  %v324_v19 = vld [vmem:[%s3507_s11] sm:$0xff]  ;;  %v325_v20 = vld [vmem:[%s3507_s11 + $0x8] sm:$0xff]  ;;  %v326_v37 = vld [vmem:[%s3507_s11 + $0x10] sm:$0xff] }
  0x56   : > { %2631 = vmatprep.subr.bf16.mxu1 %v3736_v51  ;;  %v323_v56 = vld [vmem:[#allocation3] sm:$0xff] }
  0x58   : > { %2601 = vmatpush1.bf16.msra.mxu0 %v3715_v39 }
  0x59   : > { %2603 = vmatprep.subr.bf16.mxu0 %v3718_v43  ;;  %2633 = vmatpush1.bf16.msra.mxu1 %v3763_v0 }
  0x5a   : > { %2635 = vmatprep.subr.bf16.mxu1 %v3766_v1 }
  0x5c   : > { %2605 = vmatpush1.bf16.msra.mxu0 %v3751_v57 }
  0x5d   : > { %2607 = vmatprep.subr.bf16.mxu0 %v3754_v60  ;;  %2637 = vmatpush1.bf16.msra.mxu1 %v3785_v9 }
  0x5e   : > { %2639 = vmatprep.subr.bf16.mxu1 %v3788_v10 }
  0x60   : > { %2609 = vmatpush1.bf16.msra.mxu0 %v3781_v8 }
  0x61   : > { %2643 = vmatprep.subr.bf16.mxu0 %v3521_v36  ;;  %2641 = vmatpush1.bf16.msra.mxu1 %v3798_v18 }
  0x62   : > { %2675 = vmatprep.subr.bf16.mxu1 %v3575_v55 }
  0x63   : > { %457 = vmatmul.mubr.f32.vlgmr.msra.gmra.mrb[0].mxu0 %v322_v16 }
  0x64   : > { %2645 = vmatpush1.bf16.msra.mxu0 %v3534_v41  ;;  %700 = vmatprep.mubr.f32.mxu0 %v3333_v40 }
  0x65   : > { %2647 = vmatprep.subr.bf16.mxu0 %v3536_v42  ;;  %528 = vmatmul.mubr.f32.vlgmr.msra.gmra.mrb[0].mxu1 %v322_v16 }
  0x66   : > { %2677 = vmatpush1.bf16.msra.mxu1 %v3583_v58  ;;  %771 = vmatprep.mubr.f32.mxu1 %v3333_v40 }
  0x67   : > { %2679 = vmatprep.subr.bf16.mxu1 %v3608_v2 }
  0x68   : > { %2649 = vmatpush1.bf16.msra.mxu0 %v3552_v47 }
  0x69   : > { %2651 = vmatprep.subr.bf16.mxu0 %v3561_v50 }
  0x6a   : > { %2681 = vmatpush1.bf16.msra.mxu1 %v3619_v6 }
  0x6b   : > { %2683 = vmatprep.subr.bf16.mxu1 %v3643_v14 }
  0x6c   : > { %2653 = vmatpush1.bf16.msra.mxu0 %v3586_v59 }
  0x6d   : > { %2655 = vmatprep.subr.bf16.mxu0 %v3599_v63 }
  0x6e   : > { %2685 = vmatpush1.bf16.msra.mxu1 %v3652_v17 }
  0x6f   : > { %2687 = vmatprep.subr.bf16.mxu1 %v3664_v21 }
  0x70   : > { %2657 = vmatpush1.bf16.msra.mxu0 %v3635_v11 }
  0x71   : > { %2659 = vmatprep.subr.bf16.mxu0 %v3646_v15 }
  0x72   : > { %2689 = vmatpush1.bf16.msra.mxu1 %v3694_v31 }
  0x73   : > { %2691 = vmatprep.subr.bf16.mxu1 %v3700_v33 }
  0x74   : > { %2661 = vmatpush1.bf16.msra.mxu0 %v3673_v24 }
  0x75   : > { %2663 = vmatprep.subr.bf16.mxu0 %v3682_v27 }
  0x76   : > { %2693 = vmatpush1.bf16.msra.mxu1 %v3730_v48 }
  0x77   : > { %2695 = vmatprep.subr.bf16.mxu1 %v3736_v51 }
  0x78   : > { %2665 = vmatpush1.bf16.msra.mxu0 %v3715_v39 }
  0x79   : > { %2667 = vmatprep.subr.bf16.mxu0 %v3718_v43 }
  0x7a   : > { %2697 = vmatpush1.bf16.msra.mxu1 %v3763_v0 }
  0x7b   : > { %2699 = vmatprep.subr.bf16.mxu1 %v3766_v1 }
  0x7c   : > { %2669 = vmatpush1.bf16.msra.mxu0 %v3751_v57 }
  0x7d   : > { %2671 = vmatprep.subr.bf16.mxu0 %v3754_v60 }
  0x7e   : > { %2701 = vmatpush1.bf16.msra.mxu1 %v3785_v9 }
  0x7f   : > { %2703 = vmatprep.subr.bf16.mxu1 %v3788_v10 }
  0x80   : > { %2673 = vmatpush1.bf16.msra.mxu0 %v3781_v8 }
  0x81   : > { %2707 = vmatprep.subr.bf16.mxu0 %v3521_v36 }
  0x82   : > { %2705 = vmatpush1.bf16.msra.mxu1 %v3798_v18 }
  0x83   : > { %2739 = vmatprep.subr.bf16.mxu1 %v3575_v55 }
 0x136   : > { %v458_v22 = vpop.f32.mrb[0].mxu0 }
 0x137   : > { %v534_v23 = vadd.f32 %v458_v22, %v324_v19  ;;  %v460_v25 = vpop.f32.mrb[1].mxu0 }
 0x138   : > { %v535_v26 = vadd.f32 %v460_v25, %v325_v20  ;;  %v529_v32 = vpop.f32.mrb[0].mxu1 }
 0x139   : > { %v2510_v28 = vmul.f32 -1.442695, %v534_v23  ;;  %v531_v34 = vpop.f32.mrb[1].mxu1  ;;  %v536_v44 = vadd.f32 %v529_v32, %v326_v37 }
 0x13a   : > { %v2511_v29 = vmul.f32 -1.442695, %v535_v26  ;;  %v537_v35 = vadd.f32 %v531_v34, %v327_v30 }
 0x13b   : > { %3148 = vpow2.f32 %v2510_v28 }
 0x13c   : > { %3150 = vpow2.f32 %v2511_v29  ;;  %v2512_v38 = vmul.f32 -1.442695, %v537_v35 }
 0x13e   : > { %3152 = vpow2.f32 %v2512_v38 }
 0x13f   : > { %3154 = vtanh.f32 %v536_v44 }
 0x145   : > { %v3149_v45 = vpop.eup %3148 }
 0x146   : > { %v3151_v46 = vpop.eup %3150  ;;  %v541_v49 = vadd.f32 1.0, %v3149_v45 }
 0x147   : > { %v547_v52 = vadd.f32 1.0, %v3151_v46  ;;  %v1094_v46 = vld [vmem:[%s4465_s1 + $0x100] sm:$0xff] }
 0x148   : > { %3156 = vrcp.f32 %v541_v49  ;;  %v3153_v53 = vpop.eup %3152  ;;  %v1098_v49 = vld [vmem:[%s4465_s1 + $0x120] sm:$0xff] }
 0x149   : > { %3158 = vrcp.f32 %v547_v52  ;;  %v3155_v54 = vpop.eup %3154  ;;  %v554_v62 = vadd.f32 1.0, %v3153_v53  ;;  %v3967_v52 = vpack.c.bf16 %v1098_v49, %v1094_v46  ;;  %v1103_v53 = vld [vmem:[%s4465_s1 + $0x148] sm:$0xff]  ;;  %v1311_v46 = vld [vmem:[%s4465_s1 + $0x20] sm:$0xff] }
 0x14b   : > { %3160 = vrcp.f32 %v554_v62  ;;  %v1106_v62 = vld [vmem:[%s4465_s1 + $0x160] sm:$0xff] }
 0x152   : > { %v3157_v61 = vpop.eup %3156 }
 0x153   : > { %v3159_v3 = vpop.eup %3158  ;;  %v558_v4 = vmul.f32 %v3157_v61, %v3155_v54  ;;  %v1107_v54 = vld [vmem:[%s4465_s1 + $0x168] sm:$0xff]  ;;  %v1102_v61 = vld [vmem:[%s4465_s1 + $0x140] sm:$0xff] }
 0x154   : > { %v557_v5 = vmul.f32 %v3159_v3, %v323_v56  ;;  %v3977_v56 = vpack.c.bf16 %v1107_v54, %v1103_v53  ;;  %v3985_v3 = vpack.c.bf16 %v1106_v62, %v1102_v61  ;;  %v1309_v54 = vld [vmem:[%s4465_s1 + $0x10] sm:$0xff] }
 0x155   : > { %v3161_v12 = vpop.eup %3160  ;;  %v1313_v61 = vld [vmem:[%s4465_s1 + $0x30] sm:$0xff] }
 0x156   : > { %v3842_v7 = vadd.f32 %v558_v4, %v557_v5  ;;  %v1111_v4 = vld [vmem:[%s4465_s1 + $0x188] sm:$0xff]  ;;  %v4067_v62 = vpack.c.bf16 %v1313_v61, %v1309_v54  ;;  %v1369_v54 = vld [vmem:[%s4465_s1 + $0x1f0] sm:$0xff] }
 0x157   : > { %v1115_v5 = vld [vmem:[%s4465_s1 + $0x1a8] sm:$0xff] }
 0x158   : > { %3162 = vtanh.f32 %v3842_v7 }
 0x162   : > { %v3163_v13 = vpop.eup %3162 }
 0x163   : > { %v561_v16 = vmul.f32 %v3163_v13, %v3161_v12  ;;  %v1110_v12 = vld [vmem:[%s4465_s1 + $0x180] sm:$0xff] }
 0x164   : > { %v1114_v13 = vld [vmem:[%s4465_s1 + $0x1a0] sm:$0xff] }
 0x165   : > { %564 = vst [vmem:[%s3509_s12] sm:$0xff] %v561_v16  ;;  %701 = vmatmul.mubr.f32.vlgmr.msra.gmra.mrb[2].mxu0 %v561_v16  ;;  %772 = vmatmul.mubr.f32.vlgmr.msra.gmra.mrb[2].mxu1 %v561_v16  ;;  %v4003_v16 = vpack.c.bf16 %v1114_v13, %v1110_v12  ;;  %v1318_v12 = vld [vmem:[%s4465_s1 + $0x58] sm:$0xff] }
 0x166   : > { %2709 = vmatpush1.bf16.msra.mxu0 %v3534_v41  ;;  %2741 = vmatpush1.bf16.msra.mxu1 %v3583_v58 }
 0x167   : > { %2711 = vmatprep.subr.bf16.mxu0 %v3536_v42  ;;  %2743 = vmatprep.subr.bf16.mxu1 %v3608_v2 }
 0x168   : > { %945 = vmatprep.mubr.f32.mxu0 %v3333_v40  ;;  %1016 = vmatprep.mubr.f32.mxu1 %v3333_v40 }
 0x16a   : > { %2713 = vmatpush1.bf16.msra.mxu0 %v3552_v47  ;;  %2745 = vmatpush1.bf16.msra.mxu1 %v3619_v6  ;;  %v2513_v47 = vld [vmem:[%s3507_s11 + $0x20] sm:$0xff] }
 0x16b   : > { %2715 = vmatprep.subr.bf16.mxu0 %v3561_v50  ;;  %2747 = vmatprep.subr.bf16.mxu1 %v3643_v14  ;;  %v2514_v50 = vld [vmem:[%s3507_s11 + $0x28] sm:$0xff] }
 0x16e   : > { %2717 = vmatpush1.bf16.msra.mxu0 %v3586_v59  ;;  %2749 = vmatpush1.bf16.msra.mxu1 %v3652_v17 }
 0x16f   : > { %2719 = vmatprep.subr.bf16.mxu0 %v3599_v63  ;;  %2751 = vmatprep.subr.bf16.mxu1 %v3664_v21 }
 0x172   : > { %2721 = vmatpush1.bf16.msra.mxu0 %v3635_v11  ;;  %2753 = vmatpush1.bf16.msra.mxu1 %v3694_v31 }
 0x173   : > { %2723 = vmatprep.subr.bf16.mxu0 %v3646_v15  ;;  %2755 = vmatprep.subr.bf16.mxu1 %v3700_v33 }
 0x176   : > { %2725 = vmatpush1.bf16.msra.mxu0 %v3673_v24  ;;  %2757 = vmatpush1.bf16.msra.mxu1 %v3730_v48 }
 0x177   : > { %2727 = vmatprep.subr.bf16.mxu0 %v3682_v27  ;;  %2759 = vmatprep.subr.bf16.mxu1 %v3736_v51 }
 0x17a   : > { %2729 = vmatpush1.bf16.msra.mxu0 %v3715_v39  ;;  %2761 = vmatpush1.bf16.msra.mxu1 %v3763_v0 }
 0x17b   : > { %2731 = vmatprep.subr.bf16.mxu0 %v3718_v43  ;;  %2763 = vmatprep.subr.bf16.mxu1 %v3766_v1 }
 0x17e   : > { %2733 = vmatpush1.bf16.msra.mxu0 %v3751_v57  ;;  %2765 = vmatpush1.bf16.msra.mxu1 %v3785_v9  ;;  %v2516_v57 = vld [vmem:[%s3507_s11 + $0x38] sm:$0xff] }
 0x17f   : > { %2735 = vmatprep.subr.bf16.mxu0 %v3754_v60  ;;  %2767 = vmatprep.subr.bf16.mxu1 %v3788_v10 }
 0x182   : > { %2737 = vmatpush1.bf16.msra.mxu0 %v3781_v8  ;;  %2769 = vmatpush1.bf16.msra.mxu1 %v3798_v18  ;;  %v2515_v8 = vld [vmem:[%s3507_s11 + $0x30] sm:$0xff] }
 0x183   : > { %2771 = vmatprep.subr.bf16.mxu0 %v3521_v36  ;;  %2803 = vmatprep.subr.bf16.mxu1 %v3575_v55 }
 0x238   : > { %v702_v59 = vpop.f32.mrb[2].mxu0  ;;  %v773_v63 = vpop.f32.mrb[2].mxu1 }
 0x239   : > { %v778_v11 = vadd.f32 %v2513_v47, %v702_v59  ;;  %v704_v15 = vpop.f32.mrb[3].mxu0  ;;  %v775_v24 = vpop.f32.mrb[3].mxu1  ;;  %v780_v36 = vadd.f32 %v2515_v8, %v773_v63  ;;  %v1119_v47 = vld [vmem:[%s4465_s1 + $0x1c8] sm:$0xff]  ;;  %v1118_v63 = vld [vmem:[%s4465_s1 + $0x1c0] sm:$0xff] }
 0x23a   : > { %v779_v27 = vadd.f32 %v2514_v50, %v704_v15  ;;  %v781_v60 = vadd.f32 %v2516_v57, %v775_v24  ;;  %v1123_v50 = vld [vmem:[%s4465_s1 + $0x1e8] sm:$0xff]  ;;  %v2521_v24 = vld [vmem:[%s3507_s11 + $0x40] sm:$0xff] }
 0x23b   : > { %v2517_v39 = vmul.f32 -1.442695, %v778_v11  ;;  %v4013_v59 = vpack.c.bf16 %v1123_v50, %v1119_v47  ;;  %v1122_v11 = vld [vmem:[%s4465_s1 + $0x1e0] sm:$0xff]  ;;  %v1322_v47 = vld [vmem:[%s4465_s1 + $0x78] sm:$0xff]  ;;  %v1317_v50 = vld [vmem:[%s4465_s1 + $0x50] sm:$0xff] }
 0x23c   : > { %v2518_v43 = vmul.f32 -1.442695, %v779_v27  ;;  %v2519_v19 = vmul.f32 -1.442695, %v781_v60  ;;  %v4021_v15 = vpack.c.bf16 %v1122_v11, %v1118_v63  ;;  %v2522_v27 = vld [vmem:[%s3507_s11 + $0x48] sm:$0xff]  ;;  %v1321_v63 = vld [vmem:[%s4465_s1 + $0x70] sm:$0xff]  ;;  %v4092_v11 = vpack.c.bf16 %v1322_v47, %v1318_v12 }
 0x23d   : > { %3164 = vpow2.f32 %v2517_v39 }
 0x23e   : > { %3166 = vpow2.f32 %v2518_v43 }
 0x23f   : > { %3168 = vpow2.f32 %v2519_v19 }
 0x240   : > { %3170 = vtanh.f32 %v780_v36 }
 0x247   : > { %v3165_v20 = vpop.eup %3164 }
 0x248   : > { %v3167_v22 = vpop.eup %3166  ;;  %v785_v55 = vadd.f32 1.0, %v3165_v20 }
 0x249   : > { %v791_v23 = vadd.f32 1.0, %v3167_v22  ;;  %v3169_v25 = vpop.eup %3168  ;;  %v2524_v22 = vld [vmem:[%s3507_s11 + $0x58] sm:$0xff] }
 0x24a   : > { %3172 = vrcp.f32 %v785_v55  ;;  %v3171_v26 = vpop.eup %3170  ;;  %v798_v32 = vadd.f32 1.0, %v3169_v25 }
 0x24b   : > { %3174 = vrcp.f32 %v791_v23  ;;  %v2523_v23 = vld [vmem:[%s3507_s11 + $0x50] sm:$0xff] }
 0x24c   : > { %3176 = vrcp.f32 %v798_v32 }
 0x254   : > { %v3173_v28 = vpop.eup %3172 }
 0x255   : > { %v3175_v29 = vpop.eup %3174  ;;  %v802_v30 = vmul.f32 %v3173_v28, %v3171_v26 }
 0x256   : > { %v801_v34 = vmul.f32 %v3175_v29, %v3842_v7  ;;  %v3177_v37 = vpop.eup %3176  ;;  %v3995_v7 = vpack.c.bf16 %v1115_v5, %v1111_v4  ;;  %v1316_v4 = vld [vmem:[%s4465_s1 + $0x48] sm:$0xff] }
 0x257   : > { %v1320_v5 = vld [vmem:[%s4465_s1 + $0x68] sm:$0xff] }
 0x258   : > { %v3885_v35 = vadd.f32 %v802_v30, %v801_v34  ;;  %v4081_v13 = vpack.c.bf16 %v1320_v5, %v1316_v4  ;;  %v2529_v4 = vld [vmem:[%s3507_s11 + $0x60] sm:$0xff]  ;;  %v2530_v5 = vld [vmem:[%s3507_s11 + $0x68] sm:$0xff] }
 0x25a   : > { %3178 = vtanh.f32 %v3885_v35 }
 0x264   : > { %v3179_v38 = vpop.eup %3178 }
 0x265   : > { %v805_v44 = vmul.f32 %v3179_v38, %v3177_v37 }
 0x267   : > { %2520 = vst [vmem:[%s3509_s12 + $0x8] sm:$0xff] %v805_v44  ;;  %946 = vmatmul.mubr.f32.vlgmr.msra.gmra.mrb[4].mxu0 %v805_v44  ;;  %1017 = vmatmul.mubr.f32.vlgmr.msra.gmra.mrb[4].mxu1 %v805_v44 }
 0x268   : > { %2773 = vmatpush1.bf16.msra.mxu0 %v3534_v41  ;;  %2805 = vmatpush1.bf16.msra.mxu1 %v3583_v58  ;;  %v1070_v41 = vld [vmem:[%s4465_s1 + $0x40] sm:$0xff] }
 0x269   : > { %2775 = vmatprep.subr.bf16.mxu0 %v3536_v42  ;;  %2807 = vmatprep.subr.bf16.mxu1 %v3608_v2  ;;  %v1074_v42 = vld [vmem:[%s4465_s1 + $0x60] sm:$0xff]  ;;  %v1079_v2 = vld [vmem:[%s4465_s1 + $0x88] sm:$0xff] }
 0x26a   : > { %1190 = vmatprep.mubr.f32.mxu0 %v3333_v40  ;;  %1261 = vmatprep.mubr.f32.mxu1 %v3333_v40  ;;  %v3914_v58 = vpack.c.bf16 %v1074_v42, %v1070_v41 }
 0x26c   : > { %2809 = vmatpush1.bf16.msra.mxu1 %v3619_v6  ;;  %2777 = vmatpush1.bf16.msra.mxu0 %v3914_v58  ;;  %v1083_v6 = vld [vmem:[%s4465_s1 + $0xa8] sm:$0xff] }
 0x26d   : > { %2811 = vmatprep.subr.bf16.mxu1 %v3643_v14  ;;  %v3923_v14 = vpack.c.bf16 %v1083_v6, %v1079_v2 }
 0x26f   : > { %2779 = vmatprep.subr.bf16.mxu0 %v3923_v14 }
 0x270   : > { %2813 = vmatpush1.bf16.msra.mxu1 %v3652_v17  ;;  %v1078_v17 = vld [vmem:[%s4465_s1 + $0x80] sm:$0xff] }
 0x271   : > { %2815 = vmatprep.subr.bf16.mxu1 %v3664_v21  ;;  %v1082_v21 = vld [vmem:[%s4465_s1 + $0xa0] sm:$0xff] }
 0x274   : > { %2817 = vmatpush1.bf16.msra.mxu1 %v3694_v31  ;;  %v3931_v31 = vpack.c.bf16 %v1082_v21, %v1078_v17 }
 0x275   : > { %2819 = vmatprep.subr.bf16.mxu1 %v3700_v33  ;;  %v1087_v33 = vld [vmem:[%s4465_s1 + $0xc8] sm:$0xff] }
 0x276   : > { %2781 = vmatpush1.bf16.msra.mxu0 %v3931_v31 }
 0x278   : > { %2821 = vmatpush1.bf16.msra.mxu1 %v3730_v48  ;;  %v1091_v48 = vld [vmem:[%s4465_s1 + $0xe8] sm:$0xff] }
 0x279   : > { %2823 = vmatprep.subr.bf16.mxu1 %v3736_v51  ;;  %v3941_v51 = vpack.c.bf16 %v1091_v48, %v1087_v33  ;;  %v1308_v48 = vld [vmem:[%s4465_s1 + $0x8] sm:$0xff] }
 0x27b   : > { %2783 = vmatprep.subr.bf16.mxu0 %v3941_v51 }
 0x27c   : > { %2825 = vmatpush1.bf16.msra.mxu1 %v3763_v0  ;;  %v1086_v0 = vld [vmem:[%s4465_s1 + $0xc0] sm:$0xff] }
 0x27d   : > { %2827 = vmatprep.subr.bf16.mxu1 %v3766_v1  ;;  %v1090_v1 = vld [vmem:[%s4465_s1 + $0xe0] sm:$0xff] }
 0x280   : > { %2829 = vmatpush1.bf16.msra.mxu1 %v3785_v9  ;;  %v3949_v9 = vpack.c.bf16 %v1090_v1, %v1086_v0  ;;  %v1310_v0 = vld [vmem:[%s4465_s1 + $0x18] sm:$0xff] }
 0x281   : > { %2831 = vmatprep.subr.bf16.mxu1 %v3788_v10  ;;  %v1095_v10 = vld [vmem:[%s4465_s1 + $0x108] sm:$0xff] }
 0x282   : > { %2785 = vmatpush1.bf16.msra.mxu0 %v3949_v9 }
 0x284   : > { %2833 = vmatpush1.bf16.msra.mxu1 %v3798_v18  ;;  %v1099_v18 = vld [vmem:[%s4465_s1 + $0x128] sm:$0xff] }
 0x285   : > { %v3959_v45 = vpack.c.bf16 %v1099_v18, %v1095_v10  ;;  %v1314_v10 = vld [vmem:[%s4465_s1 + $0x38] sm:$0xff]  ;;  %v1307_v18 = vld [vmem:[%s4465_s1] sm:$0xff] }
 0x286   : > { %v4056_v49 = vpack.c.bf16 %v1314_v10, %v1310_v0  ;;  %v4058_v53 = vpack.c.bf16 %v1311_v46, %v1307_v18  ;;  %v1366_v0 = vld [vmem:[%s4465_s1 + $0x1d8] sm:$0xff]  ;;  %v1365_v46 = vld [vmem:[%s4465_s1 + $0x1d0] sm:$0xff] }
 0x287   : > { %2787 = vmatprep.subr.bf16.mxu0 %v3959_v45  ;;  %v1370_v10 = vld [vmem:[%s4465_s1 + $0x1f8] sm:$0xff]  ;;  %v4215_v61 = vpack.c.bf16 %v1369_v54, %v1365_v46 }
 0x288   : > { %2789 = vmatpush1.bf16.msra.mxu0 %v3967_v52  ;;  %2867 = vmatprep.subr.bf16.mxu1 %v4056_v49  ;;  %v4207_v18 = vpack.c.bf16 %v1370_v10, %v1366_v0 }
 0x289   : > { %2791 = vmatprep.subr.bf16.mxu0 %v3977_v56 }
 0x28c   : > { %2793 = vmatpush1.bf16.msra.mxu0 %v3985_v3 }
 0x28d   : > { %2795 = vmatprep.subr.bf16.mxu0 %v3995_v7 }
 0x290   : > { %2797 = vmatpush1.bf16.msra.mxu0 %v4003_v16 }
 0x291   : > { %2799 = vmatprep.subr.bf16.mxu0 %v4013_v59 }
 0x294   : > { %2801 = vmatpush1.bf16.msra.mxu0 %v4021_v15 }
 0x33a   : > { %v947_v39 = vpop.f32.mrb[4].mxu0  ;;  %v1018_v43 = vpop.f32.mrb[4].mxu1 }
 0x33b   : > { %v1023_v57 = vadd.f32 %v2521_v24, %v947_v39  ;;  %v949_v60 = vpop.f32.mrb[5].mxu0  ;;  %v1020_v8 = vpop.f32.mrb[5].mxu1  ;;  %v1025_v26 = vadd.f32 %v2523_v23, %v1018_v43  ;;  %v4094_v24 = vpack.c.bf16 %v1321_v63, %v1317_v50  ;;  %v1330_v39 = vld [vmem:[%s4465_s1 + $0xb8] sm:$0xff] }
 0x33c   : > { %v1024_v19 = vadd.f32 %v2522_v27, %v949_v60  ;;  %v1026_v55 = vadd.f32 %v2524_v22, %v1020_v8  ;;  %v1326_v27 = vld [vmem:[%s4465_s1 + $0x98] sm:$0xff]  ;;  %v1329_v60 = vld [vmem:[%s4465_s1 + $0xb0] sm:$0xff] }
 0x33d   : > { %v2525_v36 = vmul.f32 -1.442695, %v1023_v57  ;;  %v4107_v43 = vpack.c.bf16 %v1330_v39, %v1326_v27  ;;  %v1325_v57 = vld [vmem:[%s4465_s1 + $0x90] sm:$0xff] }
 0x33e   : > { %v2526_v20 = vmul.f32 -1.442695, %v1024_v19  ;;  %v2527_v25 = vmul.f32 -1.442695, %v1026_v55  ;;  %v4115_v8 = vpack.c.bf16 %v1329_v60, %v1325_v57  ;;  %v1334_v19 = vld [vmem:[%s4465_s1 + $0xd8] sm:$0xff]  ;;  %v1333_v22 = vld [vmem:[%s4465_s1 + $0xd0] sm:$0xff] }
 0x33f   : > { %3180 = vpow2.f32 %v2525_v36  ;;  %v1338_v36 = vld [vmem:[%s4465_s1 + $0xf8] sm:$0xff]  ;;  %v1337_v55 = vld [vmem:[%s4465_s1 + $0xf0] sm:$0xff] }
 0x340   : > { %3182 = vpow2.f32 %v2526_v20  ;;  %v4127_v20 = vpack.c.bf16 %v1338_v36, %v1334_v19  ;;  %v4135_v23 = vpack.c.bf16 %v1337_v55, %v1333_v22  ;;  %v2532_v19 = vld [vmem:[%s3507_s11 + $0x78] sm:$0xff]  ;;  %v2531_v22 = vld [vmem:[%s3507_s11 + $0x70] sm:$0xff] }
 0x341   : > { %3184 = vpow2.f32 %v2527_v25  ;;  %v1342_v25 = vld [vmem:[%s4465_s1 + $0x118] sm:$0xff] }
 0x342   : > { %3186 = vtanh.f32 %v1025_v26  ;;  %v1346_v26 = vld [vmem:[%s4465_s1 + $0x138] sm:$0xff] }
 0x349   : > { %v3181_v28 = vpop.eup %3180 }
 0x34a   : > { %v3183_v29 = vpop.eup %3182  ;;  %v1030_v30 = vadd.f32 1.0, %v3181_v28  ;;  %v4147_v28 = vpack.c.bf16 %v1346_v26, %v1342_v25 }
 0x34b   : > { %v1036_v32 = vadd.f32 1.0, %v3183_v29  ;;  %v3185_v34 = vpop.eup %3184  ;;  %v1341_v29 = vld [vmem:[%s4465_s1 + $0x110] sm:$0xff] }
 0x34c   : > { %3188 = vrcp.f32 %v1030_v30  ;;  %v3187_v37 = vpop.eup %3186  ;;  %v1043_v42 = vadd.f32 1.0, %v3185_v34  ;;  %v1345_v30 = vld [vmem:[%s4465_s1 + $0x130] sm:$0xff]  ;;  %v1350_v34 = vld [vmem:[%s4465_s1 + $0x158] sm:$0xff] }
 0x34d   : > { %3190 = vrcp.f32 %v1036_v32  ;;  %v4155_v32 = vpack.c.bf16 %v1345_v30, %v1341_v29 }
 0x34e   : > { %3192 = vrcp.f32 %v1043_v42 }
 0x356   : > { %v3189_v38 = vpop.eup %3188 }
 0x357   : > { %v3191_v44 = vpop.eup %3190  ;;  %v1047_v41 = vmul.f32 %v3189_v38, %v3187_v37  ;;  %v1354_v37 = vld [vmem:[%s4465_s1 + $0x178] sm:$0xff] }
 0x358   : > { %v1046_v2 = vmul.f32 %v3191_v44, %v3885_v35  ;;  %v3193_v17 = vpop.eup %3192  ;;  %v1312_v35 = vld [vmem:[%s4465_s1 + $0x28] sm:$0xff]  ;;  %v4167_v38 = vpack.c.bf16 %v1354_v37, %v1350_v34  ;;  %v1349_v44 = vld [vmem:[%s4465_s1 + $0x150] sm:$0xff] }
 0x359   : > { %v4045_v1 = vpack.c.bf16 %v1312_v35, %v1308_v48  ;;  %v1361_v48 = vld [vmem:[%s4465_s1 + $0x1b0] sm:$0xff] }
 0x35a   : > { %v4030_v6 = vadd.f32 %v1047_v41, %v1046_v2  ;;  %v1353_v41 = vld [vmem:[%s4465_s1 + $0x170] sm:$0xff]  ;;  %v1358_v2 = vld [vmem:[%s4465_s1 + $0x198] sm:$0xff] }
 0x35b   : > { %2835 = vmatprep.subr.bf16.mxu0 %v4045_v1  ;;  %v4175_v42 = vpack.c.bf16 %v1353_v41, %v1349_v44 }
 0x35c   : > { %3194 = vtanh.f32 %v4030_v6 }
 0x366   : > { %v3195_v21 = vpop.eup %3194 }
 0x367   : > { %v1050_v33 = vmul.f32 %v3195_v21, %v3193_v17  ;;  %v1362_v17 = vld [vmem:[%s4465_s1 + $0x1b8] sm:$0xff] }
 0x368   : > { %v4187_v21 = vpack.c.bf16 %v1362_v17, %v1358_v2 }
 0x369   : > { %2528 = vst [vmem:[%s3509_s12 + $0x10] sm:$0xff] %v1050_v33  ;;  %1191 = vmatmul.mubr.f32.vlgmr.msra.gmra.mrb[6].mxu0 %v1050_v33  ;;  %1262 = vmatmul.mubr.f32.vlgmr.msra.gmra.mrb[6].mxu1 %v1050_v33  ;;  %v1357_v33 = vld [vmem:[%s4465_s1 + $0x190] sm:$0xff] }
 0x36a   : > { %1435 = vmatprep.mubr.f32.mxu0 %v3333_v40  ;;  %1506 = vmatprep.mubr.f32.mxu1 %v3333_v40  ;;  %v4195_v35 = vpack.c.bf16 %v1361_v48, %v1357_v33 }
 0x36b   : > { %2837 = vmatpush1.bf16.msra.mxu0 %v4058_v53  ;;  %2869 = vmatpush1.bf16.msra.mxu1 %v4067_v62 }
 0x36c   : > { %2839 = vmatprep.subr.bf16.mxu0 %v4081_v13  ;;  %2871 = vmatprep.subr.bf16.mxu1 %v4092_v11 }
 0x36f   : > { %2841 = vmatpush1.bf16.msra.mxu0 %v3914_v58  ;;  %2873 = vmatpush1.bf16.msra.mxu1 %v4094_v24 }
 0x370   : > { %2843 = vmatprep.subr.bf16.mxu0 %v3923_v14  ;;  %2875 = vmatprep.subr.bf16.mxu1 %v4107_v43 }
 0x373   : > { %2845 = vmatpush1.bf16.msra.mxu0 %v3931_v31  ;;  %2877 = vmatpush1.bf16.msra.mxu1 %v4115_v8 }
 0x374   : > { %2847 = vmatprep.subr.bf16.mxu0 %v3941_v51  ;;  %2879 = vmatprep.subr.bf16.mxu1 %v4127_v20 }
 0x377   : > { %2849 = vmatpush1.bf16.msra.mxu0 %v3949_v9  ;;  %2881 = vmatpush1.bf16.msra.mxu1 %v4135_v23 }
 0x378   : > { %2851 = vmatprep.subr.bf16.mxu0 %v3959_v45  ;;  %2883 = vmatprep.subr.bf16.mxu1 %v4147_v28 }
 0x37b   : > { %2853 = vmatpush1.bf16.msra.mxu0 %v3967_v52  ;;  %2885 = vmatpush1.bf16.msra.mxu1 %v4155_v32 }
 0x37c   : > { %2855 = vmatprep.subr.bf16.mxu0 %v3977_v56  ;;  %2887 = vmatprep.subr.bf16.mxu1 %v4167_v38 }
 0x37f   : > { %2857 = vmatpush1.bf16.msra.mxu0 %v3985_v3  ;;  %2889 = vmatpush1.bf16.msra.mxu1 %v4175_v42 }
 0x380   : > { %2859 = vmatprep.subr.bf16.mxu0 %v3995_v7  ;;  %2891 = vmatprep.subr.bf16.mxu1 %v4187_v21 }
 0x383   : > { %2861 = vmatpush1.bf16.msra.mxu0 %v4003_v16  ;;  %2893 = vmatpush1.bf16.msra.mxu1 %v4195_v35 }
 0x384   : > { %2863 = vmatprep.subr.bf16.mxu0 %v4013_v59  ;;  %2895 = vmatprep.subr.bf16.mxu1 %v4207_v18 }
 0x387   : > { %2865 = vmatpush1.bf16.msra.mxu0 %v4021_v15  ;;  %2897 = vmatpush1.bf16.msra.mxu1 %v4215_v61 }
 0x388   : > { %2899 = vmatprep.subr.bf16.mxu0 %v4045_v1  ;;  %2931 = vmatprep.subr.bf16.mxu1 %v4056_v49 }
 0x43c   : > { %v1192_v12 = vpop.f32.mrb[6].mxu0  ;;  %v1263_v47 = vpop.f32.mrb[6].mxu1 }
 0x43d   : > { %v1268_v50 = vadd.f32 %v2529_v4, %v1192_v12  ;;  %v1194_v63 = vpop.f32.mrb[7].mxu0  ;;  %v1265_v27 = vpop.f32.mrb[7].mxu1  ;;  %v1270_v25 = vadd.f32 %v2531_v22, %v1263_v47  ;;  %v2538_v4 = vld [vmem:[%s3507_s11 + $0x88] sm:$0xff] }
 0x43e   : > { %v1269_v39 = vadd.f32 %v2530_v5, %v1194_v63  ;;  %v1271_v36 = vadd.f32 %v2532_v19, %v1265_v27 }
 0x43f   : > { %v2533_v57 = vmul.f32 -1.442695, %v1268_v50 }
 0x440   : > { %v2534_v60 = vmul.f32 -1.442695, %v1269_v39  ;;  %v2535_v55 = vmul.f32 -1.442695, %v1271_v36  ;;  %v2539_v36 = vld [vmem:[%s3507_s11 + $0x90] sm:$0xff] }
 0x441   : > { %3196 = vpow2.f32 %v2533_v57 }
 0x442   : > { %3198 = vpow2.f32 %v2534_v60  ;;  %v2540_v60 = vld [vmem:[%s3507_s11 + $0x98] sm:$0xff] }
 0x443   : > { %3200 = vpow2.f32 %v2535_v55 }
 0x444   : > { %3202 = vtanh.f32 %v1270_v25 }
 0x44b   : > { %v3197_v26 = vpop.eup %3196 }
 0x44c   : > { %v3199_v29 = vpop.eup %3198  ;;  %v1275_v30 = vadd.f32 1.0, %v3197_v26 }
 0x44d   : > { %v1281_v34 = vadd.f32 1.0, %v3199_v29  ;;  %v3201_v37 = vpop.eup %3200 }
 0x44e   : > { %3204 = vrcp.f32 %v1275_v30  ;;  %v3203_v44 = vpop.eup %3202  ;;  %v1288_v33 = vadd.f32 1.0, %v3201_v37 }
 0x44f   : > { %3206 = vrcp.f32 %v1281_v34 }
 0x450   : > { %3208 = vrcp.f32 %v1288_v33 }
 0x458   : > { %v3205_v41 = vpop.eup %3204 }
 0x459   : > { %v3207_v2 = vpop.eup %3206  ;;  %v1292_v17 = vmul.f32 %v3205_v41, %v3203_v44 }
 0x45a   : > { %v1291_v48 = vmul.f32 %v3207_v2, %v4030_v6  ;;  %v3209_v10 = vpop.eup %3208  ;;  %v2537_v6 = vld [vmem:[%s3507_s11 + $0x80] sm:$0xff] }
 0x45c   : > { %v4227_v0 = vadd.f32 %v1292_v17, %v1291_v48 }
 0x45e   : > { %3210 = vtanh.f32 %v4227_v0 }
 0x468   : > { %v3211_v46 = vpop.eup %3210 }
 0x469   : > { %v1295_v54 = vmul.f32 %v3211_v46, %v3209_v10 }
 0x46b   : > { %2536 = vst [vmem:[%s3509_s12 + $0x18] sm:$0xff] %v1295_v54  ;;  %1436 = vmatmul.mubr.f32.vlgmr.msra.gmra.mrb[8].mxu0 %v1295_v54  ;;  %1507 = vmatmul.mubr.f32.vlgmr.msra.gmra.mrb[8].mxu1 %v1295_v54 }
 0x46c   : > { %2901 = vmatpush1.bf16.msra.mxu0 %v4058_v53  ;;  %2933 = vmatpush1.bf16.msra.mxu1 %v4067_v62 }
 0x46d   : > { %2903 = vmatprep.subr.bf16.mxu0 %v4081_v13  ;;  %2935 = vmatprep.subr.bf16.mxu1 %v4092_v11 }
 0x46e   : > { %1680 = vmatprep.mubr.f32.mxu0 %v3333_v40  ;;  %1751 = vmatprep.mubr.f32.mxu1 %v3333_v40 }
 0x470   : > { %2905 = vmatpush1.bf16.msra.mxu0 %v3914_v58  ;;  %2937 = vmatpush1.bf16.msra.mxu1 %v4094_v24 }
 0x471   : > { %2907 = vmatprep.subr.bf16.mxu0 %v3923_v14  ;;  %2939 = vmatprep.subr.bf16.mxu1 %v4107_v43 }
 0x474   : > { %2909 = vmatpush1.bf16.msra.mxu0 %v3931_v31  ;;  %2941 = vmatpush1.bf16.msra.mxu1 %v4115_v8 }
 0x475   : > { %2911 = vmatprep.subr.bf16.mxu0 %v3941_v51  ;;  %2943 = vmatprep.subr.bf16.mxu1 %v4127_v20 }
 0x478   : > { %2913 = vmatpush1.bf16.msra.mxu0 %v3949_v9  ;;  %2945 = vmatpush1.bf16.msra.mxu1 %v4135_v23 }
 0x479   : > { %2915 = vmatprep.subr.bf16.mxu0 %v3959_v45  ;;  %2947 = vmatprep.subr.bf16.mxu1 %v4147_v28 }
 0x47c   : > { %2917 = vmatpush1.bf16.msra.mxu0 %v3967_v52  ;;  %2949 = vmatpush1.bf16.msra.mxu1 %v4155_v32 }
 0x47d   : > { %2919 = vmatprep.subr.bf16.mxu0 %v3977_v56  ;;  %2951 = vmatprep.subr.bf16.mxu1 %v4167_v38 }
 0x480   : > { %2921 = vmatpush1.bf16.msra.mxu0 %v3985_v3  ;;  %2953 = vmatpush1.bf16.msra.mxu1 %v4175_v42 }
 0x481   : > { %2923 = vmatprep.subr.bf16.mxu0 %v3995_v7  ;;  %2955 = vmatprep.subr.bf16.mxu1 %v4187_v21 }
 0x484   : > { %2925 = vmatpush1.bf16.msra.mxu0 %v4003_v16  ;;  %2957 = vmatpush1.bf16.msra.mxu1 %v4195_v35 }
 0x485   : > { %2927 = vmatprep.subr.bf16.mxu0 %v4013_v59  ;;  %2959 = vmatprep.subr.bf16.mxu1 %v4207_v18 }
 0x488   : > { %2929 = vmatpush1.bf16.msra.mxu0 %v4021_v15  ;;  %2961 = vmatpush1.bf16.msra.mxu1 %v4215_v61 }
 0x489   : > { %2963 = vmatprep.subr.bf16.mxu0 %v4045_v1  ;;  %2995 = vmatprep.subr.bf16.mxu1 %v4056_v49 }
 0x53e   : > { %v1437_v5 = vpop.f32.mrb[8].mxu0  ;;  %v1508_v12 = vpop.f32.mrb[8].mxu1 }
 0x53f   : > { %v1513_v47 = vadd.f32 %v2537_v6, %v1437_v5  ;;  %v1439_v50 = vpop.f32.mrb[9].mxu0  ;;  %v1510_v63 = vpop.f32.mrb[9].mxu1  ;;  %v1515_v55 = vadd.f32 %v2539_v36, %v1508_v12 }
 0x540   : > { %v1514_v27 = vadd.f32 %v2538_v4, %v1439_v50  ;;  %v1516_v19 = vadd.f32 %v2540_v60, %v1510_v63 }
 0x541   : > { %v2541_v39 = vmul.f32 -1.442695, %v1513_v47 }
 0x542   : > { %v2542_v57 = vmul.f32 -1.442695, %v1514_v27  ;;  %v2543_v22 = vmul.f32 -1.442695, %v1516_v19 }
 0x543   : > { %3212 = vpow2.f32 %v2541_v39 }
 0x544   : > { %3214 = vpow2.f32 %v2542_v57 }
 0x545   : > { %3216 = vpow2.f32 %v2543_v22 }
 0x546   : > { %3218 = vtanh.f32 %v1515_v55  ;;  %v2074_v55 = vld [vmem:[%s4465_s1 + $0x100] sm:$0xff] }
 0x54d   : > { %v3213_v25 = vpop.eup %3212 }
 0x54e   : > { %v3215_v26 = vpop.eup %3214  ;;  %v1520_v29 = vadd.f32 1.0, %v3213_v25  ;;  %v2078_v25 = vld [vmem:[%s4465_s1 + $0x120] sm:$0xff] }
 0x54f   : > { %v1526_v30 = vadd.f32 1.0, %v3215_v26  ;;  %v3217_v34 = vpop.eup %3216  ;;  %v3044_v26 = vpack.c.bf16 %v2078_v25, %v2074_v55 }
 0x550   : > { %3220 = vrcp.f32 %v1520_v29  ;;  %v3219_v37 = vpop.eup %3218  ;;  %v1533_v17 = vadd.f32 1.0, %v3217_v34  ;;  %v2083_v29 = vld [vmem:[%s4465_s1 + $0x148] sm:$0xff] }
 0x551   : > { %3222 = vrcp.f32 %v1526_v30  ;;  %v2087_v30 = vld [vmem:[%s4465_s1 + $0x168] sm:$0xff] }
 0x552   : > { %3224 = vrcp.f32 %v1533_v17  ;;  %v3046_v34 = vpack.c.bf16 %v2087_v30, %v2083_v29  ;;  %v2095_v17 = vld [vmem:[%s4465_s1 + $0x1a8] sm:$0xff] }
 0x55a   : > { %v3221_v44 = vpop.eup %3220 }
 0x55b   : > { %v3223_v41 = vpop.eup %3222  ;;  %v1537_v2 = vmul.f32 %v3221_v44, %v3219_v37  ;;  %v2082_v37 = vld [vmem:[%s4465_s1 + $0x140] sm:$0xff] }
 0x55c   : > { %v1536_v33 = vmul.f32 %v3223_v41, %v4227_v0  ;;  %v3225_v10 = vpop.eup %3224  ;;  %v2086_v44 = vld [vmem:[%s4465_s1 + $0x160] sm:$0xff] }
 0x55d   : > { %v3048_v41 = vpack.c.bf16 %v2086_v44, %v2082_v37 }
 0x55e   : > { %v4270_v48 = vadd.f32 %v1537_v2, %v1536_v33  ;;  %v2091_v2 = vld [vmem:[%s4465_s1 + $0x188] sm:$0xff] }
 0x55f   : > { %v3050_v33 = vpack.c.bf16 %v2095_v17, %v2091_v2 }
 0x560   : > { %3226 = vtanh.f32 %v4270_v48 }
 0x56a   : > { %v3227_v46 = vpop.eup %3226 }
 0x56b   : > { %v1540_v54 = vmul.f32 %v3227_v46, %v3225_v10  ;;  %v2094_v10 = vld [vmem:[%s4465_s1 + $0x1a0] sm:$0xff] }
 0x56d   : > { %2544 = vst [vmem:[%s3509_s12 + $0x20] sm:$0xff] %v1540_v54  ;;  %1681 = vmatmul.mubr.f32.vlgmr.msra.gmra.mrb[10].mxu0 %v1540_v54  ;;  %1752 = vmatmul.mubr.f32.vlgmr.msra.gmra.mrb[10].mxu1 %v1540_v54  ;;  %v2099_v54 = vld [vmem:[%s4465_s1 + $0x1c8] sm:$0xff] }
 0x56e   : > { %2965 = vmatpush1.bf16.msra.mxu0 %v4058_v53  ;;  %2997 = vmatpush1.bf16.msra.mxu1 %v4067_v62 }
 0x56f   : > { %2967 = vmatprep.subr.bf16.mxu0 %v4081_v13  ;;  %2999 = vmatprep.subr.bf16.mxu1 %v4092_v11 }
 0x570   : > { %1925 = vmatprep.mubr.f32.mxu0 %v3333_v40  ;;  %1996 = vmatprep.mubr.f32.mxu1 %v3333_v40 }
 0x572   : > { %2969 = vmatpush1.bf16.msra.mxu0 %v3914_v58  ;;  %3001 = vmatpush1.bf16.msra.mxu1 %v4094_v24  ;;  %v2545_v58 = vld [vmem:[%s3507_s11 + $0xa0] sm:$0xff] }
 0x573   : > { %2971 = vmatprep.subr.bf16.mxu0 %v3923_v14  ;;  %3003 = vmatprep.subr.bf16.mxu1 %v4107_v43  ;;  %v2546_v14 = vld [vmem:[%s3507_s11 + $0xa8] sm:$0xff] }
 0x576   : > { %2973 = vmatpush1.bf16.msra.mxu0 %v3931_v31  ;;  %3005 = vmatpush1.bf16.msra.mxu1 %v4115_v8 }
 0x577   : > { %2975 = vmatprep.subr.bf16.mxu0 %v3941_v51  ;;  %3007 = vmatprep.subr.bf16.mxu1 %v4127_v20 }
 0x57a   : > { %2977 = vmatpush1.bf16.msra.mxu0 %v3949_v9  ;;  %3009 = vmatpush1.bf16.msra.mxu1 %v4135_v23 }
 0x57b   : > { %2979 = vmatprep.subr.bf16.mxu0 %v3959_v45  ;;  %3011 = vmatprep.subr.bf16.mxu1 %v4147_v28 }
 0x57e   : > { %2981 = vmatpush1.bf16.msra.mxu0 %v3967_v52  ;;  %3013 = vmatpush1.bf16.msra.mxu1 %v4155_v32 }
 0x57f   : > { %2983 = vmatprep.subr.bf16.mxu0 %v3977_v56  ;;  %3015 = vmatprep.subr.bf16.mxu1 %v4167_v38 }
 0x582   : > { %2985 = vmatpush1.bf16.msra.mxu0 %v3985_v3  ;;  %3017 = vmatpush1.bf16.msra.mxu1 %v4175_v42 }
 0x583   : > { %2987 = vmatprep.subr.bf16.mxu0 %v3995_v7  ;;  %3019 = vmatprep.subr.bf16.mxu1 %v4187_v21 }
 0x586   : > { %2989 = vmatpush1.bf16.msra.mxu0 %v4003_v16  ;;  %3021 = vmatpush1.bf16.msra.mxu1 %v4195_v35  ;;  %v2548_v16 = vld [vmem:[%s3507_s11 + $0xb8] sm:$0xff] }
 0x587   : > { %2991 = vmatprep.subr.bf16.mxu0 %v4013_v59  ;;  %3023 = vmatprep.subr.bf16.mxu1 %v4207_v18 }
 0x58a   : > { %2993 = vmatpush1.bf16.msra.mxu0 %v4021_v15  ;;  %3025 = vmatpush1.bf16.msra.mxu1 %v4215_v61  ;;  %v2547_v15 = vld [vmem:[%s3507_s11 + $0xb0] sm:$0xff] }
 0x58b   : > { %3027 = vmatprep.subr.bf16.mxu0 %v4045_v1  ;;  %3059 = vmatprep.subr.bf16.mxu1 %v4056_v49 }
 0x640   : > { %v1682_v31 = vpop.f32.mrb[10].mxu0  ;;  %v1753_v51 = vpop.f32.mrb[10].mxu1 }
 0x641   : > { %v1758_v9 = vadd.f32 %v2545_v58, %v1682_v31  ;;  %v1684_v45 = vpop.f32.mrb[11].mxu0  ;;  %v1755_v52 = vpop.f32.mrb[11].mxu1  ;;  %v1760_v1 = vadd.f32 %v2547_v15, %v1753_v51  ;;  %v2103_v58 = vld [vmem:[%s4465_s1 + $0x1e8] sm:$0xff]  ;;  %v2098_v31 = vld [vmem:[%s4465_s1 + $0x1c0] sm:$0xff] }
 0x642   : > { %v1759_v56 = vadd.f32 %v2546_v14, %v1684_v45  ;;  %v1761_v59 = vadd.f32 %v2548_v16, %v1755_v52  ;;  %v3054_v14 = vpack.c.bf16 %v2103_v58, %v2099_v54  ;;  %v2102_v51 = vld [vmem:[%s4465_s1 + $0x1e0] sm:$0xff]  ;;  %v2553_v45 = vld [vmem:[%s3507_s11 + $0xc0] sm:$0xff]  ;;  %v2554_v52 = vld [vmem:[%s3507_s11 + $0xc8] sm:$0xff] }
 0x643   : > { %v2549_v3 = vmul.f32 -1.442695, %v1758_v9  ;;  %v3056_v9 = vpack.c.bf16 %v2102_v51, %v2098_v31 }
 0x644   : > { %v2550_v7 = vmul.f32 -1.442695, %v1759_v56  ;;  %v2551_v0 = vmul.f32 -1.442695, %v1761_v59 }
 0x645   : > { %3228 = vpow2.f32 %v2549_v3 }
 0x646   : > { %3230 = vpow2.f32 %v2550_v7 }
 0x647   : > { %3232 = vpow2.f32 %v2551_v0 }
 0x648   : > { %3234 = vtanh.f32 %v1760_v1 }
 0x64f   : > { %v3229_v6 = vpop.eup %3228 }
 0x650   : > { %v3231_v4 = vpop.eup %3230  ;;  %v1765_v49 = vadd.f32 1.0, %v3229_v6  ;;  %v2556_v6 = vld [vmem:[%s3507_s11 + $0xd8] sm:$0xff] }
 0x651   : > { %v1771_v5 = vadd.f32 1.0, %v3231_v4  ;;  %v3233_v12 = vpop.eup %3232 }
 0x652   : > { %3236 = vrcp.f32 %v1765_v49  ;;  %v3235_v47 = vpop.eup %3234  ;;  %v1778_v39 = vadd.f32 1.0, %v3233_v12  ;;  %v2555_v49 = vld [vmem:[%s3507_s11 + $0xd0] sm:$0xff] }
 0x653   : > { %3238 = vrcp.f32 %v1771_v5 }
 0x654   : > { %3240 = vrcp.f32 %v1778_v39 }
 0x65c   : > { %v3237_v50 = vpop.eup %3236 }
 0x65d   : > { %v3239_v63 = vpop.eup %3238  ;;  %v1782_v27 = vmul.f32 %v3237_v50, %v3235_v47 }
 0x65e   : > { %v1781_v57 = vmul.f32 %v3239_v63, %v4270_v48  ;;  %v3241_v19 = vpop.eup %3240  ;;  %v2090_v48 = vld [vmem:[%s4465_s1 + $0x180] sm:$0xff] }
 0x65f   : > { %v3052_v46 = vpack.c.bf16 %v2094_v10, %v2090_v48 }
 0x660   : > { %v4313_v60 = vadd.f32 %v1782_v27, %v1781_v57 }
 0x662   : > { %3242 = vtanh.f32 %v4313_v60 }
 0x66c   : > { %v3243_v36 = vpop.eup %3242 }
 0x66d   : > { %v1785_v22 = vmul.f32 %v3243_v36, %v3241_v19 }
 0x66f   : > { %2552 = vst [vmem:[%s3509_s12 + $0x28] sm:$0xff] %v1785_v22  ;;  %1926 = vmatmul.mubr.f32.vlgmr.msra.gmra.mrb[12].mxu0 %v1785_v22  ;;  %1997 = vmatmul.mubr.f32.vlgmr.msra.gmra.mrb[12].mxu1 %v1785_v22 }
 0x670   : > { %3029 = vmatpush1.bf16.msra.mxu0 %v4058_v53  ;;  %3061 = vmatpush1.bf16.msra.mxu1 %v4067_v62  ;;  %v2054_v53 = vld [vmem:[%s4465_s1 + $0x60] sm:$0xff] }
 0x671   : > { %3031 = vmatprep.subr.bf16.mxu0 %v4081_v13  ;;  %3063 = vmatprep.subr.bf16.mxu1 %v4092_v11  ;;  %v2059_v13 = vld [vmem:[%s4465_s1 + $0x88] sm:$0xff] }
 0x672   : > { %2170 = vmatprep.mubr.f32.mxu0 %v3333_v40  ;;  %2241 = vmatprep.mubr.f32.mxu1 %v3333_v40  ;;  %v2050_v40 = vld [vmem:[%s4465_s1 + $0x40] sm:$0xff]  ;;  %v2063_v11 = vld [vmem:[%s4465_s1 + $0xa8] sm:$0xff] }
 0x673   : > { %v3032_v62 = vpack.c.bf16 %v2054_v53, %v2050_v40 }
 0x674   : > { %3065 = vmatpush1.bf16.msra.mxu1 %v4094_v24  ;;  %v3034_v24 = vpack.c.bf16 %v2063_v11, %v2059_v13 }
 0x675   : > { %3067 = vmatprep.subr.bf16.mxu1 %v4107_v43  ;;  %3033 = vmatpush1.bf16.msra.mxu0 %v3032_v62  ;;  %v2058_v43 = vld [vmem:[%s4465_s1 + $0x80] sm:$0xff] }
 0x676   : > { %3035 = vmatprep.subr.bf16.mxu0 %v3034_v24 }
 0x678   : > { %3069 = vmatpush1.bf16.msra.mxu1 %v4115_v8  ;;  %v2062_v8 = vld [vmem:[%s4465_s1 + $0xa0] sm:$0xff] }
 0x679   : > { %3071 = vmatprep.subr.bf16.mxu1 %v4127_v20  ;;  %v3036_v20 = vpack.c.bf16 %v2062_v8, %v2058_v43  ;;  %v2561_v43 = vld [vmem:[%s3507_s11 + $0xe0] sm:$0xff]  ;;  %v2562_v8 = vld [vmem:[%s3507_s11 + $0xe8] sm:$0xff] }
 0x67b   : > { %3037 = vmatpush1.bf16.msra.mxu0 %v3036_v20 }
 0x67c   : > { %3073 = vmatpush1.bf16.msra.mxu1 %v4135_v23  ;;  %v2067_v23 = vld [vmem:[%s4465_s1 + $0xc8] sm:$0xff] }
 0x67d   : > { %3075 = vmatprep.subr.bf16.mxu1 %v4147_v28  ;;  %v2071_v28 = vld [vmem:[%s4465_s1 + $0xe8] sm:$0xff] }
 0x680   : > { %3077 = vmatpush1.bf16.msra.mxu1 %v4155_v32  ;;  %v3038_v32 = vpack.c.bf16 %v2071_v28, %v2067_v23 }
 0x681   : > { %3079 = vmatprep.subr.bf16.mxu1 %v4167_v38  ;;  %v2066_v38 = vld [vmem:[%s4465_s1 + $0xc0] sm:$0xff] }
 0x682   : > { %3039 = vmatprep.subr.bf16.mxu0 %v3038_v32 }
 0x684   : > { %3081 = vmatpush1.bf16.msra.mxu1 %v4175_v42  ;;  %v2070_v42 = vld [vmem:[%s4465_s1 + $0xe0] sm:$0xff] }
 0x685   : > { %3083 = vmatprep.subr.bf16.mxu1 %v4187_v21  ;;  %v3040_v21 = vpack.c.bf16 %v2070_v42, %v2066_v38 }
 0x687   : > { %3041 = vmatpush1.bf16.msra.mxu0 %v3040_v21 }
 0x688   : > { %3085 = vmatpush1.bf16.msra.mxu1 %v4195_v35  ;;  %v2075_v35 = vld [vmem:[%s4465_s1 + $0x108] sm:$0xff] }
 0x689   : > { %3087 = vmatprep.subr.bf16.mxu1 %v4207_v18  ;;  %v2079_v18 = vld [vmem:[%s4465_s1 + $0x128] sm:$0xff] }
 0x68c   : > { %3089 = vmatpush1.bf16.msra.mxu1 %v4215_v61  ;;  %v3042_v61 = vpack.c.bf16 %v2079_v18, %v2075_v35  ;;  %v2564_v35 = vld [vmem:[%s3507_s11 + $0xf8] sm:$0xff] }
 0x68e   : > { %3043 = vmatprep.subr.bf16.mxu0 %v3042_v61  ;;  %v2563_v61 = vld [vmem:[%s3507_s11 + $0xf0] sm:$0xff] }
 0x68f   : > { %3045 = vmatpush1.bf16.msra.mxu0 %v3044_v26 }
 0x690   : > { %3047 = vmatprep.subr.bf16.mxu0 %v3046_v34 }
 0x693   : > { %3049 = vmatpush1.bf16.msra.mxu0 %v3048_v41 }
 0x694   : > { %3051 = vmatprep.subr.bf16.mxu0 %v3050_v33 }
 0x697   : > { %3053 = vmatpush1.bf16.msra.mxu0 %v3052_v46 }
 0x698   : > { %3055 = vmatprep.subr.bf16.mxu0 %v3054_v14 }
 0x69b   : > { %3057 = vmatpush1.bf16.msra.mxu0 %v3056_v9 }
 0x742   : > { %v1927_v56 = vpop.f32.mrb[12].mxu0  ;;  %v1998_v3 = vpop.f32.mrb[12].mxu1 }
 0x743   : > { %v2003_v7 = vadd.f32 %v2553_v45, %v1927_v56  ;;  %v1929_v16 = vpop.f32.mrb[13].mxu0  ;;  %v2000_v59 = vpop.f32.mrb[13].mxu1  ;;  %v2005_v12 = vadd.f32 %v2555_v49, %v1998_v3 }
 0x744   : > { %v2004_v15 = vadd.f32 %v2554_v52, %v1929_v16  ;;  %v2006_v4 = vadd.f32 %v2556_v6, %v2000_v59 }
 0x745   : > { %v2557_v0 = vmul.f32 -1.442695, %v2003_v7 }
 0x746   : > { %v2558_v1 = vmul.f32 -1.442695, %v2004_v15  ;;  %v2559_v5 = vmul.f32 -1.442695, %v2006_v4 }
 0x747   : > { %3244 = vpow2.f32 %v2557_v0 }
 0x748   : > { %3246 = vpow2.f32 %v2558_v1 }
 0x749   : > { %3248 = vpow2.f32 %v2559_v5 }
 0x74a   : > { %3250 = vtanh.f32 %v2005_v12 }
 0x751   : > { %v3245_v47 = vpop.eup %3244 }
 0x752   : > { %v3247_v50 = vpop.eup %3246  ;;  %v2010_v63 = vadd.f32 1.0, %v3245_v47 }
 0x753   : > { %v2016_v27 = vadd.f32 1.0, %v3247_v50  ;;  %v3249_v39 = vpop.eup %3248 }
 0x754   : > { %3252 = vrcp.f32 %v2010_v63  ;;  %v3251_v57 = vpop.eup %3250  ;;  %v2023_v40 = vadd.f32 1.0, %v3249_v39 }
 0x755   : > { %3254 = vrcp.f32 %v2016_v27 }
 0x756   : > { %3256 = vrcp.f32 %v2023_v40 }
 0x75e   : > { %v3253_v19 = vpop.eup %3252 }
 0x75f   : > { %v3255_v36 = vpop.eup %3254  ;;  %v2027_v22 = vmul.f32 %v3253_v19, %v3251_v57 }
 0x760   : > { %v2026_v53 = vmul.f32 %v3255_v36, %v4313_v60  ;;  %v3257_v13 = vpop.eup %3256 }
 0x762   : > { %v2028_v62 = vadd.f32 %v2027_v22, %v2026_v53 }
 0x764   : > { %3258 = vtanh.f32 %v2028_v62 }
 0x76e   : > { %v3259_v11 = vpop.eup %3258 }
 0x76f   : > { %v2030_v24 = vmul.f32 %v3259_v11, %v3257_v13 }
 0x771   : > { %2560 = vst [vmem:[%s3509_s12 + $0x30] sm:$0xff] %v2030_v24  ;;  %2171 = vmatmul.mubr.f32.vlgmr.msra.gmra.mrb[14].mxu0 %v2030_v24  ;;  %2242 = vmatmul.mubr.f32.vlgmr.msra.gmra.mrb[14].mxu1 %v2030_v24 }
 0x844   : > { %v2172_v20 = vpop.f32.mrb[14].mxu0  ;;  %v2243_v23 = vpop.f32.mrb[14].mxu1 }
 0x845   : > { %v2248_v28 = vadd.f32 %v2561_v43, %v2172_v20  ;;  %v2174_v32 = vpop.f32.mrb[15].mxu0  ;;  %v2245_v38 = vpop.f32.mrb[15].mxu1  ;;  %v2250_v25 = vadd.f32 %v2563_v61, %v2243_v23 }
 0x846   : > { %v2249_v42 = vadd.f32 %v2562_v8, %v2174_v32  ;;  %v2251_v18 = vadd.f32 %v2564_v35, %v2245_v38 }
 0x847   : > { %v2565_v60 = vmul.f32 -1.442695, %v2248_v28 }
 0x848   : > { %v2566_v21 = vmul.f32 -1.442695, %v2249_v42  ;;  %v2567_v55 = vmul.f32 -1.442695, %v2251_v18 }
 0x849   : > { %3260 = vpow2.f32 %v2565_v60 }
 0x84a   : > { %3262 = vpow2.f32 %v2566_v21 }
 0x84b   : > { %3264 = vpow2.f32 %v2567_v55 }
 0x84c   : > { %3266 = vtanh.f32 %v2250_v25 }
 0x853   : > { %v3261_v26 = vpop.eup %3260 }
 0x854   : > { %v3263_v29 = vpop.eup %3262  ;;  %v2255_v30 = vadd.f32 1.0, %v3261_v26 }
 0x855   : > { %v2261_v34 = vadd.f32 1.0, %v3263_v29  ;;  %v3265_v37 = vpop.eup %3264 }
 0x856   : > { %3268 = vrcp.f32 %v2255_v30  ;;  %v3267_v44 = vpop.eup %3266  ;;  %v2268_v33 = vadd.f32 1.0, %v3265_v37 }
 0x857   : > { %3270 = vrcp.f32 %v2261_v34 }
 0x858   : > { %3272 = vrcp.f32 %v2268_v33 }
 0x860   : > { %v3269_v41 = vpop.eup %3268 }
 0x861   : > { %v3271_v2 = vpop.eup %3270  ;;  %v2272_v17 = vmul.f32 %v3269_v41, %v3267_v44 }
 0x862   : > { %v2271_v48 = vmul.f32 %v3271_v2, %v2028_v62  ;;  %v3273_v46 = vpop.eup %3272 }
 0x864   : > { %v2273_v10 = vadd.f32 %v2272_v17, %v2271_v48 }
 0x866   : > { %3274 = vtanh.f32 %v2273_v10  ;;  %2277 = vst [vmem:[#allocation3] sm:$0xff] %v2273_v10 }
 0x86d   : > { %2283 = sbr.rel (%p2569_p0) target bundleno = 2172 (0x87c), region = 59  ;;  %v2286_v31 = vld [vmem:[#allocation3] sm:$0xff] (!%p2569_p0) }
 0x86e   : > { %2287 = vst [vmem:[%s3505_s10] sm:$0xff] (!%p2569_p0), %v2286_v31 }
 0x870   : > { %v3275_v54 = vpop.eup %3274 }
 0x871   : > { %v2275_v58 = vmul.f32 %v3275_v54, %v3273_v46 }
 0x873   : > { %2276 = vst [vmem:[#allocation2] sm:$0xff] %v2275_v58  ;;  %2568 = vst [vmem:[%s3509_s12 + $0x38] sm:$0xff] %v2275_v58 }
 0x87a   : > { %v2284_v14 = vld [vmem:[#allocation2] sm:$0xff] }
 0x87b   : > { %2285 = vst [vmem:[%s3500_s7] sm:$0xff] %v2284_v14 }
 0x87c PF: > { %2302 = sbr.rel (!%p3407_p6) target bundleno = 2180 (0x884), region = 63  ;;  %s2577_s11 = sshll.u32 (%p3407_p6), %s3314_s17, 4  ;;  %v2349_v51 = vld [vmem:[%s3509_s12] sm:$0xff] (%p3407_p6)  ;;  %v2351_v9 = vld [vmem:[%s3509_s12 + $0x8] sm:$0xff] (%p3407_p6)  ;;  %v2353_v45 = vld [vmem:[%s3509_s12 + $0x10] sm:$0xff] (%p3407_p6) }
 0x87d   : > { %s2305_s7 = sadd.s32 (%p3407_p6), %s3318_s18, %s2577_s11  ;;  %v2355_v52 = vld [vmem:[%s3509_s12 + $0x18] sm:$0xff] (%p3407_p6)  ;;  %v2357_v56 = vld [vmem:[%s3509_s12 + $0x20] sm:$0xff] (%p3407_p6)  ;;  %v2359_v3 = vld [vmem:[%s3509_s12 + $0x28] sm:$0xff] (%p3407_p6) }
 0x87e   : > { %s2573_s26 = sshll.u32 (%p3407_p6), %s2305_s7, 3  ;;  %v2361_v7 = vld [vmem:[%s3509_s12 + $0x30] sm:$0xff] (%p3407_p6) }
 0x87f   : > { %s2307_s6 = scalar_lea.vmem (%p3407_p6), %s4466_s2, %s2573_s26 }
 0x880   : > { %2350 = vst [vmem:[%s2307_s6] sm:$0xff] (%p3407_p6), %v2349_v51  ;;  %2352 = vst [vmem:[%s2307_s6 + $0x10] sm:$0xff] (%p3407_p6), %v2351_v9 }
 0x881   : > { %2354 = vst [vmem:[%s2307_s6 + $0x20] sm:$0xff] (%p3407_p6), %v2353_v45  ;;  %2356 = vst [vmem:[%s2307_s6 + $0x30] sm:$0xff] (%p3407_p6), %v2355_v52 }
 0x882   : > { %v2363_v16 = vld [vmem:[%s3509_s12 + $0x38] sm:$0xff] (%p3407_p6)  ;;  %2358 = vst [vmem:[%s2307_s6 + $0x40] sm:$0xff] (%p3407_p6), %v2357_v56  ;;  %2360 = vst [vmem:[%s2307_s6 + $0x50] sm:$0xff] (%p3407_p6), %v2359_v3 }
 0x883   : > { %2362 = vst [vmem:[%s2307_s6 + $0x60] sm:$0xff] %v2361_v7  ;;  %2364 = vst [vmem:[%s2307_s6 + $0x70] sm:$0xff] %v2363_v16 }
 0x884 PF: > { %s15_s21 = sadd.s32 1, %s3330_s21   ;;  %s4470_s15 = smov %s3310_s16 }
 0x885   : > { %p12_p1 = scmp.ge.s32.totalorder %s15_s21, 6   ;;  %s4471_s16 = smov %s3415_s30 }
 0x886   : > { %s4472_s17 = smov %s3322_s19  ;;  %s4473_s18 = smov %s3326_s20 }
 0x887   : > { %s4474_s19 = smov %s4477_s22  ;;  %s4475_s20 = smov %s4481_s23 }
 0x888   :  { %14 = sbr.rel (!%p12_p1) target bundleno = 4 (0x4), region = 170 }

// kernel: encoder_forward.3
= control target key start
LH: loop header
LB: loop body
LE: loop exit
PB: predicated region body
PF: predicated region fallthrough
CT: control target
= control target key end

     0   :  { %s4533_s0 = inlined_call_operand.vmem [shape: f32[16,16,512], index: 0, kind: input, shape index: {}]   ;;  %s4534_s1 = inlined_call_operand.vmem [shape: f32[128,512], index: 1, kind: input, shape index: {}]   ;;  %s4535_s2 = inlined_call_operand.hbm [shape: f32[16,16,128], index: 2, kind: output, shape index: {0}]   ;;  %s4536_s3 = inlined_call_operand.vmem [shape: f32[16,128], index: 3, kind: output, shape index: {1}]   ;;  %s4537_s4 = inlined_call_operand.vmem [shape: f32[16,128], index: 4, kind: output, shape index: {2}]  }
   0x1   :  { %4538 = sst [smem:[#allocation8_spill]] %s4533_s0 }
   0x2   :  { %4539 = sst [smem:[#allocation9_spill]] %s4536_s3 }
   0x3   :  { %10 = vsyncpa [#allocation6], 0 }
   0x4   :  { %12 = vsyncpa [#allocation6 + $0x1], 0  ;;  %s3380_s15 = smov 0   ;;  %s3382_s16 = smov 0  }
   0x5   :  { %s3384_s17 = smov 0   ;;  %s3386_s18 = smov 0  }
   0x6   :  { %s3388_s19 = smov 0   ;;  %s3390_s20 = smov 0  }
   0x7   :  { %s3392_s21 = smov 0   ;;  %s3394_s22 = smov 0  }
   0x8 LB: > { %s2454_s23 = sadd.s32 4294967295, %s3347_s22   ;;  %s2455_s24 = sadd.s32 4294967294, %s3347_s22   ;;  %s3347_s22 = sphi %s3394_s22, %s18_s22   ;;  %s3343_s21 = sphi %s3392_s21, %s4551_s21   ;;  %s3339_s20 = sphi %s3390_s20, %s4550_s20   ;;  %s3335_s19 = sphi %s3388_s19, %s4549_s19   ;;  %s3331_s18 = sphi %s3386_s18, %s4548_s18   ;;  %s3327_s17 = sphi %s3384_s17, %s4547_s17   ;;  %s3323_s16 = sphi %s3382_s16, %s4546_s16   ;;  %s3319_s15 = sphi %s3380_s15, %s4545_s15  }
   0x9   : > { %s27_s25 = sadd.s32 1, %s3339_s20  ;;  %s30_s26 = sadd.s32 1, %s3343_s21 }
   0xa   : > { %p28_p0 = scmp.ge.s32.totalorder %s27_s25, 2  ;;  %p46_p1 = scmp.ne.s32.totalorder %s3327_s17, %s3323_s16 }
   0xb   : > { %p47_p2 = scmp.eq.s32.totalorder %s3347_s22, 0  ;;  %p99_p5 = scmp.eq.s32.totalorder %s2454_s23, 3 }
   0xc   : > { %s4553_s25 = smov (%p28_p0, %s27_s25), 0  ;;  %s4555_s26 = smov (!%p28_p0, %s30_s26), %s3343_s21 }
   0xd   : > { %s34_s27 = ssub.s32 %s3339_s20, %s4553_s25  ;;  %p3432_p3 = por %p47_p2, %p46_p1 }
   0xe   : > { %p32_p4 = scmp.ge.s32.totalorder %s4555_s26, 2  ;;  %p104_p6 = scmp.ne.s32.totalorder %s3323_s16, %s3319_s15 }
   0xf   : > { %p105_p7 = scmp.eq.s32.totalorder %s2455_s24, 3  ;;  %p3440_p8 = por %p99_p5, %p46_p1 }
  0x10   : > { %s4557_s26 = smov (%p32_p4, %s4555_s26), 0  ;;  %s39_s7 = sadd.s32 1, %s3327_s17 }
  0x11   : > { %p3444_p9 = por %p105_p7, %p104_p6  ;;  %s35_s5 = ssub.s32 %s3343_s21, %s4557_s26 }
  0x12   : > { %s36_s6 = sor.u32 %s35_s5, %s34_s27  ;;  %p2457_p11 = scmp.ge.s32.totalorder %s3347_s22, 4 }
  0x13   : > { %p37_p10 = scmp.eq.s32.totalorder %s36_s6, 0 }
  0x14   : > { %176 = sbr.rel (%p2457_p11) target bundleno = 53 (0x35), region = 20 }
  0x15   : > { %s3452_s8 = scalar_select %p37_p10, %s3327_s17, %s39_s7  }
  0x1b   : > { %179 = sbr.rel (!%p3432_p3) target bundleno = 53 (0x35), region = 24  ;;  %s181_s9 = sand.u32 (%p3432_p3), 1, %s3327_s17  }
  0x1c   : > { %s2460_s10 = sshll.u32 (%p3432_p3), %s3343_s21, 2  ;;  %s2458_s11 = sshll.u32 (%p3432_p3), %s181_s9, 8 }
  0x1d   : > { %s2535_s12 = sshll.u32 (%p3432_p3), %s3339_s20, 6  ;;  %s4543_s0 = sld [smem:[#allocation8_spill]] (%p3432_p3) }
  0x1e   : > { %s187_s13 = sadd.s32 (%p3432_p3), %s2535_s12, %s2460_s10  ;;  %s3468_s28 = scalar_lea.vmem (%p3432_p3), [#allocation4], %s2458_s11 }
  0x1f   : > { %s2462_s14 = sshll.u32 (%p3432_p3), %s187_s13, 3 }
  0x23   : > { %s3463_s27 = scalar_lea.vmem %s4543_s0, %s2462_s14 }
  0x24   : > { %v202_v0 = vld [vmem:[%s3463_s27] sm:$0xff]  ;;  %v204_v1 = vld [vmem:[%s3463_s27 + $0x8] sm:$0xff]  ;;  %v206_v2 = vld [vmem:[%s3463_s27 + $0x10] sm:$0xff] }
  0x25   : > { %203 = vst [vmem:[%s3468_s28] sm:$0xff] %v202_v0  ;;  %205 = vst [vmem:[%s3468_s28 + $0x8] sm:$0xff] %v204_v1  ;;  %v208_v3 = vld [vmem:[%s3463_s27 + $0x18] sm:$0xff]  ;;  %v210_v4 = vld [vmem:[%s3463_s27 + $0x40] sm:$0xff] }
  0x26   : > { %207 = vst [vmem:[%s3468_s28 + $0x10] sm:$0xff] %v206_v2  ;;  %v212_v5 = vld [vmem:[%s3463_s27 + $0x48] sm:$0xff]  ;;  %209 = vst [vmem:[%s3468_s28 + $0x18] sm:$0xff] %v208_v3  ;;  %v214_v6 = vld [vmem:[%s3463_s27 + $0x50] sm:$0xff] }
  0x27   : > { %211 = vst [vmem:[%s3468_s28 + $0x20] sm:$0xff] %v210_v4  ;;  %213 = vst [vmem:[%s3468_s28 + $0x28] sm:$0xff] %v212_v5  ;;  %v216_v7 = vld [vmem:[%s3463_s27 + $0x58] sm:$0xff]  ;;  %v218_v8 = vld [vmem:[%s3463_s27 + $0x80] sm:$0xff] }
  0x28   : > { %215 = vst [vmem:[%s3468_s28 + $0x30] sm:$0xff] %v214_v6  ;;  %217 = vst [vmem:[%s3468_s28 + $0x38] sm:$0xff] %v216_v7  ;;  %v220_v9 = vld [vmem:[%s3463_s27 + $0x88] sm:$0xff]  ;;  %v222_v10 = vld [vmem:[%s3463_s27 + $0x90] sm:$0xff] }
  0x29   : > { %219 = vst [vmem:[%s3468_s28 + $0x40] sm:$0xff] %v218_v8  ;;  %v224_v11 = vld [vmem:[%s3463_s27 + $0x98] sm:$0xff]  ;;  %221 = vst [vmem:[%s3468_s28 + $0x48] sm:$0xff] %v220_v9  ;;  %v226_v12 = vld [vmem:[%s3463_s27 + $0xc0] sm:$0xff] }
  0x2a   : > { %223 = vst [vmem:[%s3468_s28 + $0x50] sm:$0xff] %v222_v10  ;;  %225 = vst [vmem:[%s3468_s28 + $0x58] sm:$0xff] %v224_v11  ;;  %v228_v13 = vld [vmem:[%s3463_s27 + $0xc8] sm:$0xff]  ;;  %v230_v14 = vld [vmem:[%s3463_s27 + $0xd0] sm:$0xff] }
  0x2b   : > { %227 = vst [vmem:[%s3468_s28 + $0x60] sm:$0xff] %v226_v12  ;;  %229 = vst [vmem:[%s3468_s28 + $0x68] sm:$0xff] %v228_v13  ;;  %v232_v15 = vld [vmem:[%s3463_s27 + $0xd8] sm:$0xff]  ;;  %v234_v16 = vld [vmem:[%s3463_s27 + $0x100] sm:$0xff] }
  0x2c   : > { %231 = vst [vmem:[%s3468_s28 + $0x70] sm:$0xff] %v230_v14  ;;  %v236_v17 = vld [vmem:[%s3463_s27 + $0x108] sm:$0xff]  ;;  %233 = vst [vmem:[%s3468_s28 + $0x78] sm:$0xff] %v232_v15  ;;  %v238_v18 = vld [vmem:[%s3463_s27 + $0x110] sm:$0xff] }
  0x2d   : > { %235 = vst [vmem:[%s3468_s28 + $0x80] sm:$0xff] %v234_v16  ;;  %237 = vst [vmem:[%s3468_s28 + $0x88] sm:$0xff] %v236_v17  ;;  %v240_v19 = vld [vmem:[%s3463_s27 + $0x118] sm:$0xff]  ;;  %v242_v20 = vld [vmem:[%s3463_s27 + $0x140] sm:$0xff] }
  0x2e   : > { %239 = vst [vmem:[%s3468_s28 + $0x90] sm:$0xff] %v238_v18  ;;  %241 = vst [vmem:[%s3468_s28 + $0x98] sm:$0xff] %v240_v19  ;;  %v244_v21 = vld [vmem:[%s3463_s27 + $0x148] sm:$0xff]  ;;  %v246_v22 = vld [vmem:[%s3463_s27 + $0x150] sm:$0xff] }
  0x2f   : > { %243 = vst [vmem:[%s3468_s28 + $0xa0] sm:$0xff] %v242_v20  ;;  %v248_v23 = vld [vmem:[%s3463_s27 + $0x158] sm:$0xff]  ;;  %245 = vst [vmem:[%s3468_s28 + $0xa8] sm:$0xff] %v244_v21  ;;  %v250_v24 = vld [vmem:[%s3463_s27 + $0x180] sm:$0xff] }
  0x30   : > { %247 = vst [vmem:[%s3468_s28 + $0xb0] sm:$0xff] %v246_v22  ;;  %249 = vst [vmem:[%s3468_s28 + $0xb8] sm:$0xff] %v248_v23  ;;  %v252_v25 = vld [vmem:[%s3463_s27 + $0x188] sm:$0xff]  ;;  %v254_v26 = vld [vmem:[%s3463_s27 + $0x190] sm:$0xff] }
  0x31   : > { %251 = vst [vmem:[%s3468_s28 + $0xc0] sm:$0xff] %v250_v24  ;;  %253 = vst [vmem:[%s3468_s28 + $0xc8] sm:$0xff] %v252_v25  ;;  %v256_v27 = vld [vmem:[%s3463_s27 + $0x198] sm:$0xff]  ;;  %v258_v28 = vld [vmem:[%s3463_s27 + $0x1c0] sm:$0xff] }
  0x32   : > { %255 = vst [vmem:[%s3468_s28 + $0xd0] sm:$0xff] %v254_v26  ;;  %v260_v29 = vld [vmem:[%s3463_s27 + $0x1c8] sm:$0xff]  ;;  %257 = vst [vmem:[%s3468_s28 + $0xd8] sm:$0xff] %v256_v27  ;;  %v262_v30 = vld [vmem:[%s3463_s27 + $0x1d0] sm:$0xff] }
  0x33   : > { %259 = vst [vmem:[%s3468_s28 + $0xe0] sm:$0xff] %v258_v28  ;;  %261 = vst [vmem:[%s3468_s28 + $0xe8] sm:$0xff] %v260_v29  ;;  %v264_v31 = vld [vmem:[%s3463_s27 + $0x1d8] sm:$0xff] }
  0x34   : > { %263 = vst [vmem:[%s3468_s28 + $0xf0] sm:$0xff] %v262_v30  ;;  %265 = vst [vmem:[%s3468_s28 + $0xf8] sm:$0xff] %v264_v31 }
  0x35 PF: > { %p2463_p12 = scmp.ge.s32.totalorder %s3347_s22, 1  ;;  %p270_p13 = scmp.lt.s32.totalorder %s3347_s22, 5 }
  0x37   : > { %p271_p0 = pnand %p2463_p12, %p270_p13 }
  0x38   : > { %s3534_s5 = sand.u32 (!%p271_p0), 1, %s3323_s16   ;;  %p312_p1 = scmp.lt.s32.totalorder (!%p271_p0), %s3335_s19, 1 }
  0x39   : > { %274 = sbr.rel (%p271_p0) target bundleno = 2209 (0x8a1), region = 47  ;;  %s2464_s6 = sshll.u32 (!%p271_p0), %s3534_s5, 8 }
  0x3a   : > { %s2465_s7 = sshll.u32 (!%p271_p0), %s3534_s5, 6  ;;  %s4544_s3 = sld [smem:[#allocation9_spill]] (!%p271_p0) }
  0x3b   : > { %s3550_s27 = scalar_lea.vmem (!%p271_p0), [#allocation4], %s2464_s6  ;;  %s3552_s28 = scalar_lea.vmem (!%p271_p0), [#allocation5], %s2465_s7 }
  0x3c   : > { %p2468_p2 = scmp.ne.s32.totalorder (!%p271_p0), %s3331_s18, 0 }
  0x40   : > { %s313_s9 = scalar_select %p312_p1, %s3335_s19, 1 }
  0x41   : > { %323 = sbr.rel (%p2468_p2) target bundleno = 72 (0x48), region = 55  ;;  %v3349_v32 = vmov (!%p2468_p2), 0.0  }
  0x42   : > { %s2466_s10 = sshll.u32 %s313_s9, 3  ;;  %324 = vst [vmem:[#allocation2] sm:$0xff] (!%p2468_p2), %v3349_v32  ;;  %325 = vst [vmem:[#allocation3] sm:$0xff] (!%p2468_p2), %v3349_v32 }
  0x43   : > { %s3543_s13 = scalar_lea.vmem %s4544_s3, %s2466_s10  ;;  %s3548_s24 = scalar_lea.vmem %s4537_s4, %s2466_s10 }
  0x48 PF: > { %v333_v33 = vld [vmem:[%s4534_s1 + $0x8] sm:$0xff]  ;;  %v332_v35 = vld [vmem:[%s4534_s1] sm:$0xff]  ;;  %v3350_v40 = vmov 0.0   ;;  %v335_v52 = vld [vmem:[%s4534_s1 + $0x18] sm:$0xff]  ;;  %p2528_p3 = scmp.ne.s32.totalorder %s3331_s18, 1 }
  0x49   : > { %v337_v34 = vld [vmem:[%s4534_s1 + $0x28] sm:$0xff]  ;;  %v336_v37 = vld [vmem:[%s4534_s1 + $0x20] sm:$0xff]  ;;  %460 = vmatprep.mubr.f32.mxu0 %v3350_v40  ;;  %531 = vmatprep.mubr.f32.mxu1 %v3350_v40  ;;  %v339_v53 = vld [vmem:[%s4534_s1 + $0x38] sm:$0xff] }
  0x4a   : > { %v3564_v36 = vpack.c.bf16 %v337_v34, %v333_v33  ;;  %v341_v38 = vld [vmem:[%s4534_s1 + $0x48] sm:$0xff]  ;;  %v3577_v41 = vpack.c.bf16 %v336_v37, %v332_v35  ;;  %v340_v43 = vld [vmem:[%s4534_s1 + $0x40] sm:$0xff]  ;;  %v3618_v55 = vpack.c.bf16 %v339_v53, %v335_v52  ;;  %v334_v56 = vld [vmem:[%s4534_s1 + $0x10] sm:$0xff] }
  0x4b   : > { %v345_v39 = vld [vmem:[%s4534_s1 + $0x68] sm:$0xff]  ;;  %v344_v44 = vld [vmem:[%s4534_s1 + $0x60] sm:$0xff]  ;;  %v338_v57 = vld [vmem:[%s4534_s1 + $0x30] sm:$0xff] }
  0x4c   : > { %v3579_v42 = vpack.c.bf16 %v345_v39, %v341_v38  ;;  %v349_v45 = vld [vmem:[%s4534_s1 + $0x88] sm:$0xff]  ;;  %2538 = vmatprep.subr.bf16.mxu0 %v3564_v36  ;;  %v3595_v47 = vpack.c.bf16 %v344_v44, %v340_v43  ;;  %v348_v48 = vld [vmem:[%s4534_s1 + $0x80] sm:$0xff]  ;;  %v3626_v58 = vpack.c.bf16 %v338_v57, %v334_v56  ;;  %2570 = vmatprep.subr.bf16.mxu1 %v3618_v55  ;;  %v343_v60 = vld [vmem:[%s4534_s1 + $0x58] sm:$0xff] }
  0x4d   : > { %v353_v46 = vld [vmem:[%s4534_s1 + $0xa8] sm:$0xff]  ;;  %2540 = vmatpush1.bf16.msra.mxu0 %v3577_v41  ;;  %v352_v49 = vld [vmem:[%s4534_s1 + $0xa0] sm:$0xff]  ;;  %v347_v61 = vld [vmem:[%s4534_s1 + $0x78] sm:$0xff] }
  0x4e   : > { %2542 = vmatprep.subr.bf16.mxu0 %v3579_v42  ;;  %v3604_v50 = vpack.c.bf16 %v353_v46, %v349_v45  ;;  %v357_v51 = vld [vmem:[%s4534_s1 + $0xc8] sm:$0xff]  ;;  %v3629_v59 = vpack.c.bf16 %v352_v49, %v348_v48  ;;  %v342_v62 = vld [vmem:[%s4534_s1 + $0x50] sm:$0xff]  ;;  %v356_v0 = vld [vmem:[%s4534_s1 + $0xc0] sm:$0xff]  ;;  %2572 = vmatpush1.bf16.msra.mxu1 %v3626_v58  ;;  %v3651_v2 = vpack.c.bf16 %v347_v61, %v343_v60 }
  0x4f   : > { %v361_v54 = vld [vmem:[%s4534_s1 + $0xe8] sm:$0xff]  ;;  %v360_v1 = vld [vmem:[%s4534_s1 + $0xe0] sm:$0xff]  ;;  %v346_v3 = vld [vmem:[%s4534_s1 + $0x70] sm:$0xff] }
  0x50   : > { %v3642_v63 = vpack.c.bf16 %v361_v54, %v357_v51  ;;  %v365_v4 = vld [vmem:[%s4534_s1 + $0x108] sm:$0xff]  ;;  %v3662_v6 = vpack.c.bf16 %v346_v3, %v342_v62  ;;  %v351_v7 = vld [vmem:[%s4534_s1 + $0x98] sm:$0xff]  ;;  %2574 = vmatprep.subr.bf16.mxu1 %v3651_v2  ;;  %v350_v9 = vld [vmem:[%s4534_s1 + $0x90] sm:$0xff]  ;;  %v3678_v11 = vpack.c.bf16 %v360_v1, %v356_v0 }
  0x51   : > { %2544 = vmatpush1.bf16.msra.mxu0 %v3595_v47  ;;  %v369_v5 = vld [vmem:[%s4534_s1 + $0x128] sm:$0xff]  ;;  %v355_v8 = vld [vmem:[%s4534_s1 + $0xb8] sm:$0xff]  ;;  %v354_v10 = vld [vmem:[%s4534_s1 + $0xb0] sm:$0xff] }
  0x52   : > { %2546 = vmatprep.subr.bf16.mxu0 %v3604_v50  ;;  %v364_v12 = vld [vmem:[%s4534_s1 + $0x100] sm:$0xff]  ;;  %v3686_v14 = vpack.c.bf16 %v355_v8, %v351_v7  ;;  %v3689_v15 = vpack.c.bf16 %v369_v5, %v365_v4  ;;  %2576 = vmatpush1.bf16.msra.mxu1 %v3662_v6  ;;  %v373_v16 = vld [vmem:[%s4534_s1 + $0x148] sm:$0xff]  ;;  %v3695_v17 = vpack.c.bf16 %v354_v10, %v350_v9  ;;  %v359_v18 = vld [vmem:[%s4534_s1 + $0xd8] sm:$0xff] }
  0x53   : > { %v368_v13 = vld [vmem:[%s4534_s1 + $0x120] sm:$0xff]  ;;  %v363_v19 = vld [vmem:[%s4534_s1 + $0xf8] sm:$0xff]  ;;  %v377_v20 = vld [vmem:[%s4534_s1 + $0x168] sm:$0xff] }
  0x54   : > { %2578 = vmatprep.subr.bf16.mxu1 %v3686_v14  ;;  %v3707_v21 = vpack.c.bf16 %v363_v19, %v359_v18  ;;  %v358_v22 = vld [vmem:[%s4534_s1 + $0xd0] sm:$0xff]  ;;  %v3716_v24 = vpack.c.bf16 %v368_v13, %v364_v12  ;;  %v367_v25 = vld [vmem:[%s4534_s1 + $0x118] sm:$0xff]  ;;  %v3725_v27 = vpack.c.bf16 %v377_v20, %v373_v16  ;;  %v372_v28 = vld [vmem:[%s4534_s1 + $0x140] sm:$0xff] }
  0x55   : > { %2548 = vmatpush1.bf16.msra.mxu0 %v3629_v59  ;;  %v362_v23 = vld [vmem:[%s4534_s1 + $0xf0] sm:$0xff]  ;;  %v371_v26 = vld [vmem:[%s4534_s1 + $0x138] sm:$0xff]  ;;  %v376_v29 = vld [vmem:[%s4534_s1 + $0x160] sm:$0xff] }
  0x56   : > { %2550 = vmatprep.subr.bf16.mxu0 %v3642_v63  ;;  %2580 = vmatpush1.bf16.msra.mxu1 %v3695_v17  ;;  %v381_v30 = vld [vmem:[%s4534_s1 + $0x188] sm:$0xff]  ;;  %v3737_v31 = vpack.c.bf16 %v362_v23, %v358_v22  ;;  %v3743_v33 = vpack.c.bf16 %v371_v26, %v367_v25  ;;  %v366_v34 = vld [vmem:[%s4534_s1 + $0x110] sm:$0xff]  ;;  %v375_v37 = vld [vmem:[%s4534_s1 + $0x158] sm:$0xff]  ;;  %v3758_v39 = vpack.c.bf16 %v376_v29, %v372_v28 }
  0x57   : > { %v385_v32 = vld [vmem:[%s4534_s1 + $0x1a8] sm:$0xff]  ;;  %2582 = vmatprep.subr.bf16.mxu1 %v3707_v21  ;;  %v370_v35 = vld [vmem:[%s4534_s1 + $0x130] sm:$0xff]  ;;  %v379_v38 = vld [vmem:[%s4534_s1 + $0x178] sm:$0xff] }
  0x58   : > { %v3761_v43 = vpack.c.bf16 %v385_v32, %v381_v30  ;;  %v380_v44 = vld [vmem:[%s4534_s1 + $0x180] sm:$0xff]  ;;  %v389_v46 = vld [vmem:[%s4534_s1 + $0x1c8] sm:$0xff]  ;;  %v3773_v48 = vpack.c.bf16 %v370_v35, %v366_v34  ;;  %v3779_v51 = vpack.c.bf16 %v379_v38, %v375_v37  ;;  %v374_v52 = vld [vmem:[%s4534_s1 + $0x150] sm:$0xff] }
  0x59   : > { %2552 = vmatpush1.bf16.msra.mxu0 %v3678_v11  ;;  %v384_v45 = vld [vmem:[%s4534_s1 + $0x1a0] sm:$0xff]  ;;  %v393_v49 = vld [vmem:[%s4534_s1 + $0x1e8] sm:$0xff]  ;;  %v378_v53 = vld [vmem:[%s4534_s1 + $0x170] sm:$0xff] }
  0x5a   : > { %2554 = vmatprep.subr.bf16.mxu0 %v3689_v15  ;;  %2584 = vmatpush1.bf16.msra.mxu1 %v3737_v31  ;;  %v383_v54 = vld [vmem:[%s4534_s1 + $0x198] sm:$0xff]  ;;  %v3794_v57 = vpack.c.bf16 %v384_v45, %v380_v44  ;;  %v3797_v60 = vpack.c.bf16 %v393_v49, %v389_v46  ;;  %v388_v61 = vld [vmem:[%s4534_s1 + $0x1c0] sm:$0xff]  ;;  %v3806_v0 = vpack.c.bf16 %v378_v53, %v374_v52  ;;  %v382_v3 = vld [vmem:[%s4534_s1 + $0x190] sm:$0xff] }
  0x5b   : > { %2586 = vmatprep.subr.bf16.mxu1 %v3743_v33  ;;  %v387_v56 = vld [vmem:[%s4534_s1 + $0x1b8] sm:$0xff]  ;;  %v392_v62 = vld [vmem:[%s4534_s1 + $0x1e0] sm:$0xff]  ;;  %v386_v4 = vld [vmem:[%s4534_s1 + $0x1b0] sm:$0xff] }
  0x5c   : > { %v3809_v1 = vpack.c.bf16 %v387_v56, %v383_v54  ;;  %v391_v5 = vld [vmem:[%s4534_s1 + $0x1d8] sm:$0xff]  ;;  %v3824_v8 = vpack.c.bf16 %v392_v62, %v388_v61  ;;  %v3828_v9 = vpack.c.bf16 %v386_v4, %v382_v3  ;;  %v390_v12 = vld [vmem:[%s4534_s1 + $0x1d0] sm:$0xff]  ;;  %v326_v16 = vld [vmem:[#allocation2] sm:$0xff] }
  0x5d   : > { %2556 = vmatpush1.bf16.msra.mxu0 %v3716_v24  ;;  %v395_v7 = vld [vmem:[%s4534_s1 + $0x1f8] sm:$0xff]  ;;  %v394_v13 = vld [vmem:[%s4534_s1 + $0x1f0] sm:$0xff]  ;;  %v331_v30 = vld [vmem:[%s3550_s27 + $0x18] sm:$0xff] }
  0x5e   : > { %2558 = vmatprep.subr.bf16.mxu0 %v3725_v27  ;;  %2588 = vmatpush1.bf16.msra.mxu1 %v3773_v48  ;;  %v3831_v10 = vpack.c.bf16 %v395_v7, %v391_v5  ;;  %v3841_v18 = vpack.c.bf16 %v394_v13, %v390_v12  ;;  %v328_v19 = vld [vmem:[%s3550_s27] sm:$0xff]  ;;  %v329_v20 = vld [vmem:[%s3550_s27 + $0x8] sm:$0xff]  ;;  %v330_v37 = vld [vmem:[%s3550_s27 + $0x10] sm:$0xff] }
  0x5f   : > { %2590 = vmatprep.subr.bf16.mxu1 %v3779_v51  ;;  %v327_v56 = vld [vmem:[#allocation3] sm:$0xff] }
  0x61   : > { %2560 = vmatpush1.bf16.msra.mxu0 %v3758_v39 }
  0x62   : > { %2562 = vmatprep.subr.bf16.mxu0 %v3761_v43  ;;  %2592 = vmatpush1.bf16.msra.mxu1 %v3806_v0 }
  0x63   : > { %2594 = vmatprep.subr.bf16.mxu1 %v3809_v1 }
  0x65   : > { %2564 = vmatpush1.bf16.msra.mxu0 %v3794_v57 }
  0x66   : > { %2566 = vmatprep.subr.bf16.mxu0 %v3797_v60  ;;  %2596 = vmatpush1.bf16.msra.mxu1 %v3828_v9 }
  0x67   : > { %2598 = vmatprep.subr.bf16.mxu1 %v3831_v10 }
  0x69   : > { %2568 = vmatpush1.bf16.msra.mxu0 %v3824_v8 }
  0x6a   : > { %2602 = vmatprep.subr.bf16.mxu0 %v3564_v36  ;;  %2600 = vmatpush1.bf16.msra.mxu1 %v3841_v18 }
  0x6b   : > { %2634 = vmatprep.subr.bf16.mxu1 %v3618_v55 }
  0x6c   : > { %461 = vmatmul.mubr.f32.vlgmr.msra.gmra.mrb[0].mxu0 %v326_v16 }
  0x6d   : > { %2604 = vmatpush1.bf16.msra.mxu0 %v3577_v41  ;;  %704 = vmatprep.mubr.f32.mxu0 %v3350_v40 }
  0x6e   : > { %2606 = vmatprep.subr.bf16.mxu0 %v3579_v42  ;;  %532 = vmatmul.mubr.f32.vlgmr.msra.gmra.mrb[0].mxu1 %v326_v16 }
  0x6f   : > { %2636 = vmatpush1.bf16.msra.mxu1 %v3626_v58  ;;  %775 = vmatprep.mubr.f32.mxu1 %v3350_v40 }
  0x70   : > { %2638 = vmatprep.subr.bf16.mxu1 %v3651_v2 }
  0x71   : > { %2608 = vmatpush1.bf16.msra.mxu0 %v3595_v47 }
  0x72   : > { %2610 = vmatprep.subr.bf16.mxu0 %v3604_v50 }
  0x73   : > { %2640 = vmatpush1.bf16.msra.mxu1 %v3662_v6 }
  0x74   : > { %2642 = vmatprep.subr.bf16.mxu1 %v3686_v14 }
  0x75   : > { %2612 = vmatpush1.bf16.msra.mxu0 %v3629_v59 }
  0x76   : > { %2614 = vmatprep.subr.bf16.mxu0 %v3642_v63 }
  0x77   : > { %2644 = vmatpush1.bf16.msra.mxu1 %v3695_v17 }
  0x78   : > { %2646 = vmatprep.subr.bf16.mxu1 %v3707_v21 }
  0x79   : > { %2616 = vmatpush1.bf16.msra.mxu0 %v3678_v11 }
  0x7a   : > { %2618 = vmatprep.subr.bf16.mxu0 %v3689_v15 }
  0x7b   : > { %2648 = vmatpush1.bf16.msra.mxu1 %v3737_v31 }
  0x7c   : > { %2650 = vmatprep.subr.bf16.mxu1 %v3743_v33 }
  0x7d   : > { %2620 = vmatpush1.bf16.msra.mxu0 %v3716_v24 }
  0x7e   : > { %2622 = vmatprep.subr.bf16.mxu0 %v3725_v27 }
  0x7f   : > { %2652 = vmatpush1.bf16.msra.mxu1 %v3773_v48 }
  0x80   : > { %2654 = vmatprep.subr.bf16.mxu1 %v3779_v51 }
  0x81   : > { %2624 = vmatpush1.bf16.msra.mxu0 %v3758_v39 }
  0x82   : > { %2626 = vmatprep.subr.bf16.mxu0 %v3761_v43 }
  0x83   : > { %2656 = vmatpush1.bf16.msra.mxu1 %v3806_v0 }
  0x84   : > { %2658 = vmatprep.subr.bf16.mxu1 %v3809_v1 }
  0x85   : > { %2628 = vmatpush1.bf16.msra.mxu0 %v3794_v57 }
  0x86   : > { %2630 = vmatprep.subr.bf16.mxu0 %v3797_v60 }
  0x87   : > { %2660 = vmatpush1.bf16.msra.mxu1 %v3828_v9 }
  0x88   : > { %2662 = vmatprep.subr.bf16.mxu1 %v3831_v10 }
  0x89   : > { %2632 = vmatpush1.bf16.msra.mxu0 %v3824_v8 }
  0x8a   : > { %2666 = vmatprep.subr.bf16.mxu0 %v3564_v36 }
  0x8b   : > { %2664 = vmatpush1.bf16.msra.mxu1 %v3841_v18 }
  0x8c   : > { %2698 = vmatprep.subr.bf16.mxu1 %v3618_v55 }
 0x13f   : > { %v462_v22 = vpop.f32.mrb[0].mxu0 }
 0x140   : > { %v538_v23 = vadd.f32 %v462_v22, %v328_v19  ;;  %v464_v25 = vpop.f32.mrb[1].mxu0 }
 0x141   : > { %v539_v26 = vadd.f32 %v464_v25, %v329_v20  ;;  %v533_v32 = vpop.f32.mrb[0].mxu1 }
 0x142   : > { %v2469_v28 = vmul.f32 -1.442695, %v538_v23  ;;  %v535_v34 = vpop.f32.mrb[1].mxu1  ;;  %v540_v44 = vadd.f32 %v533_v32, %v330_v37 }
 0x143   : > { %v2470_v29 = vmul.f32 -1.442695, %v539_v26  ;;  %v541_v35 = vadd.f32 %v535_v34, %v331_v30 }
 0x144   : > { %3125 = vpow2.f32 %v2469_v28 }
 0x145   : > { %3127 = vpow2.f32 %v2470_v29  ;;  %v2471_v38 = vmul.f32 -1.442695, %v541_v35 }
 0x147   : > { %3129 = vpow2.f32 %v2471_v38 }
 0x148   : > { %3131 = vtanh.f32 %v540_v44 }
 0x14e   : > { %v3126_v45 = vpop.eup %3125 }
 0x14f   : > { %v3128_v46 = vpop.eup %3127  ;;  %v545_v49 = vadd.f32 1.0, %v3126_v45 }
 0x150   : > { %v551_v52 = vadd.f32 1.0, %v3128_v46  ;;  %v1098_v46 = vld [vmem:[%s4534_s1 + $0x100] sm:$0xff] }
 0x151   : > { %3133 = vrcp.f32 %v545_v49  ;;  %v3130_v53 = vpop.eup %3129  ;;  %v1102_v49 = vld [vmem:[%s4534_s1 + $0x120] sm:$0xff] }
 0x152   : > { %3135 = vrcp.f32 %v551_v52  ;;  %v3132_v54 = vpop.eup %3131  ;;  %v558_v62 = vadd.f32 1.0, %v3130_v53  ;;  %v4010_v52 = vpack.c.bf16 %v1102_v49, %v1098_v46  ;;  %v1107_v53 = vld [vmem:[%s4534_s1 + $0x148] sm:$0xff]  ;;  %v1315_v46 = vld [vmem:[%s4534_s1 + $0x20] sm:$0xff] }
 0x154   : > { %3137 = vrcp.f32 %v558_v62  ;;  %v1110_v62 = vld [vmem:[%s4534_s1 + $0x160] sm:$0xff] }
 0x15b   : > { %v3134_v61 = vpop.eup %3133 }
 0x15c   : > { %v3136_v3 = vpop.eup %3135  ;;  %v562_v4 = vmul.f32 %v3134_v61, %v3132_v54  ;;  %v1111_v54 = vld [vmem:[%s4534_s1 + $0x168] sm:$0xff]  ;;  %v1106_v61 = vld [vmem:[%s4534_s1 + $0x140] sm:$0xff] }
 0x15d   : > { %v561_v5 = vmul.f32 %v3136_v3, %v327_v56  ;;  %v4020_v56 = vpack.c.bf16 %v1111_v54, %v1107_v53  ;;  %v4028_v3 = vpack.c.bf16 %v1110_v62, %v1106_v61  ;;  %v1313_v54 = vld [vmem:[%s4534_s1 + $0x10] sm:$0xff] }
 0x15e   : > { %v3138_v12 = vpop.eup %3137  ;;  %v1317_v61 = vld [vmem:[%s4534_s1 + $0x30] sm:$0xff] }
 0x15f   : > { %v3885_v7 = vadd.f32 %v562_v4, %v561_v5  ;;  %v1115_v4 = vld [vmem:[%s4534_s1 + $0x188] sm:$0xff]  ;;  %v4110_v62 = vpack.c.bf16 %v1317_v61, %v1313_v54  ;;  %v1373_v54 = vld [vmem:[%s4534_s1 + $0x1f0] sm:$0xff] }
 0x160   : > { %v1119_v5 = vld [vmem:[%s4534_s1 + $0x1a8] sm:$0xff] }
 0x161   : > { %3139 = vtanh.f32 %v3885_v7 }
 0x16b   : > { %v3140_v13 = vpop.eup %3139 }
 0x16c   : > { %v565_v16 = vmul.f32 %v3140_v13, %v3138_v12  ;;  %v1114_v12 = vld [vmem:[%s4534_s1 + $0x180] sm:$0xff] }
 0x16d   : > { %v1118_v13 = vld [vmem:[%s4534_s1 + $0x1a0] sm:$0xff] }
 0x16e   : > { %568 = vst [vmem:[%s3552_s28] sm:$0xff] %v565_v16  ;;  %705 = vmatmul.mubr.f32.vlgmr.msra.gmra.mrb[2].mxu0 %v565_v16  ;;  %776 = vmatmul.mubr.f32.vlgmr.msra.gmra.mrb[2].mxu1 %v565_v16  ;;  %v4046_v16 = vpack.c.bf16 %v1118_v13, %v1114_v12  ;;  %v1322_v12 = vld [vmem:[%s4534_s1 + $0x58] sm:$0xff] }
 0x16f   : > { %2668 = vmatpush1.bf16.msra.mxu0 %v3577_v41  ;;  %2700 = vmatpush1.bf16.msra.mxu1 %v3626_v58 }
 0x170   : > { %2670 = vmatprep.subr.bf16.mxu0 %v3579_v42  ;;  %2702 = vmatprep.subr.bf16.mxu1 %v3651_v2 }
 0x171   : > { %949 = vmatprep.mubr.f32.mxu0 %v3350_v40  ;;  %1020 = vmatprep.mubr.f32.mxu1 %v3350_v40 }
 0x173   : > { %2672 = vmatpush1.bf16.msra.mxu0 %v3595_v47  ;;  %2704 = vmatpush1.bf16.msra.mxu1 %v3662_v6  ;;  %v2472_v47 = vld [vmem:[%s3550_s27 + $0x20] sm:$0xff] }
 0x174   : > { %2674 = vmatprep.subr.bf16.mxu0 %v3604_v50  ;;  %2706 = vmatprep.subr.bf16.mxu1 %v3686_v14  ;;  %v2473_v50 = vld [vmem:[%s3550_s27 + $0x28] sm:$0xff] }
 0x177   : > { %2676 = vmatpush1.bf16.msra.mxu0 %v3629_v59  ;;  %2708 = vmatpush1.bf16.msra.mxu1 %v3695_v17 }
 0x178   : > { %2678 = vmatprep.subr.bf16.mxu0 %v3642_v63  ;;  %2710 = vmatprep.subr.bf16.mxu1 %v3707_v21 }
 0x17b   : > { %2680 = vmatpush1.bf16.msra.mxu0 %v3678_v11  ;;  %2712 = vmatpush1.bf16.msra.mxu1 %v3737_v31 }
 0x17c   : > { %2682 = vmatprep.subr.bf16.mxu0 %v3689_v15  ;;  %2714 = vmatprep.subr.bf16.mxu1 %v3743_v33 }
 0x17f   : > { %2684 = vmatpush1.bf16.msra.mxu0 %v3716_v24  ;;  %2716 = vmatpush1.bf16.msra.mxu1 %v3773_v48 }
 0x180   : > { %2686 = vmatprep.subr.bf16.mxu0 %v3725_v27  ;;  %2718 = vmatprep.subr.bf16.mxu1 %v3779_v51 }
 0x183   : > { %2688 = vmatpush1.bf16.msra.mxu0 %v3758_v39  ;;  %2720 = vmatpush1.bf16.msra.mxu1 %v3806_v0 }
 0x184   : > { %2690 = vmatprep.subr.bf16.mxu0 %v3761_v43  ;;  %2722 = vmatprep.subr.bf16.mxu1 %v3809_v1 }
 0x187   : > { %2692 = vmatpush1.bf16.msra.mxu0 %v3794_v57  ;;  %2724 = vmatpush1.bf16.msra.mxu1 %v3828_v9  ;;  %v2475_v57 = vld [vmem:[%s3550_s27 + $0x38] sm:$0xff] }
 0x188   : > { %2694 = vmatprep.subr.bf16.mxu0 %v3797_v60  ;;  %2726 = vmatprep.subr.bf16.mxu1 %v3831_v10 }
 0x18b   : > { %2696 = vmatpush1.bf16.msra.mxu0 %v3824_v8  ;;  %2728 = vmatpush1.bf16.msra.mxu1 %v3841_v18  ;;  %v2474_v8 = vld [vmem:[%s3550_s27 + $0x30] sm:$0xff] }
 0x18c   : > { %2730 = vmatprep.subr.bf16.mxu0 %v3564_v36  ;;  %2762 = vmatprep.subr.bf16.mxu1 %v3618_v55 }
 0x241   : > { %v706_v59 = vpop.f32.mrb[2].mxu0  ;;  %v777_v63 = vpop.f32.mrb[2].mxu1 }
 0x242   : > { %v782_v11 = vadd.f32 %v2472_v47, %v706_v59  ;;  %v708_v15 = vpop.f32.mrb[3].mxu0  ;;  %v779_v24 = vpop.f32.mrb[3].mxu1  ;;  %v784_v36 = vadd.f32 %v2474_v8, %v777_v63  ;;  %v1123_v47 = vld [vmem:[%s4534_s1 + $0x1c8] sm:$0xff]  ;;  %v1122_v63 = vld [vmem:[%s4534_s1 + $0x1c0] sm:$0xff] }
 0x243   : > { %v783_v27 = vadd.f32 %v2473_v50, %v708_v15  ;;  %v785_v60 = vadd.f32 %v2475_v57, %v779_v24  ;;  %v1127_v50 = vld [vmem:[%s4534_s1 + $0x1e8] sm:$0xff]  ;;  %v2480_v24 = vld [vmem:[%s3550_s27 + $0x40] sm:$0xff] }
 0x244   : > { %v2476_v39 = vmul.f32 -1.442695, %v782_v11  ;;  %v4056_v59 = vpack.c.bf16 %v1127_v50, %v1123_v47  ;;  %v1126_v11 = vld [vmem:[%s4534_s1 + $0x1e0] sm:$0xff]  ;;  %v1326_v47 = vld [vmem:[%s4534_s1 + $0x78] sm:$0xff]  ;;  %v1321_v50 = vld [vmem:[%s4534_s1 + $0x50] sm:$0xff] }
 0x245   : > { %v2477_v43 = vmul.f32 -1.442695, %v783_v27  ;;  %v2478_v19 = vmul.f32 -1.442695, %v785_v60  ;;  %v4064_v15 = vpack.c.bf16 %v1126_v11, %v1122_v63  ;;  %v2481_v27 = vld [vmem:[%s3550_s27 + $0x48] sm:$0xff]  ;;  %v1325_v63 = vld [vmem:[%s4534_s1 + $0x70] sm:$0xff]  ;;  %v4135_v11 = vpack.c.bf16 %v1326_v47, %v1322_v12 }
 0x246   : > { %3141 = vpow2.f32 %v2476_v39 }
 0x247   : > { %3143 = vpow2.f32 %v2477_v43 }
 0x248   : > { %3145 = vpow2.f32 %v2478_v19 }
 0x249   : > { %3147 = vtanh.f32 %v784_v36 }
 0x250   : > { %v3142_v20 = vpop.eup %3141 }
 0x251   : > { %v3144_v22 = vpop.eup %3143  ;;  %v789_v55 = vadd.f32 1.0, %v3142_v20 }
 0x252   : > { %v795_v23 = vadd.f32 1.0, %v3144_v22  ;;  %v3146_v25 = vpop.eup %3145  ;;  %v2483_v22 = vld [vmem:[%s3550_s27 + $0x58] sm:$0xff] }
 0x253   : > { %3149 = vrcp.f32 %v789_v55  ;;  %v3148_v26 = vpop.eup %3147  ;;  %v802_v32 = vadd.f32 1.0, %v3146_v25 }
 0x254   : > { %3151 = vrcp.f32 %v795_v23  ;;  %v2482_v23 = vld [vmem:[%s3550_s27 + $0x50] sm:$0xff] }
 0x255   : > { %3153 = vrcp.f32 %v802_v32 }
 0x25d   : > { %v3150_v28 = vpop.eup %3149 }
 0x25e   : > { %v3152_v29 = vpop.eup %3151  ;;  %v806_v30 = vmul.f32 %v3150_v28, %v3148_v26 }
 0x25f   : > { %v805_v34 = vmul.f32 %v3152_v29, %v3885_v7  ;;  %v3154_v37 = vpop.eup %3153  ;;  %v4038_v7 = vpack.c.bf16 %v1119_v5, %v1115_v4  ;;  %v1320_v4 = vld [vmem:[%s4534_s1 + $0x48] sm:$0xff] }
 0x260   : > { %v1324_v5 = vld [vmem:[%s4534_s1 + $0x68] sm:$0xff] }
 0x261   : > { %v3928_v35 = vadd.f32 %v806_v30, %v805_v34  ;;  %v4124_v13 = vpack.c.bf16 %v1324_v5, %v1320_v4  ;;  %v2488_v4 = vld [vmem:[%s3550_s27 + $0x60] sm:$0xff]  ;;  %v2489_v5 = vld [vmem:[%s3550_s27 + $0x68] sm:$0xff] }
 0x263   : > { %3155 = vtanh.f32 %v3928_v35 }
 0x26d   : > { %v3156_v38 = vpop.eup %3155 }
 0x26e   : > { %v809_v44 = vmul.f32 %v3156_v38, %v3154_v37 }
 0x270   : > { %2479 = vst [vmem:[%s3552_s28 + $0x8] sm:$0xff] %v809_v44  ;;  %950 = vmatmul.mubr.f32.vlgmr.msra.gmra.mrb[4].mxu0 %v809_v44  ;;  %1021 = vmatmul.mubr.f32.vlgmr.msra.gmra.mrb[4].mxu1 %v809_v44 }
 0x271   : > { %2732 = vmatpush1.bf16.msra.mxu0 %v3577_v41  ;;  %2764 = vmatpush1.bf16.msra.mxu1 %v3626_v58  ;;  %v1074_v41 = vld [vmem:[%s4534_s1 + $0x40] sm:$0xff] }
 0x272   : > { %2734 = vmatprep.subr.bf16.mxu0 %v3579_v42  ;;  %2766 = vmatprep.subr.bf16.mxu1 %v3651_v2  ;;  %v1078_v42 = vld [vmem:[%s4534_s1 + $0x60] sm:$0xff]  ;;  %v1083_v2 = vld [vmem:[%s4534_s1 + $0x88] sm:$0xff] }
 0x273   : > { %1194 = vmatprep.mubr.f32.mxu0 %v3350_v40  ;;  %1265 = vmatprep.mubr.f32.mxu1 %v3350_v40  ;;  %v3957_v58 = vpack.c.bf16 %v1078_v42, %v1074_v41 }
 0x275   : > { %2768 = vmatpush1.bf16.msra.mxu1 %v3662_v6  ;;  %2736 = vmatpush1.bf16.msra.mxu0 %v3957_v58  ;;  %v1087_v6 = vld [vmem:[%s4534_s1 + $0xa8] sm:$0xff] }
 0x276   : > { %2770 = vmatprep.subr.bf16.mxu1 %v3686_v14  ;;  %v3966_v14 = vpack.c.bf16 %v1087_v6, %v1083_v2 }
 0x278   : > { %2738 = vmatprep.subr.bf16.mxu0 %v3966_v14 }
 0x279   : > { %2772 = vmatpush1.bf16.msra.mxu1 %v3695_v17  ;;  %v1082_v17 = vld [vmem:[%s4534_s1 + $0x80] sm:$0xff] }
 0x27a   : > { %2774 = vmatprep.subr.bf16.mxu1 %v3707_v21  ;;  %v1086_v21 = vld [vmem:[%s4534_s1 + $0xa0] sm:$0xff] }
 0x27d   : > { %2776 = vmatpush1.bf16.msra.mxu1 %v3737_v31  ;;  %v3974_v31 = vpack.c.bf16 %v1086_v21, %v1082_v17 }
 0x27e   : > { %2778 = vmatprep.subr.bf16.mxu1 %v3743_v33  ;;  %v1091_v33 = vld [vmem:[%s4534_s1 + $0xc8] sm:$0xff] }
 0x27f   : > { %2740 = vmatpush1.bf16.msra.mxu0 %v3974_v31 }
 0x281   : > { %2780 = vmatpush1.bf16.msra.mxu1 %v3773_v48  ;;  %v1095_v48 = vld [vmem:[%s4534_s1 + $0xe8] sm:$0xff] }
 0x282   : > { %2782 = vmatprep.subr.bf16.mxu1 %v3779_v51  ;;  %v3984_v51 = vpack.c.bf16 %v1095_v48, %v1091_v33  ;;  %v1312_v48 = vld [vmem:[%s4534_s1 + $0x8] sm:$0xff] }
 0x284   : > { %2742 = vmatprep.subr.bf16.mxu0 %v3984_v51 }
 0x285   : > { %2784 = vmatpush1.bf16.msra.mxu1 %v3806_v0  ;;  %v1090_v0 = vld [vmem:[%s4534_s1 + $0xc0] sm:$0xff] }
 0x286   : > { %2786 = vmatprep.subr.bf16.mxu1 %v3809_v1  ;;  %v1094_v1 = vld [vmem:[%s4534_s1 + $0xe0] sm:$0xff] }
 0x289   : > { %2788 = vmatpush1.bf16.msra.mxu1 %v3828_v9  ;;  %v3992_v9 = vpack.c.bf16 %v1094_v1, %v1090_v0  ;;  %v1314_v0 = vld [vmem:[%s4534_s1 + $0x18] sm:$0xff] }
 0x28a   : > { %2790 = vmatprep.subr.bf16.mxu1 %v3831_v10  ;;  %v1099_v10 = vld [vmem:[%s4534_s1 + $0x108] sm:$0xff] }
 0x28b   : > { %2744 = vmatpush1.bf16.msra.mxu0 %v3992_v9 }
 0x28d   : > { %2792 = vmatpush1.bf16.msra.mxu1 %v3841_v18  ;;  %v1103_v18 = vld [vmem:[%s4534_s1 + $0x128] sm:$0xff] }
 0x28e   : > { %v4002_v45 = vpack.c.bf16 %v1103_v18, %v1099_v10  ;;  %v1318_v10 = vld [vmem:[%s4534_s1 + $0x38] sm:$0xff]  ;;  %v1311_v18 = vld [vmem:[%s4534_s1] sm:$0xff] }
 0x28f   : > { %v4099_v49 = vpack.c.bf16 %v1318_v10, %v1314_v0  ;;  %v4101_v53 = vpack.c.bf16 %v1315_v46, %v1311_v18  ;;  %v1370_v0 = vld [vmem:[%s4534_s1 + $0x1d8] sm:$0xff]  ;;  %v1369_v46 = vld [vmem:[%s4534_s1 + $0x1d0] sm:$0xff] }
 0x290   : > { %2746 = vmatprep.subr.bf16.mxu0 %v4002_v45  ;;  %v1374_v10 = vld [vmem:[%s4534_s1 + $0x1f8] sm:$0xff]  ;;  %v4258_v61 = vpack.c.bf16 %v1373_v54, %v1369_v46 }
 0x291   : > { %2748 = vmatpush1.bf16.msra.mxu0 %v4010_v52  ;;  %2826 = vmatprep.subr.bf16.mxu1 %v4099_v49  ;;  %v4250_v18 = vpack.c.bf16 %v1374_v10, %v1370_v0 }
 0x292   : > { %2750 = vmatprep.subr.bf16.mxu0 %v4020_v56 }
 0x295   : > { %2752 = vmatpush1.bf16.msra.mxu0 %v4028_v3 }
 0x296   : > { %2754 = vmatprep.subr.bf16.mxu0 %v4038_v7 }
 0x299   : > { %2756 = vmatpush1.bf16.msra.mxu0 %v4046_v16 }
 0x29a   : > { %2758 = vmatprep.subr.bf16.mxu0 %v4056_v59 }
 0x29d   : > { %2760 = vmatpush1.bf16.msra.mxu0 %v4064_v15 }
 0x343   : > { %v951_v39 = vpop.f32.mrb[4].mxu0  ;;  %v1022_v43 = vpop.f32.mrb[4].mxu1 }
 0x344   : > { %v1027_v57 = vadd.f32 %v2480_v24, %v951_v39  ;;  %v953_v60 = vpop.f32.mrb[5].mxu0  ;;  %v1024_v8 = vpop.f32.mrb[5].mxu1  ;;  %v1029_v26 = vadd.f32 %v2482_v23, %v1022_v43  ;;  %v4137_v24 = vpack.c.bf16 %v1325_v63, %v1321_v50  ;;  %v1334_v39 = vld [vmem:[%s4534_s1 + $0xb8] sm:$0xff] }
 0x345   : > { %v1028_v19 = vadd.f32 %v2481_v27, %v953_v60  ;;  %v1030_v55 = vadd.f32 %v2483_v22, %v1024_v8  ;;  %v1330_v27 = vld [vmem:[%s4534_s1 + $0x98] sm:$0xff]  ;;  %v1333_v60 = vld [vmem:[%s4534_s1 + $0xb0] sm:$0xff] }
 0x346   : > { %v2484_v36 = vmul.f32 -1.442695, %v1027_v57  ;;  %v4150_v43 = vpack.c.bf16 %v1334_v39, %v1330_v27  ;;  %v1329_v57 = vld [vmem:[%s4534_s1 + $0x90] sm:$0xff] }
 0x347   : > { %v2485_v20 = vmul.f32 -1.442695, %v1028_v19  ;;  %v2486_v25 = vmul.f32 -1.442695, %v1030_v55  ;;  %v4158_v8 = vpack.c.bf16 %v1333_v60, %v1329_v57  ;;  %v1338_v19 = vld [vmem:[%s4534_s1 + $0xd8] sm:$0xff]  ;;  %v1337_v22 = vld [vmem:[%s4534_s1 + $0xd0] sm:$0xff] }
 0x348   : > { %3157 = vpow2.f32 %v2484_v36  ;;  %v1342_v36 = vld [vmem:[%s4534_s1 + $0xf8] sm:$0xff]  ;;  %v1341_v55 = vld [vmem:[%s4534_s1 + $0xf0] sm:$0xff] }
 0x349   : > { %3159 = vpow2.f32 %v2485_v20  ;;  %v4170_v20 = vpack.c.bf16 %v1342_v36, %v1338_v19  ;;  %v4178_v23 = vpack.c.bf16 %v1341_v55, %v1337_v22  ;;  %v2491_v19 = vld [vmem:[%s3550_s27 + $0x78] sm:$0xff]  ;;  %v2490_v22 = vld [vmem:[%s3550_s27 + $0x70] sm:$0xff] }
 0x34a   : > { %3161 = vpow2.f32 %v2486_v25  ;;  %v1346_v25 = vld [vmem:[%s4534_s1 + $0x118] sm:$0xff] }
 0x34b   : > { %3163 = vtanh.f32 %v1029_v26  ;;  %v1350_v26 = vld [vmem:[%s4534_s1 + $0x138] sm:$0xff] }
 0x352   : > { %v3158_v28 = vpop.eup %3157 }
 0x353   : > { %v3160_v29 = vpop.eup %3159  ;;  %v1034_v30 = vadd.f32 1.0, %v3158_v28  ;;  %v4190_v28 = vpack.c.bf16 %v1350_v26, %v1346_v25 }
 0x354   : > { %v1040_v32 = vadd.f32 1.0, %v3160_v29  ;;  %v3162_v34 = vpop.eup %3161  ;;  %v1345_v29 = vld [vmem:[%s4534_s1 + $0x110] sm:$0xff] }
 0x355   : > { %3165 = vrcp.f32 %v1034_v30  ;;  %v3164_v37 = vpop.eup %3163  ;;  %v1047_v42 = vadd.f32 1.0, %v3162_v34  ;;  %v1349_v30 = vld [vmem:[%s4534_s1 + $0x130] sm:$0xff]  ;;  %v1354_v34 = vld [vmem:[%s4534_s1 + $0x158] sm:$0xff] }
 0x356   : > { %3167 = vrcp.f32 %v1040_v32  ;;  %v4198_v32 = vpack.c.bf16 %v1349_v30, %v1345_v29 }
 0x357   : > { %3169 = vrcp.f32 %v1047_v42 }
 0x35f   : > { %v3166_v38 = vpop.eup %3165 }
 0x360   : > { %v3168_v44 = vpop.eup %3167  ;;  %v1051_v41 = vmul.f32 %v3166_v38, %v3164_v37  ;;  %v1358_v37 = vld [vmem:[%s4534_s1 + $0x178] sm:$0xff] }
 0x361   : > { %v1050_v2 = vmul.f32 %v3168_v44, %v3928_v35  ;;  %v3170_v17 = vpop.eup %3169  ;;  %v1316_v35 = vld [vmem:[%s4534_s1 + $0x28] sm:$0xff]  ;;  %v4210_v38 = vpack.c.bf16 %v1358_v37, %v1354_v34  ;;  %v1353_v44 = vld [vmem:[%s4534_s1 + $0x150] sm:$0xff] }
 0x362   : > { %v4088_v1 = vpack.c.bf16 %v1316_v35, %v1312_v48  ;;  %v1365_v48 = vld [vmem:[%s4534_s1 + $0x1b0] sm:$0xff] }
 0x363   : > { %v4073_v6 = vadd.f32 %v1051_v41, %v1050_v2  ;;  %v1357_v41 = vld [vmem:[%s4534_s1 + $0x170] sm:$0xff]  ;;  %v1362_v2 = vld [vmem:[%s4534_s1 + $0x198] sm:$0xff] }
 0x364   : > { %2794 = vmatprep.subr.bf16.mxu0 %v4088_v1  ;;  %v4218_v42 = vpack.c.bf16 %v1357_v41, %v1353_v44 }
 0x365   : > { %3171 = vtanh.f32 %v4073_v6 }
 0x36f   : > { %v3172_v21 = vpop.eup %3171 }
 0x370   : > { %v1054_v33 = vmul.f32 %v3172_v21, %v3170_v17  ;;  %v1366_v17 = vld [vmem:[%s4534_s1 + $0x1b8] sm:$0xff] }
 0x371   : > { %v4230_v21 = vpack.c.bf16 %v1366_v17, %v1362_v2 }
 0x372   : > { %2487 = vst [vmem:[%s3552_s28 + $0x10] sm:$0xff] %v1054_v33  ;;  %1195 = vmatmul.mubr.f32.vlgmr.msra.gmra.mrb[6].mxu0 %v1054_v33  ;;  %1266 = vmatmul.mubr.f32.vlgmr.msra.gmra.mrb[6].mxu1 %v1054_v33  ;;  %v1361_v33 = vld [vmem:[%s4534_s1 + $0x190] sm:$0xff] }
 0x373   : > { %1439 = vmatprep.mubr.f32.mxu0 %v3350_v40  ;;  %1510 = vmatprep.mubr.f32.mxu1 %v3350_v40  ;;  %v4238_v35 = vpack.c.bf16 %v1365_v48, %v1361_v33 }
 0x374   : > { %2796 = vmatpush1.bf16.msra.mxu0 %v4101_v53  ;;  %2828 = vmatpush1.bf16.msra.mxu1 %v4110_v62 }
 0x375   : > { %2798 = vmatprep.subr.bf16.mxu0 %v4124_v13  ;;  %2830 = vmatprep.subr.bf16.mxu1 %v4135_v11 }
 0x378   : > { %2800 = vmatpush1.bf16.msra.mxu0 %v3957_v58  ;;  %2832 = vmatpush1.bf16.msra.mxu1 %v4137_v24 }
 0x379   : > { %2802 = vmatprep.subr.bf16.mxu0 %v3966_v14  ;;  %2834 = vmatprep.subr.bf16.mxu1 %v4150_v43 }
 0x37c   : > { %2804 = vmatpush1.bf16.msra.mxu0 %v3974_v31  ;;  %2836 = vmatpush1.bf16.msra.mxu1 %v4158_v8 }
 0x37d   : > { %2806 = vmatprep.subr.bf16.mxu0 %v3984_v51  ;;  %2838 = vmatprep.subr.bf16.mxu1 %v4170_v20 }
 0x380   : > { %2808 = vmatpush1.bf16.msra.mxu0 %v3992_v9  ;;  %2840 = vmatpush1.bf16.msra.mxu1 %v4178_v23 }
 0x381   : > { %2810 = vmatprep.subr.bf16.mxu0 %v4002_v45  ;;  %2842 = vmatprep.subr.bf16.mxu1 %v4190_v28 }
 0x384   : > { %2812 = vmatpush1.bf16.msra.mxu0 %v4010_v52  ;;  %2844 = vmatpush1.bf16.msra.mxu1 %v4198_v32 }
 0x385   : > { %2814 = vmatprep.subr.bf16.mxu0 %v4020_v56  ;;  %2846 = vmatprep.subr.bf16.mxu1 %v4210_v38 }
 0x388   : > { %2816 = vmatpush1.bf16.msra.mxu0 %v4028_v3  ;;  %2848 = vmatpush1.bf16.msra.mxu1 %v4218_v42 }
 0x389   : > { %2818 = vmatprep.subr.bf16.mxu0 %v4038_v7  ;;  %2850 = vmatprep.subr.bf16.mxu1 %v4230_v21 }
 0x38c   : > { %2820 = vmatpush1.bf16.msra.mxu0 %v4046_v16  ;;  %2852 = vmatpush1.bf16.msra.mxu1 %v4238_v35 }
 0x38d   : > { %2822 = vmatprep.subr.bf16.mxu0 %v4056_v59  ;;  %2854 = vmatprep.subr.bf16.mxu1 %v4250_v18 }
 0x390   : > { %2824 = vmatpush1.bf16.msra.mxu0 %v4064_v15  ;;  %2856 = vmatpush1.bf16.msra.mxu1 %v4258_v61 }
 0x391   : > { %2858 = vmatprep.subr.bf16.mxu0 %v4088_v1  ;;  %2890 = vmatprep.subr.bf16.mxu1 %v4099_v49 }
 0x445   : > { %v1196_v12 = vpop.f32.mrb[6].mxu0  ;;  %v1267_v47 = vpop.f32.mrb[6].mxu1 }
 0x446   : > { %v1272_v50 = vadd.f32 %v2488_v4, %v1196_v12  ;;  %v1198_v63 = vpop.f32.mrb[7].mxu0  ;;  %v1269_v27 = vpop.f32.mrb[7].mxu1  ;;  %v1274_v25 = vadd.f32 %v2490_v22, %v1267_v47  ;;  %v2497_v4 = vld [vmem:[%s3550_s27 + $0x88] sm:$0xff] }
 0x447   : > { %v1273_v39 = vadd.f32 %v2489_v5, %v1198_v63  ;;  %v1275_v36 = vadd.f32 %v2491_v19, %v1269_v27 }
 0x448   : > { %v2492_v57 = vmul.f32 -1.442695, %v1272_v50 }
 0x449   : > { %v2493_v60 = vmul.f32 -1.442695, %v1273_v39  ;;  %v2494_v55 = vmul.f32 -1.442695, %v1275_v36  ;;  %v2498_v36 = vld [vmem:[%s3550_s27 + $0x90] sm:$0xff] }
 0x44a   : > { %3173 = vpow2.f32 %v2492_v57 }
 0x44b   : > { %3175 = vpow2.f32 %v2493_v60  ;;  %v2499_v60 = vld [vmem:[%s3550_s27 + $0x98] sm:$0xff] }
 0x44c   : > { %3177 = vpow2.f32 %v2494_v55 }
 0x44d   : > { %3179 = vtanh.f32 %v1274_v25 }
 0x454   : > { %v3174_v26 = vpop.eup %3173 }
 0x455   : > { %v3176_v29 = vpop.eup %3175  ;;  %v1279_v30 = vadd.f32 1.0, %v3174_v26 }
 0x456   : > { %v1285_v34 = vadd.f32 1.0, %v3176_v29  ;;  %v3178_v37 = vpop.eup %3177 }
 0x457   : > { %3181 = vrcp.f32 %v1279_v30  ;;  %v3180_v44 = vpop.eup %3179  ;;  %v1292_v33 = vadd.f32 1.0, %v3178_v37 }
 0x458   : > { %3183 = vrcp.f32 %v1285_v34 }
 0x459   : > { %3185 = vrcp.f32 %v1292_v33 }
 0x461   : > { %v3182_v41 = vpop.eup %3181 }
 0x462   : > { %v3184_v2 = vpop.eup %3183  ;;  %v1296_v17 = vmul.f32 %v3182_v41, %v3180_v44 }
 0x463   : > { %v1295_v48 = vmul.f32 %v3184_v2, %v4073_v6  ;;  %v3186_v10 = vpop.eup %3185  ;;  %v2496_v6 = vld [vmem:[%s3550_s27 + $0x80] sm:$0xff] }
 0x465   : > { %v4270_v0 = vadd.f32 %v1296_v17, %v1295_v48 }
 0x467   : > { %3187 = vtanh.f32 %v4270_v0 }
 0x471   : > { %v3188_v46 = vpop.eup %3187 }
 0x472   : > { %v1299_v54 = vmul.f32 %v3188_v46, %v3186_v10 }
 0x474   : > { %2495 = vst [vmem:[%s3552_s28 + $0x18] sm:$0xff] %v1299_v54  ;;  %1440 = vmatmul.mubr.f32.vlgmr.msra.gmra.mrb[8].mxu0 %v1299_v54  ;;  %1511 = vmatmul.mubr.f32.vlgmr.msra.gmra.mrb[8].mxu1 %v1299_v54 }
 0x475   : > { %2860 = vmatpush1.bf16.msra.mxu0 %v4101_v53  ;;  %2892 = vmatpush1.bf16.msra.mxu1 %v4110_v62 }
 0x476   : > { %2862 = vmatprep.subr.bf16.mxu0 %v4124_v13  ;;  %2894 = vmatprep.subr.bf16.mxu1 %v4135_v11 }
 0x477   : > { %1684 = vmatprep.mubr.f32.mxu0 %v3350_v40  ;;  %1755 = vmatprep.mubr.f32.mxu1 %v3350_v40 }
 0x479   : > { %2864 = vmatpush1.bf16.msra.mxu0 %v3957_v58  ;;  %2896 = vmatpush1.bf16.msra.mxu1 %v4137_v24 }
 0x47a   : > { %2866 = vmatprep.subr.bf16.mxu0 %v3966_v14  ;;  %2898 = vmatprep.subr.bf16.mxu1 %v4150_v43 }
 0x47d   : > { %2868 = vmatpush1.bf16.msra.mxu0 %v3974_v31  ;;  %2900 = vmatpush1.bf16.msra.mxu1 %v4158_v8 }
 0x47e   : > { %2870 = vmatprep.subr.bf16.mxu0 %v3984_v51  ;;  %2902 = vmatprep.subr.bf16.mxu1 %v4170_v20 }
 0x481   : > { %2872 = vmatpush1.bf16.msra.mxu0 %v3992_v9  ;;  %2904 = vmatpush1.bf16.msra.mxu1 %v4178_v23 }
 0x482   : > { %2874 = vmatprep.subr.bf16.mxu0 %v4002_v45  ;;  %2906 = vmatprep.subr.bf16.mxu1 %v4190_v28 }
 0x485   : > { %2876 = vmatpush1.bf16.msra.mxu0 %v4010_v52  ;;  %2908 = vmatpush1.bf16.msra.mxu1 %v4198_v32 }
 0x486   : > { %2878 = vmatprep.subr.bf16.mxu0 %v4020_v56  ;;  %2910 = vmatprep.subr.bf16.mxu1 %v4210_v38 }
 0x489   : > { %2880 = vmatpush1.bf16.msra.mxu0 %v4028_v3  ;;  %2912 = vmatpush1.bf16.msra.mxu1 %v4218_v42 }
 0x48a   : > { %2882 = vmatprep.subr.bf16.mxu0 %v4038_v7  ;;  %2914 = vmatprep.subr.bf16.mxu1 %v4230_v21 }
 0x48d   : > { %2884 = vmatpush1.bf16.msra.mxu0 %v4046_v16  ;;  %2916 = vmatpush1.bf16.msra.mxu1 %v4238_v35 }
 0x48e   : > { %2886 = vmatprep.subr.bf16.mxu0 %v4056_v59  ;;  %2918 = vmatprep.subr.bf16.mxu1 %v4250_v18 }
 0x491   : > { %2888 = vmatpush1.bf16.msra.mxu0 %v4064_v15  ;;  %2920 = vmatpush1.bf16.msra.mxu1 %v4258_v61 }
 0x492   : > { %2922 = vmatprep.subr.bf16.mxu0 %v4088_v1  ;;  %2954 = vmatprep.subr.bf16.mxu1 %v4099_v49 }
 0x547   : > { %v1441_v5 = vpop.f32.mrb[8].mxu0  ;;  %v1512_v12 = vpop.f32.mrb[8].mxu1 }
 0x548   : > { %v1517_v47 = vadd.f32 %v2496_v6, %v1441_v5  ;;  %v1443_v50 = vpop.f32.mrb[9].mxu0  ;;  %v1514_v63 = vpop.f32.mrb[9].mxu1  ;;  %v1519_v55 = vadd.f32 %v2498_v36, %v1512_v12 }
 0x549   : > { %v1518_v27 = vadd.f32 %v2497_v4, %v1443_v50  ;;  %v1520_v19 = vadd.f32 %v2499_v60, %v1514_v63 }
 0x54a   : > { %v2500_v39 = vmul.f32 -1.442695, %v1517_v47 }
 0x54b   : > { %v2501_v57 = vmul.f32 -1.442695, %v1518_v27  ;;  %v2502_v22 = vmul.f32 -1.442695, %v1520_v19 }
 0x54c   : > { %3189 = vpow2.f32 %v2500_v39 }
 0x54d   : > { %3191 = vpow2.f32 %v2501_v57 }
 0x54e   : > { %3193 = vpow2.f32 %v2502_v22 }
 0x54f   : > { %3195 = vtanh.f32 %v1519_v55  ;;  %v2078_v55 = vld [vmem:[%s4534_s1 + $0x100] sm:$0xff] }
 0x556   : > { %v3190_v25 = vpop.eup %3189 }
 0x557   : > { %v3192_v26 = vpop.eup %3191  ;;  %v1524_v29 = vadd.f32 1.0, %v3190_v25  ;;  %v2082_v25 = vld [vmem:[%s4534_s1 + $0x120] sm:$0xff] }
 0x558   : > { %v1530_v30 = vadd.f32 1.0, %v3192_v26  ;;  %v3194_v34 = vpop.eup %3193  ;;  %v3003_v26 = vpack.c.bf16 %v2082_v25, %v2078_v55 }
 0x559   : > { %3197 = vrcp.f32 %v1524_v29  ;;  %v3196_v37 = vpop.eup %3195  ;;  %v1537_v17 = vadd.f32 1.0, %v3194_v34  ;;  %v2087_v29 = vld [vmem:[%s4534_s1 + $0x148] sm:$0xff] }
 0x55a   : > { %3199 = vrcp.f32 %v1530_v30  ;;  %v2091_v30 = vld [vmem:[%s4534_s1 + $0x168] sm:$0xff] }
 0x55b   : > { %3201 = vrcp.f32 %v1537_v17  ;;  %v3005_v34 = vpack.c.bf16 %v2091_v30, %v2087_v29  ;;  %v2099_v17 = vld [vmem:[%s4534_s1 + $0x1a8] sm:$0xff] }
 0x563   : > { %v3198_v44 = vpop.eup %3197 }
 0x564   : > { %v3200_v41 = vpop.eup %3199  ;;  %v1541_v2 = vmul.f32 %v3198_v44, %v3196_v37  ;;  %v2086_v37 = vld [vmem:[%s4534_s1 + $0x140] sm:$0xff] }
 0x565   : > { %v1540_v33 = vmul.f32 %v3200_v41, %v4270_v0  ;;  %v3202_v10 = vpop.eup %3201  ;;  %v2090_v44 = vld [vmem:[%s4534_s1 + $0x160] sm:$0xff] }
 0x566   : > { %v3007_v41 = vpack.c.bf16 %v2090_v44, %v2086_v37 }
 0x567   : > { %v4313_v48 = vadd.f32 %v1541_v2, %v1540_v33  ;;  %v2095_v2 = vld [vmem:[%s4534_s1 + $0x188] sm:$0xff] }
 0x568   : > { %v3009_v33 = vpack.c.bf16 %v2099_v17, %v2095_v2 }
 0x569   : > { %3203 = vtanh.f32 %v4313_v48 }
 0x573   : > { %v3204_v46 = vpop.eup %3203 }
 0x574   : > { %v1544_v54 = vmul.f32 %v3204_v46, %v3202_v10  ;;  %v2098_v10 = vld [vmem:[%s4534_s1 + $0x1a0] sm:$0xff] }
 0x576   : > { %2503 = vst [vmem:[%s3552_s28 + $0x20] sm:$0xff] %v1544_v54  ;;  %1685 = vmatmul.mubr.f32.vlgmr.msra.gmra.mrb[10].mxu0 %v1544_v54  ;;  %1756 = vmatmul.mubr.f32.vlgmr.msra.gmra.mrb[10].mxu1 %v1544_v54  ;;  %v2103_v54 = vld [vmem:[%s4534_s1 + $0x1c8] sm:$0xff] }
 0x577   : > { %2924 = vmatpush1.bf16.msra.mxu0 %v4101_v53  ;;  %2956 = vmatpush1.bf16.msra.mxu1 %v4110_v62 }
 0x578   : > { %2926 = vmatprep.subr.bf16.mxu0 %v4124_v13  ;;  %2958 = vmatprep.subr.bf16.mxu1 %v4135_v11 }
 0x579   : > { %1929 = vmatprep.mubr.f32.mxu0 %v3350_v40  ;;  %2000 = vmatprep.mubr.f32.mxu1 %v3350_v40 }
 0x57b   : > { %2928 = vmatpush1.bf16.msra.mxu0 %v3957_v58  ;;  %2960 = vmatpush1.bf16.msra.mxu1 %v4137_v24  ;;  %v2504_v58 = vld [vmem:[%s3550_s27 + $0xa0] sm:$0xff] }
 0x57c   : > { %2930 = vmatprep.subr.bf16.mxu0 %v3966_v14  ;;  %2962 = vmatprep.subr.bf16.mxu1 %v4150_v43  ;;  %v2505_v14 = vld [vmem:[%s3550_s27 + $0xa8] sm:$0xff] }
 0x57f   : > { %2932 = vmatpush1.bf16.msra.mxu0 %v3974_v31  ;;  %2964 = vmatpush1.bf16.msra.mxu1 %v4158_v8 }
 0x580   : > { %2934 = vmatprep.subr.bf16.mxu0 %v3984_v51  ;;  %2966 = vmatprep.subr.bf16.mxu1 %v4170_v20 }
 0x583   : > { %2936 = vmatpush1.bf16.msra.mxu0 %v3992_v9  ;;  %2968 = vmatpush1.bf16.msra.mxu1 %v4178_v23 }
 0x584   : > { %2938 = vmatprep.subr.bf16.mxu0 %v4002_v45  ;;  %2970 = vmatprep.subr.bf16.mxu1 %v4190_v28 }
 0x587   : > { %2940 = vmatpush1.bf16.msra.mxu0 %v4010_v52  ;;  %2972 = vmatpush1.bf16.msra.mxu1 %v4198_v32 }
 0x588   : > { %2942 = vmatprep.subr.bf16.mxu0 %v4020_v56  ;;  %2974 = vmatprep.subr.bf16.mxu1 %v4210_v38 }
 0x58b   : > { %2944 = vmatpush1.bf16.msra.mxu0 %v4028_v3  ;;  %2976 = vmatpush1.bf16.msra.mxu1 %v4218_v42 }
 0x58c   : > { %2946 = vmatprep.subr.bf16.mxu0 %v4038_v7  ;;  %2978 = vmatprep.subr.bf16.mxu1 %v4230_v21 }
 0x58f   : > { %2948 = vmatpush1.bf16.msra.mxu0 %v4046_v16  ;;  %2980 = vmatpush1.bf16.msra.mxu1 %v4238_v35  ;;  %v2507_v16 = vld [vmem:[%s3550_s27 + $0xb8] sm:$0xff] }
 0x590   : > { %2950 = vmatprep.subr.bf16.mxu0 %v4056_v59  ;;  %2982 = vmatprep.subr.bf16.mxu1 %v4250_v18 }
 0x593   : > { %2952 = vmatpush1.bf16.msra.mxu0 %v4064_v15  ;;  %2984 = vmatpush1.bf16.msra.mxu1 %v4258_v61  ;;  %v2506_v15 = vld [vmem:[%s3550_s27 + $0xb0] sm:$0xff] }
 0x594   : > { %2986 = vmatprep.subr.bf16.mxu0 %v4088_v1  ;;  %3018 = vmatprep.subr.bf16.mxu1 %v4099_v49 }
 0x649   : > { %v1686_v31 = vpop.f32.mrb[10].mxu0  ;;  %v1757_v51 = vpop.f32.mrb[10].mxu1 }
 0x64a   : > { %v1762_v9 = vadd.f32 %v2504_v58, %v1686_v31  ;;  %v1688_v45 = vpop.f32.mrb[11].mxu0  ;;  %v1759_v52 = vpop.f32.mrb[11].mxu1  ;;  %v1764_v1 = vadd.f32 %v2506_v15, %v1757_v51  ;;  %v2107_v58 = vld [vmem:[%s4534_s1 + $0x1e8] sm:$0xff]  ;;  %v2102_v31 = vld [vmem:[%s4534_s1 + $0x1c0] sm:$0xff] }
 0x64b   : > { %v1763_v56 = vadd.f32 %v2505_v14, %v1688_v45  ;;  %v1765_v59 = vadd.f32 %v2507_v16, %v1759_v52  ;;  %v3013_v14 = vpack.c.bf16 %v2107_v58, %v2103_v54  ;;  %v2106_v51 = vld [vmem:[%s4534_s1 + $0x1e0] sm:$0xff]  ;;  %v2512_v45 = vld [vmem:[%s3550_s27 + $0xc0] sm:$0xff]  ;;  %v2513_v52 = vld [vmem:[%s3550_s27 + $0xc8] sm:$0xff] }
 0x64c   : > { %v2508_v3 = vmul.f32 -1.442695, %v1762_v9  ;;  %v3015_v9 = vpack.c.bf16 %v2106_v51, %v2102_v31 }
 0x64d   : > { %v2509_v7 = vmul.f32 -1.442695, %v1763_v56  ;;  %v2510_v0 = vmul.f32 -1.442695, %v1765_v59 }
 0x64e   : > { %3205 = vpow2.f32 %v2508_v3 }
 0x64f   : > { %3207 = vpow2.f32 %v2509_v7 }
 0x650   : > { %3209 = vpow2.f32 %v2510_v0 }
 0x651   : > { %3211 = vtanh.f32 %v1764_v1 }
 0x658   : > { %v3206_v6 = vpop.eup %3205 }
 0x659   : > { %v3208_v4 = vpop.eup %3207  ;;  %v1769_v49 = vadd.f32 1.0, %v3206_v6  ;;  %v2515_v6 = vld [vmem:[%s3550_s27 + $0xd8] sm:$0xff] }
 0x65a   : > { %v1775_v5 = vadd.f32 1.0, %v3208_v4  ;;  %v3210_v12 = vpop.eup %3209 }
 0x65b   : > { %3213 = vrcp.f32 %v1769_v49  ;;  %v3212_v47 = vpop.eup %3211  ;;  %v1782_v39 = vadd.f32 1.0, %v3210_v12  ;;  %v2514_v49 = vld [vmem:[%s3550_s27 + $0xd0] sm:$0xff] }
 0x65c   : > { %3215 = vrcp.f32 %v1775_v5 }
 0x65d   : > { %3217 = vrcp.f32 %v1782_v39 }
 0x665   : > { %v3214_v50 = vpop.eup %3213 }
 0x666   : > { %v3216_v63 = vpop.eup %3215  ;;  %v1786_v27 = vmul.f32 %v3214_v50, %v3212_v47 }
 0x667   : > { %v1785_v57 = vmul.f32 %v3216_v63, %v4313_v48  ;;  %v3218_v19 = vpop.eup %3217  ;;  %v2094_v48 = vld [vmem:[%s4534_s1 + $0x180] sm:$0xff] }
 0x668   : > { %v3011_v46 = vpack.c.bf16 %v2098_v10, %v2094_v48 }
 0x669   : > { %v4356_v60 = vadd.f32 %v1786_v27, %v1785_v57 }
 0x66b   : > { %3219 = vtanh.f32 %v4356_v60 }
 0x675   : > { %v3220_v36 = vpop.eup %3219 }
 0x676   : > { %v1789_v22 = vmul.f32 %v3220_v36, %v3218_v19 }
 0x678   : > { %2511 = vst [vmem:[%s3552_s28 + $0x28] sm:$0xff] %v1789_v22  ;;  %1930 = vmatmul.mubr.f32.vlgmr.msra.gmra.mrb[12].mxu0 %v1789_v22  ;;  %2001 = vmatmul.mubr.f32.vlgmr.msra.gmra.mrb[12].mxu1 %v1789_v22 }
 0x679   : > { %2988 = vmatpush1.bf16.msra.mxu0 %v4101_v53  ;;  %3020 = vmatpush1.bf16.msra.mxu1 %v4110_v62  ;;  %v2058_v53 = vld [vmem:[%s4534_s1 + $0x60] sm:$0xff] }
 0x67a   : > { %2990 = vmatprep.subr.bf16.mxu0 %v4124_v13  ;;  %3022 = vmatprep.subr.bf16.mxu1 %v4135_v11  ;;  %v2063_v13 = vld [vmem:[%s4534_s1 + $0x88] sm:$0xff] }
 0x67b   : > { %2174 = vmatprep.mubr.f32.mxu0 %v3350_v40  ;;  %2245 = vmatprep.mubr.f32.mxu1 %v3350_v40  ;;  %v2054_v40 = vld [vmem:[%s4534_s1 + $0x40] sm:$0xff]  ;;  %v2067_v11 = vld [vmem:[%s4534_s1 + $0xa8] sm:$0xff] }
 0x67c   : > { %v2991_v62 = vpack.c.bf16 %v2058_v53, %v2054_v40 }
 0x67d   : > { %3024 = vmatpush1.bf16.msra.mxu1 %v4137_v24  ;;  %v2993_v24 = vpack.c.bf16 %v2067_v11, %v2063_v13 }
 0x67e   : > { %3026 = vmatprep.subr.bf16.mxu1 %v4150_v43  ;;  %2992 = vmatpush1.bf16.msra.mxu0 %v2991_v62  ;;  %v2062_v43 = vld [vmem:[%s4534_s1 + $0x80] sm:$0xff] }
 0x67f   : > { %2994 = vmatprep.subr.bf16.mxu0 %v2993_v24 }
 0x681   : > { %3028 = vmatpush1.bf16.msra.mxu1 %v4158_v8  ;;  %v2066_v8 = vld [vmem:[%s4534_s1 + $0xa0] sm:$0xff] }
 0x682   : > { %3030 = vmatprep.subr.bf16.mxu1 %v4170_v20  ;;  %v2995_v20 = vpack.c.bf16 %v2066_v8, %v2062_v43  ;;  %v2520_v43 = vld [vmem:[%s3550_s27 + $0xe0] sm:$0xff]  ;;  %v2521_v8 = vld [vmem:[%s3550_s27 + $0xe8] sm:$0xff] }
 0x684   : > { %2996 = vmatpush1.bf16.msra.mxu0 %v2995_v20 }
 0x685   : > { %3032 = vmatpush1.bf16.msra.mxu1 %v4178_v23  ;;  %v2071_v23 = vld [vmem:[%s4534_s1 + $0xc8] sm:$0xff] }
 0x686   : > { %3034 = vmatprep.subr.bf16.mxu1 %v4190_v28  ;;  %v2075_v28 = vld [vmem:[%s4534_s1 + $0xe8] sm:$0xff] }
 0x689   : > { %3036 = vmatpush1.bf16.msra.mxu1 %v4198_v32  ;;  %v2997_v32 = vpack.c.bf16 %v2075_v28, %v2071_v23 }
 0x68a   : > { %3038 = vmatprep.subr.bf16.mxu1 %v4210_v38  ;;  %v2070_v38 = vld [vmem:[%s4534_s1 + $0xc0] sm:$0xff] }
 0x68b   : > { %2998 = vmatprep.subr.bf16.mxu0 %v2997_v32 }
 0x68d   : > { %3040 = vmatpush1.bf16.msra.mxu1 %v4218_v42  ;;  %v2074_v42 = vld [vmem:[%s4534_s1 + $0xe0] sm:$0xff] }
 0x68e   : > { %3042 = vmatprep.subr.bf16.mxu1 %v4230_v21  ;;  %v2999_v21 = vpack.c.bf16 %v2074_v42, %v2070_v38 }
 0x690   : > { %3000 = vmatpush1.bf16.msra.mxu0 %v2999_v21 }
 0x691   : > { %3044 = vmatpush1.bf16.msra.mxu1 %v4238_v35  ;;  %v2079_v35 = vld [vmem:[%s4534_s1 + $0x108] sm:$0xff] }
 0x692   : > { %3046 = vmatprep.subr.bf16.mxu1 %v4250_v18  ;;  %v2083_v18 = vld [vmem:[%s4534_s1 + $0x128] sm:$0xff] }
 0x695   : > { %3048 = vmatpush1.bf16.msra.mxu1 %v4258_v61  ;;  %v3001_v61 = vpack.c.bf16 %v2083_v18, %v2079_v35  ;;  %v2523_v35 = vld [vmem:[%s3550_s27 + $0xf8] sm:$0xff] }
 0x697   : > { %3002 = vmatprep.subr.bf16.mxu0 %v3001_v61  ;;  %v2522_v61 = vld [vmem:[%s3550_s27 + $0xf0] sm:$0xff] }
 0x698   : > { %3004 = vmatpush1.bf16.msra.mxu0 %v3003_v26 }
 0x699   : > { %3006 = vmatprep.subr.bf16.mxu0 %v3005_v34 }
 0x69c   : > { %3008 = vmatpush1.bf16.msra.mxu0 %v3007_v41 }
 0x69d   : > { %3010 = vmatprep.subr.bf16.mxu0 %v3009_v33 }
 0x6a0   : > { %3012 = vmatpush1.bf16.msra.mxu0 %v3011_v46 }
 0x6a1   : > { %3014 = vmatprep.subr.bf16.mxu0 %v3013_v14 }
 0x6a4   : > { %3016 = vmatpush1.bf16.msra.mxu0 %v3015_v9 }
 0x74b   : > { %v1931_v56 = vpop.f32.mrb[12].mxu0  ;;  %v2002_v3 = vpop.f32.mrb[12].mxu1 }
 0x74c   : > { %v2007_v7 = vadd.f32 %v2512_v45, %v1931_v56  ;;  %v1933_v16 = vpop.f32.mrb[13].mxu0  ;;  %v2004_v59 = vpop.f32.mrb[13].mxu1  ;;  %v2009_v12 = vadd.f32 %v2514_v49, %v2002_v3 }
 0x74d   : > { %v2008_v15 = vadd.f32 %v2513_v52, %v1933_v16  ;;  %v2010_v4 = vadd.f32 %v2515_v6, %v2004_v59 }
 0x74e   : > { %v2516_v0 = vmul.f32 -1.442695, %v2007_v7 }
 0x74f   : > { %v2517_v1 = vmul.f32 -1.442695, %v2008_v15  ;;  %v2518_v5 = vmul.f32 -1.442695, %v2010_v4 }
 0x750   : > { %3221 = vpow2.f32 %v2516_v0 }
 0x751   : > { %3223 = vpow2.f32 %v2517_v1 }
 0x752   : > { %3225 = vpow2.f32 %v2518_v5 }
 0x753   : > { %3227 = vtanh.f32 %v2009_v12 }
 0x75a   : > { %v3222_v47 = vpop.eup %3221 }
 0x75b   : > { %v3224_v50 = vpop.eup %3223  ;;  %v2014_v63 = vadd.f32 1.0, %v3222_v47 }
 0x75c   : > { %v2020_v27 = vadd.f32 1.0, %v3224_v50  ;;  %v3226_v39 = vpop.eup %3225 }
 0x75d   : > { %3229 = vrcp.f32 %v2014_v63  ;;  %v3228_v57 = vpop.eup %3227  ;;  %v2027_v40 = vadd.f32 1.0, %v3226_v39 }
 0x75e   : > { %3231 = vrcp.f32 %v2020_v27 }
 0x75f   : > { %3233 = vrcp.f32 %v2027_v40 }
 0x767   : > { %v3230_v19 = vpop.eup %3229 }
 0x768   : > { %v3232_v36 = vpop.eup %3231  ;;  %v2031_v22 = vmul.f32 %v3230_v19, %v3228_v57 }
 0x769   : > { %v2030_v53 = vmul.f32 %v3232_v36, %v4356_v60  ;;  %v3234_v13 = vpop.eup %3233 }
 0x76b   : > { %v2032_v62 = vadd.f32 %v2031_v22, %v2030_v53 }
 0x76d   : > { %3235 = vtanh.f32 %v2032_v62 }
 0x777   : > { %v3236_v11 = vpop.eup %3235 }
 0x778   : > { %v2034_v24 = vmul.f32 %v3236_v11, %v3234_v13 }
 0x77a   : > { %2519 = vst [vmem:[%s3552_s28 + $0x30] sm:$0xff] %v2034_v24  ;;  %2175 = vmatmul.mubr.f32.vlgmr.msra.gmra.mrb[14].mxu0 %v2034_v24  ;;  %2246 = vmatmul.mubr.f32.vlgmr.msra.gmra.mrb[14].mxu1 %v2034_v24 }
 0x84d   : > { %v2176_v20 = vpop.f32.mrb[14].mxu0  ;;  %v2247_v23 = vpop.f32.mrb[14].mxu1 }
 0x84e   : > { %v2252_v28 = vadd.f32 %v2520_v43, %v2176_v20  ;;  %v2178_v32 = vpop.f32.mrb[15].mxu0  ;;  %v2249_v38 = vpop.f32.mrb[15].mxu1  ;;  %v2254_v25 = vadd.f32 %v2522_v61, %v2247_v23 }
 0x84f   : > { %v2253_v42 = vadd.f32 %v2521_v8, %v2178_v32  ;;  %v2255_v18 = vadd.f32 %v2523_v35, %v2249_v38 }
 0x850   : > { %v2524_v60 = vmul.f32 -1.442695, %v2252_v28 }
 0x851   : > { %v2525_v21 = vmul.f32 -1.442695, %v2253_v42  ;;  %v2526_v55 = vmul.f32 -1.442695, %v2255_v18 }
 0x852   : > { %3237 = vpow2.f32 %v2524_v60 }
 0x853   : > { %3239 = vpow2.f32 %v2525_v21 }
 0x854   : > { %3241 = vpow2.f32 %v2526_v55 }
 0x855   : > { %3243 = vtanh.f32 %v2254_v25 }
 0x85c   : > { %v3238_v26 = vpop.eup %3237 }
 0x85d   : > { %v3240_v29 = vpop.eup %3239  ;;  %v2259_v30 = vadd.f32 1.0, %v3238_v26 }
 0x85e   : > { %v2265_v34 = vadd.f32 1.0, %v3240_v29  ;;  %v3242_v37 = vpop.eup %3241 }
 0x85f   : > { %3245 = vrcp.f32 %v2259_v30  ;;  %v3244_v44 = vpop.eup %3243  ;;  %v2272_v33 = vadd.f32 1.0, %v3242_v37 }
 0x860   : > { %3247 = vrcp.f32 %v2265_v34 }
 0x861   : > { %3249 = vrcp.f32 %v2272_v33 }
 0x869   : > { %v3246_v41 = vpop.eup %3245 }
 0x86a   : > { %v3248_v2 = vpop.eup %3247  ;;  %v2276_v17 = vmul.f32 %v3246_v41, %v3244_v44 }
 0x86b   : > { %v2275_v48 = vmul.f32 %v3248_v2, %v2032_v62  ;;  %v3250_v46 = vpop.eup %3249 }
 0x86d   : > { %v2277_v10 = vadd.f32 %v2276_v17, %v2275_v48 }
 0x86f   : > { %3251 = vtanh.f32 %v2277_v10  ;;  %2281 = vst [vmem:[#allocation3] sm:$0xff] %v2277_v10 }
 0x876   : > { %2287 = sbr.rel (%p2528_p3) target bundleno = 2181 (0x885), region = 59  ;;  %v2290_v31 = vld [vmem:[#allocation3] sm:$0xff] (!%p2528_p3) }
 0x877   : > { %2291 = vst [vmem:[%s3548_s24] sm:$0xff] (!%p2528_p3), %v2290_v31 }
 0x879   : > { %v3252_v54 = vpop.eup %3251 }
 0x87a   : > { %v2279_v58 = vmul.f32 %v3252_v54, %v3250_v46 }
 0x87c   : > { %2280 = vst [vmem:[#allocation2] sm:$0xff] %v2279_v58  ;;  %2527 = vst [vmem:[%s3552_s28 + $0x38] sm:$0xff] %v2279_v58 }
 0x883   : > { %v2288_v14 = vld [vmem:[#allocation2] sm:$0xff] }
 0x884   : > { %2289 = vst [vmem:[%s3543_s13] sm:$0xff] %v2288_v14 }
 0x885 PF: > { %s2536_s27 = sshll.u32 %s3331_s18, 4  ;;  %s2316_s23 = sshll.u32 %s3552_s28, 4  ;;  %s4474_s23 = int_to_ptr.vmem [resolvable:$true] %s2316_s23 }
 0x886   : > { %s2313_s14 = sadd.s32 %s3335_s19, %s2536_s27  ;;  %s2293_s24 = scalar_lea.sflag [#allocation6], %s3534_s5 }
 0x887   : > { %s2532_s9 = sshll.u32 %s2313_s14, 7  ;;  %s3253_s12 = scalar_lea.vmem %s4474_s23, 1024 }
 0x888   : > { %s4479_s13 = scalar_lea.hbm %s4535_s2, %s2532_s9  ;;  %p3254_p4 = scmp.ne.s32.totalorder %s4474_s23, %s3253_s12 }
 0x889   : > { %s3351_s18 = smov [#allocation5]  }
 0x88a   : > { %p3255_p5 = pnand %p3254_p4, %p3440_p8  ;;  %s3257_s19 = sshll.u32 %s3351_s18, 4  ;;  %s3258_s19 = int_to_ptr.vmem [resolvable:$false] %s3257_s19 }
 0x88b   : > { %s3259_s28 = scalar_lea.vmem %s3258_s19, 2048  ;;  %p3260_p7 = scmp.lt.s32.totalorder %s4474_s23, %s3258_s19 }
 0x88c   : > { %p3256_p6 = pneg %p3255_p5  ;;  %p3261_p10 = scmp.lt.s32.totalorder %s3259_s28, %s3253_s12 }
 0x88e   : > { %p3262_p11 = por %p3261_p10, %p3260_p7 }
 0x890   : > { %p3263_p12 = pnand %p3262_p11, %p3256_p6 }
 0x892   : > { %3266 = shalt.err (!%p3263_p12)
}
 0x893   : > { %s3267_s10 = scalar_lea.hbm %s4479_s13, 1024  ;;  %s3271_s7 = scalar_lea.hbm %s4535_s2, 4096 }
 0x894   : > { %p3268_p13 = scmp.ne.s32.totalorder %s4479_s13, %s3267_s10  ;;  %p3272_p2 = scmp.lt.u32.totalorder %s4479_s13, %s4535_s2 }
 0x895   : > { %p3273_p3 = scmp.lt.u32.totalorder %s3271_s7, %s3267_s10  ;;  %p3275_p5 = scmp.lt.u32.totalorder %s3267_s10, %s4479_s13 }
 0x896   : > { %p3269_p0 = pnand %p3268_p13, %p3440_p8 }
 0x897   : > { %p3274_p4 = por %p3273_p3, %p3272_p2 }
 0x898   : > { %p3270_p1 = pneg %p3269_p0 }
 0x899   : > { %p3276_p6 = por %p3275_p5, %p3274_p4 }
 0x89b   : > { %p3277_p7 = pnand %p3276_p6, %p3270_p1 }
 0x89d   : > { %3280 = shalt.err (!%p3277_p7)
}
 0x89e   : > { %s3352_s9 = smov 128   ;;  %s3353_s11 = smov 256  }
 0x89f   : > { %s3354_s0 = smov 8  }
 0x8a0   : > { %3049 = dma.vmem_to_hbm [thread:$0]  (%p3440_p8), %s4474_s23, 1024, %s4479_s13, %s2293_s24, %s3352_s9, %s3353_s11, %s3354_s0  }
 0x8a1 PF: > { %p3055_p10 = scmp.ge.s32.totalorder %s3347_s22, 2  ;;  %s2337_s12 = sand.u32 1, %s3319_s15  }
 0x8a2   : > { %s2338_s18 = scalar_lea.sflag [#allocation6], %s2337_s12 }
 0x8a3   : > { %p3052_p11 = pnand %p3055_p10, %p3444_p9 }
 0x8a5   : > { %3314 = dma.done.wait (!%p3052_p11), %s2338_s18, 1024  }
 0x8a6   : > { %3316 = vsyncadd (!%p3052_p11), %s2338_s18, 4294966272  ;;  %s18_s22 = sadd.s32 1, %s3347_s22   ;;  %s4545_s15 = smov %s3323_s16 }
 0x8a7   : > { %p15_p12 = scmp.ge.s32.totalorder %s18_s22, 6   ;;  %s4546_s16 = smov %s3327_s17 }
 0x8a8   : > { %s4547_s17 = smov %s3452_s8  ;;  %s4548_s18 = smov %s3339_s20 }
 0x8a9   : > { %s4549_s19 = smov %s3343_s21  ;;  %s4550_s20 = smov %s4553_s25 }
 0x8aa   : > { %s4551_s21 = smov %s4557_s26  ;;  %17 = sbr.rel (!%p15_p12) target bundleno = 8 (0x8), region = 137 }
 0x8b1   :  { %2357 = vsyncpa [#allocation6], 1 }
 0x8b2   :  { %2359 = vsyncpa [#allocation6 + $0x1], 1 }

</bundles_post_ra>
